<compile_context>
chip_gen: v7x
topology: tpu7x:2x2x1
jax: 0.10.0
libtpu: 0.0.40
codegen_flags: <defaults>
</compile_context>

<pallas_src>
import math

import numpy as np
import jax
import jax.numpy as jnp
from jax.experimental import pallas as pl
from jax.experimental.pallas import tpu as pltpu

HIDDEN = 256
TIME_DIM = 128  # SinusoidalPositionEmbeddings(128)

# Host-side sinusoidal frequency constant (no runtime iota/exp).
_HALF = TIME_DIM // 2
_FREQS = np.exp(
    -(math.log(10000.0) / (_HALF - 1)) * np.arange(_HALF, dtype=np.float64)
).astype(np.float32)


def _silu(x):
    return x * jax.nn.sigmoid(x)


# ---------------------------------------------------------------------------
# time embedding (tiny, B rows) -> per-batch scalar time_scale, in plain JAX
# ---------------------------------------------------------------------------
def compute_time_scale(timesteps, tparams):
    tw1, tb1, tw2, tb2 = tparams
    t = timesteps.astype(jnp.float32)[:, None]                     # (B, 1)
    arg = t * jnp.asarray(_FREQS)[None, :]                         # (B, 64)
    emb = jnp.concatenate([jnp.sin(arg), jnp.cos(arg)], axis=-1)   # (B, 128)
    h = _silu(emb @ tw1 + tb1)
    t_emb = h @ tw2 + tb2                                          # (B, 256)
    return jnp.mean(t_emb, axis=-1)                                # (B,)


# ---------------------------------------------------------------------------
# Fused Pallas kernel: both 3-layer SiLU MLPs (transposed layout, rows in lanes)
# ---------------------------------------------------------------------------
def fused_mlp_kernel(ts_ref, x_ref, w1t_ref, b1_ref, w2t_ref, b2_ref,
                     w3t_ref, b3_ref, o_ref):
    b = pl.program_id(1)                     # batch index; tiles never straddle batches
    ts = ts_ref[b]                           # per-batch scalar from SMEM

    xt = x_ref[0, 0]                         # (F, C) f32, rows in the lane dim
    w1t = w1t_ref[0]                         # (H, F) f32
    n_feat = xt.shape[0]                     # static (8)

    # ---- layer 1 on the VPU: h[j, c] = sum_f w1t[j, f] * x[f, c]  (K = 8) ----
    acc = w1t[:, 0:1] * xt[0:1, :]
    for f in range(1, n_feat):               # static unrolled loop
        acc = acc + w1t[:, f:f + 1] * xt[f:f + 1, :]
    h = _silu(acc + b1_ref[0]).astype(w2t_ref.dtype)          # (H, C) bf16

    # ---- layers 2/3 on the MXU: bf16 inputs, f32 accumulation ----
    h = jnp.dot(w2t_ref[0], h, preferred_element_type=jnp.float32) + b2_ref[0]
    h = _silu(h).astype(w3t_ref.dtype)                         # (H, C) bf16

    b3_eff = b3_ref[0] + 0.1 * ts            # fold the time offset into the bias
    o_ref[0, 0] = jnp.dot(w3t_ref[0], h,
                          preferred_element_type=jnp.float32) + b3_eff


def _pad_cols(n):
    """Padded row-count for the lane dim: keep small sizes exact, round big ones
    up to a multiple of 128 so a 128-multiple tile always divides it."""
    if n <= 512:
        return n
    return ((n + 127) // 128) * 128


def _pick_col_tile(n, target=512):
    """Lane-dim tile: a multiple-of-128 divisor of n (prefer 512/256), else full."""
    if n <= target:
        return n
    for cand in (512, 384, 256, 128):
        if cand <= target and n % cand == 0:
            return cand
    return n


def fused_mlp_call(x_all, time_scale, fused_params):
    """x_all: (2, B, Fp, C) f32 transposed/padded slabs; time_scale: (B,) f32."""
    w1t, b1, w2t, b2, w3t, b3 = fused_params
    n_task, B, Fp, C = x_all.shape
    tc = _pick_col_tile(C)
    grid = (n_task, B, C // tc)              # >= 2 parallel steps even when B == 1

    rows = n_task * B * C
    mm = Fp * HIDDEN + HIDDEN * HIDDEN + HIDDEN * Fp
    cost = pl.CostEstimate(
        flops=int(2 * rows * mm),
        transcendentals=int(rows * 2 * HIDDEN),
        bytes_accessed=int(rows * Fp * 4 * 2 + n_task * mm * 2
                           + n_task * (2 * HIDDEN + Fp) * 4 + B * 4),
    )

    def per_task(shape):
        zeros = (0,) * len(shape)
        return pl.BlockSpec((1,) + shape, lambda t, b, i: (t,) + zeros)

    return pl.pallas_call(
        fused_mlp_kernel,
        out_shape=jax.ShapeDtypeStruct((n_task, B, Fp, C), jnp.float32),
        grid=grid,
        in_specs=[
            pl.BlockSpec(memory_space=pltpu.MemorySpace.SMEM),       # time_scale (B,)
            pl.BlockSpec((1, 1, Fp, tc), lambda t, b, i: (t, b, 0, i)),  # x slab tile
            per_task((HIDDEN, Fp)),                                  # w1t  f32
            per_task((HIDDEN, 1)),                                   # b1   f32
            per_task((HIDDEN, HIDDEN)),                              # w2t  bf16
            per_task((HIDDEN, 1)),                                   # b2   f32
            per_task((Fp, HIDDEN)),                                  # w3t  bf16
            per_task((Fp, 1)),                                       # b3   f32
        ],
        out_specs=pl.BlockSpec((1, 1, Fp, tc), lambda t, b, i: (t, b, 0, i)),
        compiler_params=pltpu.CompilerParams(
            dimension_semantics=("parallel", "parallel", "parallel")),
        cost_estimate=cost,
    )(time_scale, x_all, w1t, b1, w2t, b2, w3t, b3)


# ---------------------------------------------------------------------------
# Full forward (glue in plain JAX, hot path is the single fused Pallas call)
# ---------------------------------------------------------------------------
def simple_mps_diffusion_forward(agents, lights, timesteps, params):
    B, Na, Ta, Fa = agents.shape
    _, Nl, Tl, Fl = lights.shape
    nta, ntl = Na * Ta, Nl * Tl
    Fp = max(Fa, Fl)
    C = _pad_cols(max(nta, ntl))

    time_scale = compute_time_scale(timesteps, params["time"])      # (B,) f32

    def to_slab(x, nt, f):
        xt = jnp.transpose(x.reshape(B, nt, f), (0, 2, 1))          # (B, f, nt)
        return jnp.pad(xt, ((0, 0), (0, Fp - f), (0, C - nt)))      # (B, Fp, C)

    x_all = jnp.stack([to_slab(agents, nta, Fa),
                       to_slab(lights, ntl, Fl)], axis=0)           # (2, B, Fp, C)

    out = fused_mlp_call(x_all, time_scale, params["fused"])        # (2, B, Fp, C)

    agents_out = jnp.transpose(out[0, :, :Fa, :nta], (0, 2, 1)).reshape(B, Na, Ta, Fa)
    lights_out = jnp.transpose(out[1, :, :Fl, :ntl], (0, 2, 1)).reshape(B, Nl, Tl, Fl)
    return {"agents": agents_out, "lights": lights_out}


# ---------------------------------------------------------------------------
# Deterministic parameter init (PyTorch-style uniform bounds, synthetic) + fusion
# ---------------------------------------------------------------------------
def init_linear(key, fan_in, fan_out, w_dtype=jnp.float32):
    kw, kb = jax.random.split(key)
    bound = 1.0 / math.sqrt(fan_in)
    w = jax.random.uniform(kw, (fan_in, fan_out), jnp.float32, -bound, bound).astype(w_dtype)
    b = jax.random.uniform(kb, (1, fan_out), jnp.float32, -bound, bound)
    return w, b


def _fuse_mlp_params(agent_p, light_p, Fa, Fl, mxu_dtype=jnp.bfloat16):
    """Pad the light net to Fp features, transpose every weight so the kernel
    contracts (H, K) @ (K, rows), and stack agent/light along a task axis."""
    Fp = max(Fa, Fl)
    aw1, ab1, aw2, ab2, aw3, ab3 = agent_p
    lw1, lb1, lw2, lb2, lw3, lb3 = light_p

    def pad_in(w, f):            # (f, H) -> (Fp, H), f32
        return jnp.pad(w.astype(jnp.float32), ((0, Fp - f), (0, 0)))

    def pad_out(w, f):           # (H, f) -> (H, Fp), f32
        return jnp.pad(w.astype(jnp.float32), ((0, 0), (0, Fp - f)))

    def pad_b(bv, f):            # (1, f) -> (1, Fp)
        return jnp.pad(bv, ((0, 0), (0, Fp - f)))

    w1t = jnp.stack([pad_in(aw1, Fa).T, pad_in(lw1, Fl).T])                      # (2,H,Fp) f32
    b1 = jnp.stack([ab1.T, lb1.T])                                               # (2,H,1)  f32
    w2t = jnp.stack([aw2.T, lw2.T]).astype(mxu_dtype)                            # (2,H,H)  bf16
    b2 = jnp.stack([ab2.T, lb2.T])                                               # (2,H,1)  f32
    w3t = jnp.stack([pad_out(aw3, Fa).T, pad_out(lw3, Fl).T]).astype(mxu_dtype)  # (2,Fp,H) bf16
    b3 = jnp.stack([pad_b(ab3, Fa).T, pad_b(lb3, Fl).T])                         # (2,Fp,1) f32
    return (w1t, b1, w2t, b2, w3t, b3)


def init_params(key, agent_features, light_features, mlp_dtype=jnp.bfloat16):
    keys = jax.random.split(key, 8)
    tw1, tb1 = init_linear(keys[0], TIME_DIM, HIDDEN)                # time net stays f32
    tw2, tb2 = init_linear(keys[1], HIDDEN, HIDDEN)
    agent_p = (*init_linear(keys[2], agent_features, HIDDEN, mlp_dtype),
               *init_linear(keys[3], HIDDEN, HIDDEN, mlp_dtype),
               *init_linear(keys[4], HIDDEN, agent_features, mlp_dtype))
    light_p = (*init_linear(keys[5], light_features, HIDDEN, mlp_dtype),
               *init_linear(keys[6], HIDDEN, HIDDEN, mlp_dtype),
               *init_linear(keys[7], HIDDEN, light_features, mlp_dtype))
    fused = _fuse_mlp_params(agent_p, light_p, agent_features, light_features, mlp_dtype)
    return {
        "time": (tw1, tb1, tw2, tb2),
        "agent": agent_p,
        "light": light_p,
        "fused": fused,
    }


# ---------------------------------------------------------------------------
# Plain-JAX f32 reference (for sanity check)
# ---------------------------------------------------------------------------
def reference_forward(agents, lights, timesteps, params):
    tw1, tb1, tw2, tb2 = params["time"]
    t = timesteps.astype(jnp.float32)
    half = TIME_DIM // 2
    freqs = jnp.exp(-(math.log(10000.0) / (half - 1)) * jnp.arange(half, dtype=jnp.float32))
    arg = t[:, None] * freqs[None, :]
    emb = jnp.concatenate([jnp.sin(arg), jnp.cos(arg)], axis=-1)
    h = _silu(emb @ tw1 + tb1)
    t_emb = h @ tw2 + tb2
    time_scale = t_emb.mean(axis=1)[:, None, None, None]

    def mlp(x, p):
        w1, b1, w2, b2, w3, b3 = p
        h = _silu(x @ w1.astype(jnp.float32) + b1)
        h = _silu(h @ w2.astype(jnp.float32) + b2)
        return h @ w3.astype(jnp.float32) + b3

    B, Na, Ta, Fa = agents.shape
    _, Nl, Tl, Fl = lights.shape
    a = mlp(agents.reshape(-1, Fa), params["agent"]).reshape(B, Na, Ta, Fa) + 0.1 * time_scale
    l = mlp(lights.reshape(-1, Fl), params["light"]).reshape(B, Nl, Tl, Fl) + 0.1 * time_scale
    return {"agents": a, "lights": l}


if __name__ == "__main__":
    # Small, shape-consistent synthetic problem:
    #   agents: (B=2, N_agents=4, T=8, agent_features=8)
    #   lights: (B=2, N_lights=2, T=8, light_features=4)
    #   timesteps: (B=2,) ints in [0, 100)  (num_diffusion_steps=100)
    key = jax.random.PRNGKey(0)
    k_p, k_a, k_l, k_t = jax.random.split(key, 4)

    B, Na, Ta, Fa = 2, 4, 8, 8
    Nl, Tl, Fl = 2, 8, 4

    params = init_params(k_p, agent_features=Fa, light_features=Fl)
    agents = jax.random.normal(k_a, (B, Na, Ta, Fa), jnp.float32)
    lights = jax.random.normal(k_l, (B, Nl, Tl, Fl), jnp.float32)
    timesteps = jax.random.randint(k_t, (B,), 0, 100)

    fwd = jax.jit(simple_mps_diffusion_forward)
    out = jax.block_until_ready(fwd(agents, lights, timesteps, params))

    ref = reference_forward(agents, lights, timesteps, params)
    assert out["agents"].shape == (B, Na, Ta, Fa)
    assert out["lights"].shape == (B, Nl, Tl, Fl)
    assert jnp.allclose(out["agents"], ref["agents"], atol=3e-2, rtol=3e-2)
    assert jnp.allclose(out["lights"], ref["lights"], atol=3e-2, rtol=3e-2)

    print("KERNEL_OK")
</pallas_src>

<mosaic_0001>
module attributes {stable_mosaic.version = 11 : i64} {
  func.func @fused_mlp_kernel(%arg0: i32, %arg1: i32, %arg2: i32, %arg3: memref<2xf32, #tpu.memory_space<smem>>, %arg4: memref<1x1x8x32xf32, #tpu.memory_space<vmem>>, %arg5: memref<1x256x8xf32, #tpu.memory_space<vmem>>, %arg6: memref<1x256x1xf32, #tpu.memory_space<vmem>>, %arg7: memref<1x256x256xbf16, #tpu.memory_space<vmem>>, %arg8: memref<1x256x1xf32, #tpu.memory_space<vmem>>, %arg9: memref<1x8x256xbf16, #tpu.memory_space<vmem>>, %arg10: memref<1x8x1xf32, #tpu.memory_space<vmem>>, %arg11: memref<1x1x8x32xf32, #tpu.memory_space<vmem>>) attributes {dimension_semantics = [#tpu.dimension_semantics<parallel>, #tpu.dimension_semantics<parallel>, #tpu.dimension_semantics<parallel>], iteration_bounds = array<i64: 2, 2, 1>, scalar_prefetch = 0 : i64, scratch_operands = 0 : i64, tpu.core_type = #tpu.core_type<tc>, window_params = [{transform_indices = @transform_0, window_bounds = array<i64: 2>}, {transform_indices = @transform_1, window_bounds = array<i64: 1, 1, 8, 32>}, {transform_indices = @transform_2, window_bounds = array<i64: 1, 256, 8>}, {transform_indices = @transform_3, window_bounds = array<i64: 1, 256, 1>}, {transform_indices = @transform_4, window_bounds = array<i64: 1, 256, 256>}, {transform_indices = @transform_5, window_bounds = array<i64: 1, 256, 1>}, {transform_indices = @transform_6, window_bounds = array<i64: 1, 8, 256>}, {transform_indices = @transform_7, window_bounds = array<i64: 1, 8, 1>}, {transform_indices = @transform_8, window_bounds = array<i64: 1, 1, 8, 32>}]} {
    %0 = arith.index_cast %arg1 : i32 to index
    %1 = memref.load %arg3[%0] : memref<2xf32, #tpu.memory_space<smem>>
    %c0 = arith.constant 0 : index
    %c0_0 = arith.constant 0 : index
    %c0_1 = arith.constant 0 : index
    %c0_2 = arith.constant 0 : index
    %2 = vector.load %arg4[%c0, %c0_0, %c0_1, %c0_2] : memref<1x1x8x32xf32, #tpu.memory_space<vmem>>, vector<1x1x8x32xf32>
    %3 = vector.shape_cast %2 : vector<1x1x8x32xf32> to vector<8x32xf32>
    %c0_3 = arith.constant 0 : index
    %c0_4 = arith.constant 0 : index
    %c0_5 = arith.constant 0 : index
    %4 = vector.load %arg5[%c0_3, %c0_4, %c0_5] : memref<1x256x8xf32, #tpu.memory_space<vmem>>, vector<1x256x8xf32>
    %5 = vector.shape_cast %4 : vector<1x256x8xf32> to vector<256x8xf32>
    %6 = vector.extract_strided_slice %5 {offsets = [0, 0], sizes = [256, 1], strides = [1, 1]} : vector<256x8xf32> to vector<256x1xf32>
    %7 = vector.extract_strided_slice %3 {offsets = [0, 0], sizes = [1, 32], strides = [1, 1]} : vector<8x32xf32> to vector<1x32xf32>
    %8 = vector.broadcast %6 : vector<256x1xf32> to vector<256x32xf32>
    %9 = vector.broadcast %7 : vector<1x32xf32> to vector<256x32xf32>
    %10 = arith.mulf %8, %9 : vector<256x32xf32>
    %11 = vector.extract_strided_slice %5 {offsets = [0, 1], sizes = [256, 1], strides = [1, 1]} : vector<256x8xf32> to vector<256x1xf32>
    %12 = vector.extract_strided_slice %3 {offsets = [1, 0], sizes = [1, 32], strides = [1, 1]} : vector<8x32xf32> to vector<1x32xf32>
    %13 = vector.broadcast %11 : vector<256x1xf32> to vector<256x32xf32>
    %14 = vector.broadcast %12 : vector<1x32xf32> to vector<256x32xf32>
    %15 = arith.mulf %13, %14 : vector<256x32xf32>
    %16 = arith.addf %10, %15 : vector<256x32xf32>
    %17 = vector.extract_strided_slice %5 {offsets = [0, 2], sizes = [256, 1], strides = [1, 1]} : vector<256x8xf32> to vector<256x1xf32>
    %18 = vector.extract_strided_slice %3 {offsets = [2, 0], sizes = [1, 32], strides = [1, 1]} : vector<8x32xf32> to vector<1x32xf32>
    %19 = vector.broadcast %17 : vector<256x1xf32> to vector<256x32xf32>
    %20 = vector.broadcast %18 : vector<1x32xf32> to vector<256x32xf32>
    %21 = arith.mulf %19, %20 : vector<256x32xf32>
    %22 = arith.addf %16, %21 : vector<256x32xf32>
    %23 = vector.extract_strided_slice %5 {offsets = [0, 3], sizes = [256, 1], strides = [1, 1]} : vector<256x8xf32> to vector<256x1xf32>
    %24 = vector.extract_strided_slice %3 {offsets = [3, 0], sizes = [1, 32], strides = [1, 1]} : vector<8x32xf32> to vector<1x32xf32>
    %25 = vector.broadcast %23 : vector<256x1xf32> to vector<256x32xf32>
    %26 = vector.broadcast %24 : vector<1x32xf32> to vector<256x32xf32>
    %27 = arith.mulf %25, %26 : vector<256x32xf32>
    %28 = arith.addf %22, %27 : vector<256x32xf32>
    %29 = vector.extract_strided_slice %5 {offsets = [0, 4], sizes = [256, 1], strides = [1, 1]} : vector<256x8xf32> to vector<256x1xf32>
    %30 = vector.extract_strided_slice %3 {offsets = [4, 0], sizes = [1, 32], strides = [1, 1]} : vector<8x32xf32> to vector<1x32xf32>
    %31 = vector.broadcast %29 : vector<256x1xf32> to vector<256x32xf32>
    %32 = vector.broadcast %30 : vector<1x32xf32> to vector<256x32xf32>
    %33 = arith.mulf %31, %32 : vector<256x32xf32>
    %34 = arith.addf %28, %33 : vector<256x32xf32>
    %35 = vector.extract_strided_slice %5 {offsets = [0, 5], sizes = [256, 1], strides = [1, 1]} : vector<256x8xf32> to vector<256x1xf32>
    %36 = vector.extract_strided_slice %3 {offsets = [5, 0], sizes = [1, 32], strides = [1, 1]} : vector<8x32xf32> to vector<1x32xf32>
    %37 = vector.broadcast %35 : vector<256x1xf32> to vector<256x32xf32>
    %38 = vector.broadcast %36 : vector<1x32xf32> to vector<256x32xf32>
    %39 = arith.mulf %37, %38 : vector<256x32xf32>
    %40 = arith.addf %34, %39 : vector<256x32xf32>
    %41 = vector.extract_strided_slice %5 {offsets = [0, 6], sizes = [256, 1], strides = [1, 1]} : vector<256x8xf32> to vector<256x1xf32>
    %42 = vector.extract_strided_slice %3 {offsets = [6, 0], sizes = [1, 32], strides = [1, 1]} : vector<8x32xf32> to vector<1x32xf32>
    %43 = vector.broadcast %41 : vector<256x1xf32> to vector<256x32xf32>
    %44 = vector.broadcast %42 : vector<1x32xf32> to vector<256x32xf32>
    %45 = arith.mulf %43, %44 : vector<256x32xf32>
    %46 = arith.addf %40, %45 : vector<256x32xf32>
    %47 = vector.extract_strided_slice %5 {offsets = [0, 7], sizes = [256, 1], strides = [1, 1]} : vector<256x8xf32> to vector<256x1xf32>
    %48 = vector.extract_strided_slice %3 {offsets = [7, 0], sizes = [1, 32], strides = [1, 1]} : vector<8x32xf32> to vector<1x32xf32>
    %49 = vector.broadcast %47 : vector<256x1xf32> to vector<256x32xf32>
    %50 = vector.broadcast %48 : vector<1x32xf32> to vector<256x32xf32>
    %51 = arith.mulf %49, %50 : vector<256x32xf32>
    %52 = arith.addf %46, %51 : vector<256x32xf32>
    %c0_6 = arith.constant 0 : index
    %c0_7 = arith.constant 0 : index
    %c0_8 = arith.constant 0 : index
    %53 = vector.load %arg6[%c0_6, %c0_7, %c0_8] : memref<1x256x1xf32, #tpu.memory_space<vmem>>, vector<1x256x1xf32>
    %54 = vector.shape_cast %53 : vector<1x256x1xf32> to vector<256x1xf32>
    %55 = vector.broadcast %54 : vector<256x1xf32> to vector<256x32xf32>
    %56 = arith.addf %52, %55 : vector<256x32xf32>
    %57 = arith.negf %56 : vector<256x32xf32>
    %58 = math.exp %57 : vector<256x32xf32>
    %cst = arith.constant 1.000000e+00 : f32
    %59 = vector.broadcast %cst : f32 to vector<256x32xf32>
    %60 = arith.addf %59, %58 : vector<256x32xf32>
    %61 = arith.divf %59, %60 : vector<256x32xf32>
    %62 = arith.mulf %56, %61 : vector<256x32xf32>
    %63 = arith.truncf %62 : vector<256x32xf32> to vector<256x32xbf16>
    %c0_9 = arith.constant 0 : index
    %c0_10 = arith.constant 0 : index
    %c0_11 = arith.constant 0 : index
    %64 = vector.load %arg7[%c0_9, %c0_10, %c0_11] : memref<1x256x256xbf16, #tpu.memory_space<vmem>>, vector<1x256x256xbf16>
    %65 = vector.shape_cast %64 : vector<1x256x256xbf16> to vector<256x256xbf16>
    %cst_12 = arith.constant dense<0.000000e+00> : vector<256x32xf32>
    %66 = tpu.matmul %65, %63, %cst_12 {dimension_numbers = #tpu.dot_dimension_numbers<[1], [0], [0], [1], [0, 0, 1, 1], [], []>} : vector<256x256xbf16>, vector<256x32xbf16>, vector<256x32xf32> -> vector<256x32xf32>
    %c0_13 = arith.constant 0 : index
    %c0_14 = arith.constant 0 : index
    %c0_15 = arith.constant 0 : index
    %67 = vector.load %arg8[%c0_13, %c0_14, %c0_15] : memref<1x256x1xf32, #tpu.memory_space<vmem>>, vector<1x256x1xf32>
    %68 = vector.shape_cast %67 : vector<1x256x1xf32> to vector<256x1xf32>
    %69 = vector.broadcast %68 : vector<256x1xf32> to vector<256x32xf32>
    %70 = arith.addf %66, %69 : vector<256x32xf32>
    %71 = arith.negf %70 : vector<256x32xf32>
    %72 = math.exp %71 : vector<256x32xf32>
    %cst_16 = arith.constant 1.000000e+00 : f32
    %73 = vector.broadcast %cst_16 : f32 to vector<256x32xf32>
    %74 = arith.addf %73, %72 : vector<256x32xf32>
    %75 = arith.divf %73, %74 : vector<256x32xf32>
    %76 = arith.mulf %70, %75 : vector<256x32xf32>
    %77 = arith.truncf %76 : vector<256x32xf32> to vector<256x32xbf16>
    %c0_17 = arith.constant 0 : index
    %c0_18 = arith.constant 0 : index
    %c0_19 = arith.constant 0 : index
    %78 = vector.load %arg10[%c0_17, %c0_18, %c0_19] : memref<1x8x1xf32, #tpu.memory_space<vmem>>, vector<1x8x1xf32>
    %79 = vector.shape_cast %78 : vector<1x8x1xf32> to vector<8x1xf32>
    %cst_20 = arith.constant 1.000000e-01 : f32
    %80 = arith.mulf %cst_20, %1 : f32
    %81 = vector.broadcast %80 : f32 to vector<8x1xf32>
    %82 = arith.addf %79, %81 : vector<8x1xf32>
    %c0_21 = arith.constant 0 : index
    %c0_22 = arith.constant 0 : index
    %c0_23 = arith.constant 0 : index
    %83 = vector.load %arg9[%c0_21, %c0_22, %c0_23] : memref<1x8x256xbf16, #tpu.memory_space<vmem>>, vector<1x8x256xbf16>
    %84 = vector.shape_cast %83 : vector<1x8x256xbf16> to vector<8x256xbf16>
    %cst_24 = arith.constant dense<0.000000e+00> : vector<8x32xf32>
    %85 = tpu.matmul %84, %77, %cst_24 {dimension_numbers = #tpu.dot_dimension_numbers<[1], [0], [0], [1], [0, 0, 1, 1], [], []>} : vector<8x256xbf16>, vector<256x32xbf16>, vector<8x32xf32> -> vector<8x32xf32>
    %86 = vector.broadcast %82 : vector<8x1xf32> to vector<8x32xf32>
    %87 = arith.addf %85, %86 : vector<8x32xf32>
    %c0_25 = arith.constant 0 : index
    %c0_26 = arith.constant 0 : index
    %c0_27 = arith.constant 0 : index
    %c0_28 = arith.constant 0 : index
    %88 = vector.load %arg11[%c0_25, %c0_26, %c0_27, %c0_28] : memref<1x1x8x32xf32, #tpu.memory_space<vmem>>, vector<1x1x8x32xf32>
    %89 = vector.shape_cast %88 : vector<1x1x8x32xf32> to vector<8x32xf32>
    %90 = vector.shape_cast %87 : vector<8x32xf32> to vector<1x1x8x32xf32>
    tpu.vector_store %arg11[%c0_25, %c0_26, %c0_27, %c0_28], %90 {strides = array<i32>} : memref<1x1x8x32xf32, #tpu.memory_space<vmem>>, vector<1x1x8x32xf32>,
    return
  }
  func.func @transform_0(%arg0: i32, %arg1: i32, %arg2: i32) -> i32 {
    %c0_i32 = arith.constant 0 : i32
    %c0_i32_0 = arith.constant 0 : i32
    return %c0_i32 : i32
  }
  func.func @transform_1(%arg0: i32, %arg1: i32, %arg2: i32) -> (i32, i32, i32, i32) {
    %c0_i32 = arith.constant 0 : i32
    %c0_i32_0 = arith.constant 0 : i32
    return %arg0, %arg1, %c0_i32, %arg2 : i32, i32, i32, i32
  }
  func.func @transform_2(%arg0: i32, %arg1: i32, %arg2: i32) -> (i32, i32, i32) {
    %c0_i32 = arith.constant 0 : i32
    %c0_i32_0 = arith.constant 0 : i32
    %c0_i32_1 = arith.constant 0 : i32
    return %arg0, %c0_i32, %c0_i32_0 : i32, i32, i32
  }
  func.func @transform_3(%arg0: i32, %arg1: i32, %arg2: i32) -> (i32, i32, i32) {
    %c0_i32 = arith.constant 0 : i32
    %c0_i32_0 = arith.constant 0 : i32
    %c0_i32_1 = arith.constant 0 : i32
    return %arg0, %c0_i32, %c0_i32_0 : i32, i32, i32
  }
  func.func @transform_4(%arg0: i32, %arg1: i32, %arg2: i32) -> (i32, i32, i32) {
    %c0_i32 = arith.constant 0 : i32
    %c0_i32_0 = arith.constant 0 : i32
    %c0_i32_1 = arith.constant 0 : i32
    return %arg0, %c0_i32, %c0_i32_0 : i32, i32, i32
  }
  func.func @transform_5(%arg0: i32, %arg1: i32, %arg2: i32) -> (i32, i32, i32) {
    %c0_i32 = arith.constant 0 : i32
    %c0_i32_0 = arith.constant 0 : i32
    %c0_i32_1 = arith.constant 0 : i32
    return %arg0, %c0_i32, %c0_i32_0 : i32, i32, i32
  }
  func.func @transform_6(%arg0: i32, %arg1: i32, %arg2: i32) -> (i32, i32, i32) {
    %c0_i32 = arith.constant 0 : i32
    %c0_i32_0 = arith.constant 0 : i32
    %c0_i32_1 = arith.constant 0 : i32
    return %arg0, %c0_i32, %c0_i32_0 : i32, i32, i32
  }
  func.func @transform_7(%arg0: i32, %arg1: i32, %arg2: i32) -> (i32, i32, i32) {
    %c0_i32 = arith.constant 0 : i32
    %c0_i32_0 = arith.constant 0 : i32
    %c0_i32_1 = arith.constant 0 : i32
    return %arg0, %c0_i32, %c0_i32_0 : i32, i32, i32
  }
  func.func @transform_8(%arg0: i32, %arg1: i32, %arg2: i32) -> (i32, i32, i32, i32) {
    %c0_i32 = arith.constant 0 : i32
    %c0_i32_0 = arith.constant 0 : i32
    return %arg0, %arg1, %c0_i32, %arg2 : i32, i32, i32, i32
  }
}

</mosaic_0001>

<bundles_post_ra>
// kernel: simple_mps_diffusion_forward.1
= control target key start
LH: loop header
LB: loop body
LE: loop exit
PB: predicated region body
PF: predicated region fallthrough
CT: control target
= control target key end

     0   :  { %13 = vsyncpa [#allocation3], 0  ;;  %s4436_s27 = smov 0   ;;  %s4438_s28 = smov 0   ;;  %s6526_s0 = inlined_call_operand.vmem [shape: f32[2], index: 0, kind: input, shape index: {}]   ;;  %s6527_s1 = inlined_call_operand.vmem [shape: f32[2,2,8,32], index: 1, kind: input, shape index: {}]   ;;  %s6528_s2 = inlined_call_operand.vmem [shape: f32[2,256,8], index: 2, kind: input, shape index: {}]   ;;  %s6529_s3 = inlined_call_operand.vmem [shape: f32[2,256,1], index: 3, kind: input, shape index: {}]   ;;  %s6530_s4 = inlined_call_operand.vmem [shape: bf16[2,256,256], index: 4, kind: input, shape index: {}]   ;;  %s6531_s5 = inlined_call_operand.vmem [shape: f32[2,256,1], index: 5, kind: input, shape index: {}]   ;;  %s6532_s6 = inlined_call_operand.vmem [shape: bf16[2,8,256], index: 6, kind: input, shape index: {}]   ;;  %s6533_s7 = inlined_call_operand.vmem [shape: f32[2,8,1], index: 7, kind: input, shape index: {}]   ;;  %s6534_s8 = inlined_call_operand.vmem [shape: f32[2,2,8,32], index: 8, kind: output, shape index: {}]  }
   0x1   :  { %s4440_s29 = smov 0   ;;  %s4442_s30 = smov 0  }
   0x2   :  { %s4444_s9 = smov 0  }
   0x3 LB: > { %s3592_s10 = sadd.s32 4294967295, %s4380_s9   ;;  %s34_s11 = sadd.s32 1, %s4372_s29  ;;  %s4380_s9 = sphi %s4444_s9, %s19_s9   ;;  %s4376_s30 = sphi %s4442_s30, %s6857_s30   ;;  %s4372_s29 = sphi %s4440_s29, %s6856_s29   ;;  %s4368_s28 = sphi %s4438_s28, %s6855_s28   ;;  %s4364_s27 = sphi %s4436_s27, %s6854_s27  }
   0x4   : > { %p36_p0 = scmp.ge.s32.totalorder %s34_s11, 2  ;;  %s38_s12 = sadd.s32 1, %s4376_s30 }
   0x5   : > { %p3594_p1 = scmp.ge.s32.totalorder %s4380_s9, 1  ;;  %p280_p2 = scmp.lt.s32.totalorder %s4380_s9, 5 }
   0x6   : > { %s6859_s11 = smov (%p36_p0, %s34_s11), 0  ;;  %s6861_s12 = smov (!%p36_p0, %s38_s12), %s4376_s30 }
   0x7   : > { %p4469_p3 = pnand %p3594_p1, %p280_p2  ;;  %p40_p4 = scmp.ge.s32.totalorder %s6861_s12, 2 }
   0x8   : > { %p4473_p5 = scmp.eq.s32.totalorder %s3592_s10, 0  ;;  %s293_s17 = sshll.u32 %s6526_s0, 4  ;;  %s294_s17 = int_to_ptr.vmem [resolvable:$true] %s293_s17 }
   0x9   : > { %p3873_p6 = pneg %p4469_p3  ;;  %s6863_s12 = smov (%p40_p4, %s6861_s12), 0 }
   0xa   : > { %s4323_s18 = scalar_lea.vmem %s294_s17, 16  ;;  %p4331_p12 = scmp.lt.s32.totalorder %s294_s17, %s294_s17 }
   0xb   : > { %p3874_p7 = pnand %p4473_p5, %p3873_p6  ;;  %p4324_p8 = scmp.ne.s32.totalorder %s294_s17, %s4323_s18 }
   0xc   : > { %p4332_p13 = scmp.lt.s32.totalorder %s4323_s18, %s4323_s18 }
   0xd   : > { %p4325_p9 = pneg %p3874_p7 }
   0xe   : > { %p4333_p0 = por %p4332_p13, %p4331_p12 }
   0xf   : > { %p4326_p10 = pnand %p4325_p9, %p4324_p8 }
  0x11   : > { %p4327_p11 = pneg %p4326_p10 }
  0x13   : > { %p4334_p1 = pnand %p4333_p0, %p4327_p11 }
  0x15   : > { %4337 = shalt.err (!%p4334_p1)
}
  0x16   : > { %s4382_s19 = smov [#allocation2]   ;;  %367 = sbr.rel (%p4469_p3) target bundleno = 1501 (0x5dd), region = 52 }
  0x17   : > { %3876 = dma.vmem_to_smem (!%p3874_p7), %s294_s17, 16, %s4382_s19, [#allocation3]  }
  0x1d   : > { %4359 = dma.done.wait (%p4473_p5), [#allocation3], 16  }
  0x1e   : > { %4361 = vsyncadd (%p4473_p5), [#allocation3], 4294967280 }
  0x1f   : > { %373 = sfence }
  0x20   : > { %p443_p2 = scmp.lt.s32.totalorder %s4368_s28, 1  ;;  %v4383_v0 = vmov 1   ;;  %v6535_v1 = vmov 0   ;;  %v4385_v20 = vmov 2   ;;  %v6537_v35 = vmov 3   ;;  %p445_p3 = scmp.lt.s32.totalorder %s4364_s27, 1 }
  0x21   : > { %3929 = vset.pattern.permute.xlu0 %v4383_v0  ;;  %3928 = vset.pattern.permute.xlu1 %v6535_v1  ;;  %s5394_s24 = sld [smem:[#allocation2 + %s4364_s27]]  ;;  %vm3403_vm0 = vcmask 261120  }
  0x22   : > { %s6865_s28 = smov (!%p443_p2, %s4368_s28), 1 }
  0x23   : > { %s4498_s20 = sshll.u32 %s6865_s28, 8  ;;  %s3599_s16 = sshll.u32 %s6865_s28, 1 }
  0x24   : > { %s4504_s23 = scalar_lea.vmem %s6528_s2, %s4498_s20  ;;  %s5062_s26 = scalar_lea.vmem %s6529_s3, %s4498_s20 }
  0x25   : > { %v4507_v2 = vld [vmem:[%s4504_s23 + $0x10] sm:$0xff]  ;;  %v4510_v3 = vld [vmem:[%s4504_s23] sm:$0xff]  ;;  %v4515_v4 = vld [vmem:[%s4504_s23 + $0x18] sm:$0xff]  ;;  %s5226_s14 = scalar_lea.vmem %s6531_s5, %s4498_s20 }
  0x26   : > { %541 = vperm.xlu1 %3928, %v4507_v2   ;;  %726 = vperm.xlu0 %3929, %v4510_v3   ;;  %v4520_v5 = vld [vmem:[%s4504_s23 + $0x28] sm:$0xff]  ;;  %v4525_v6 = vld [vmem:[%s4504_s23 + $0x38] sm:$0xff]  ;;  %v4595_v21 = vld [vmem:[%s4504_s23 + $0x20] sm:$0xff]  ;;  %s446_s15 = scalar_select %p445_p3, %s4364_s27, 1 }
  0x27   : > { %v4530_v7 = vld [vmem:[%s4504_s23 + $0x48] sm:$0xff]  ;;  %v4535_v8 = vld [vmem:[%s4504_s23 + $0x58] sm:$0xff]  ;;  %v4600_v22 = vld [vmem:[%s4504_s23 + $0x30] sm:$0xff]  ;;  %s3718_s27 = sshll.u32 %s6865_s28, 3  ;;  %s3347_s25 = smul.f32 0.1, %s5394_s24 }
  0x28   : > { %v4540_v9 = vld [vmem:[%s4504_s23 + $0x68] sm:$0xff]  ;;  %v4545_v10 = vld [vmem:[%s4504_s23 + $0x78] sm:$0xff]  ;;  %v4605_v23 = vld [vmem:[%s4504_s23 + $0x40] sm:$0xff]  ;;  %s5258_s17 = sadd.s32 %s3599_s16, %s446_s15  ;;  %s482_s15 = scalar_lea.vmem %s6533_s7, %s3718_s27 }
  0x29   : > { %v4550_v11 = vld [vmem:[%s4504_s23 + $0x88] sm:$0xff]  ;;  %v4555_v12 = vld [vmem:[%s4504_s23 + $0x98] sm:$0xff]  ;;  %v4610_v24 = vld [vmem:[%s4504_s23 + $0x50] sm:$0xff]  ;;  %s3600_s18 = sshll.u32 %s5258_s17, 3  ;;  %s5991_s16 = scalar_lea.vmem %s6530_s4, %s4498_s20 }
  0x2a   : > { %546 = vperm.xlu1 %3928, %v4515_v4   ;;  %738 = vperm.xlu0 %3929, %v4515_v4   ;;  %v4560_v13 = vld [vmem:[%s4504_s23 + $0xa8] sm:$0xff]  ;;  %v4565_v14 = vld [vmem:[%s4504_s23 + $0xb8] sm:$0xff]  ;;  %v4615_v25 = vld [vmem:[%s4504_s23 + $0x60] sm:$0xff]  ;;  %s453_s22 = scalar_lea.vmem %s6527_s1, %s3600_s18  ;;  %s478_s19 = scalar_lea.vmem %s6532_s6, %s3718_s27 }
  0x2b   : > { %v4570_v15 = vld [vmem:[%s4504_s23 + $0xc8] sm:$0xff]  ;;  %v4575_v16 = vld [vmem:[%s4504_s23 + $0xd8] sm:$0xff]  ;;  %v4620_v26 = vld [vmem:[%s4504_s23 + $0x70] sm:$0xff] }
  0x2c   : > { %v4580_v17 = vld [vmem:[%s4504_s23 + $0xe8] sm:$0xff]  ;;  %v4585_v18 = vld [vmem:[%s4504_s23 + $0xf8] sm:$0xff]  ;;  %v4625_v27 = vld [vmem:[%s4504_s23 + $0x80] sm:$0xff] }
  0x2d   : > { %v4590_v19 = vld [vmem:[%s4504_s23 + $0x8] sm:$0xff]  ;;  %v4630_v28 = vld [vmem:[%s4504_s23 + $0x90] sm:$0xff]  ;;  %v4635_v29 = vld [vmem:[%s4504_s23 + $0xa0] sm:$0xff] }
  0x2e   : > { %556 = vperm.xlu1 %3928, %v4520_v5   ;;  %746 = vperm.xlu0 %3929, %v4520_v5   ;;  %v4640_v30 = vld [vmem:[%s4504_s23 + $0xb0] sm:$0xff]  ;;  %v4645_v31 = vld [vmem:[%s4504_s23 + $0xc0] sm:$0xff] }
  0x2f   : > { %v4650_v32 = vld [vmem:[%s4504_s23 + $0xd0] sm:$0xff]  ;;  %v4655_v33 = vld [vmem:[%s4504_s23 + $0xe0] sm:$0xff] }
  0x30   : > { %v4660_v34 = vld [vmem:[%s4504_s23 + $0xf0] sm:$0xff] }
  0x32   : > { %566 = vperm.xlu1 %3928, %v4525_v6   ;;  %754 = vperm.xlu0 %3929, %v4525_v6  }
  0x36   : > { %576 = vperm.xlu1 %3928, %v4530_v7   ;;  %762 = vperm.xlu0 %3929, %v4530_v7  }
  0x3a   : > { %586 = vperm.xlu1 %3928, %v4535_v8   ;;  %770 = vperm.xlu0 %3929, %v4535_v8  }
  0x3e   : > { %596 = vperm.xlu1 %3928, %v4540_v9   ;;  %778 = vperm.xlu0 %3929, %v4540_v9  }
  0x42   : > { %606 = vperm.xlu1 %3928, %v4545_v10   ;;  %786 = vperm.xlu0 %3929, %v4545_v10  }
  0x46   : > { %616 = vperm.xlu1 %3928, %v4550_v11   ;;  %794 = vperm.xlu0 %3929, %v4550_v11  }
  0x4a   : > { %626 = vperm.xlu1 %3928, %v4555_v12   ;;  %802 = vperm.xlu0 %3929, %v4555_v12  }
  0x4e   : > { %636 = vperm.xlu1 %3928, %v4560_v13   ;;  %810 = vperm.xlu0 %3929, %v4560_v13  }
  0x52   : > { %646 = vperm.xlu1 %3928, %v4565_v14   ;;  %818 = vperm.xlu0 %3929, %v4565_v14  }
  0x56   : > { %656 = vperm.xlu1 %3928, %v4570_v15   ;;  %826 = vperm.xlu0 %3929, %v4570_v15  }
  0x5a   : > { %666 = vperm.xlu1 %3928, %v4575_v16   ;;  %834 = vperm.xlu0 %3929, %v4575_v16  }
  0x5e   : > { %676 = vperm.xlu1 %3928, %v4580_v17   ;;  %842 = vperm.xlu0 %3929, %v4580_v17  }
  0x62   : > { %686 = vperm.xlu1 %3928, %v4585_v18   ;;  %850 = vperm.xlu0 %3929, %v4585_v18  }
  0x66   : > { %3930 = vset.pattern.permute.xlu1 %v4383_v0  ;;  %3932 = vset.pattern.permute.xlu0 %v4385_v20 }
  0x67   : > { %730 = vperm.xlu1 %3930, %v4590_v19   ;;  %926 = vperm.xlu0 %3932, %v4590_v19  }
  0x6b   : > { %734 = vperm.xlu1 %3930, %v4507_v2   ;;  %938 = vperm.xlu0 %3932, %v4595_v21  }
  0x6f   : > { %742 = vperm.xlu1 %3930, %v4595_v21   ;;  %946 = vperm.xlu0 %3932, %v4600_v22  }
  0x73   : > { %750 = vperm.xlu1 %3930, %v4600_v22   ;;  %954 = vperm.xlu0 %3932, %v4605_v23  }
  0x77   : > { %758 = vperm.xlu1 %3930, %v4605_v23   ;;  %962 = vperm.xlu0 %3932, %v4610_v24  }
  0x7b   : > { %766 = vperm.xlu1 %3930, %v4610_v24   ;;  %970 = vperm.xlu0 %3932, %v4615_v25  }
  0x7f   : > { %774 = vperm.xlu1 %3930, %v4615_v25   ;;  %978 = vperm.xlu0 %3932, %v4620_v26  }
  0x83   : > { %782 = vperm.xlu1 %3930, %v4620_v26   ;;  %986 = vperm.xlu0 %3932, %v4625_v27  }
  0x87   : > { %790 = vperm.xlu1 %3930, %v4625_v27   ;;  %994 = vperm.xlu0 %3932, %v4630_v28  }
  0x8b   : > { %798 = vperm.xlu1 %3930, %v4630_v28   ;;  %1002 = vperm.xlu0 %3932, %v4635_v29  }
  0x8f   : > { %806 = vperm.xlu1 %3930, %v4635_v29   ;;  %1010 = vperm.xlu0 %3932, %v4640_v30  }
  0x93   : > { %814 = vperm.xlu1 %3930, %v4640_v30   ;;  %1018 = vperm.xlu0 %3932, %v4645_v31  }
  0x97   : > { %822 = vperm.xlu1 %3930, %v4645_v31   ;;  %1026 = vperm.xlu0 %3932, %v4650_v32  }
  0x9b   : > { %830 = vperm.xlu1 %3930, %v4650_v32   ;;  %1034 = vperm.xlu0 %3932, %v4655_v33  }
  0x9f   : > { %838 = vperm.xlu1 %3930, %v4655_v33   ;;  %1042 = vperm.xlu0 %3932, %v4660_v34  }
  0xa3   : > { %846 = vperm.xlu1 %3930, %v4660_v34   ;;  %3933 = vset.pattern.permute.xlu0 %v6537_v35 }
  0xa4   : > { %1118 = vperm.xlu0 %3933, %v4510_v3  }
  0xa5   : > { %v4667_v36 = vpop.permute.xlu1 %541  ;;  %v4669_v37 = vpop.permute.xlu0 %726 }
  0xa6   : > { %6548 = vst [vmem:[#allocation5_spill] sm:$0xff] %v4667_v36  ;;  %v2102_v36 = vld [vmem:[%s5062_s26 + $0x28] sm:$0xff] }
  0xa7   : > { %3931 = vset.pattern.permute.xlu1 %v4385_v20 }
  0xa8   : > { %922 = vperm.xlu1 %3931, %v4510_v3   ;;  %1130 = vperm.xlu0 %3933, %v4515_v4  }
  0xa9   : > { %v4673_v38 = vpop.permute.xlu1 %546  ;;  %v4675_v39 = vpop.permute.xlu0 %738 }
  0xaa   : > { %6549 = vst [vmem:[#allocation6_spill] sm:$0xff] %v4673_v38  ;;  %6550 = vst [vmem:[#allocation7_spill] sm:$0xff] %v4675_v39  ;;  %v2127_v39 = vld [vmem:[%s5062_s26 + $0xf0] sm:$0xff] }
  0xac   : > { %930 = vperm.xlu1 %3931, %v4507_v2   ;;  %1138 = vperm.xlu0 %3933, %v4520_v5  }
  0xad   : > { %v4679_v40 = vpop.permute.xlu1 %556  ;;  %v4681_v41 = vpop.permute.xlu0 %746 }
  0xae   : > { %6551 = vst [vmem:[#allocation8_spill] sm:$0xff] %v4679_v40  ;;  %6552 = vst [vmem:[#allocation9_spill] sm:$0xff] %v4681_v41 }
  0xb0   : > { %934 = vperm.xlu1 %3931, %v4515_v4   ;;  %1146 = vperm.xlu0 %3933, %v4525_v6  }
  0xb1   : > { %v4685_v42 = vpop.permute.xlu1 %566  ;;  %v4687_v43 = vpop.permute.xlu0 %754 }
  0xb2   : > { %6553 = vst [vmem:[#allocation10_spill] sm:$0xff] %v4685_v42  ;;  %6554 = vst [vmem:[#allocation11_spill] sm:$0xff] %v4687_v43 }
  0xb4   : > { %942 = vperm.xlu1 %3931, %v4520_v5   ;;  %1154 = vperm.xlu0 %3933, %v4530_v7  }
  0xb5   : > { %v4691_v44 = vpop.permute.xlu1 %576  ;;  %v4693_v45 = vpop.permute.xlu0 %762 }
  0xb6   : > { %6555 = vst [vmem:[#allocation12_spill] sm:$0xff] %v4691_v44  ;;  %6556 = vst [vmem:[#allocation13_spill] sm:$0xff] %v4693_v45 }
  0xb8   : > { %950 = vperm.xlu1 %3931, %v4525_v6   ;;  %1162 = vperm.xlu0 %3933, %v4535_v8  }
  0xb9   : > { %v4697_v46 = vpop.permute.xlu1 %586  ;;  %v4699_v47 = vpop.permute.xlu0 %770 }
  0xba   : > { %6557 = vst [vmem:[#allocation14_spill] sm:$0xff] %v4697_v46  ;;  %6558 = vst [vmem:[#allocation15_spill] sm:$0xff] %v4699_v47 }
  0xbc   : > { %958 = vperm.xlu1 %3931, %v4530_v7   ;;  %1170 = vperm.xlu0 %3933, %v4540_v9  }
  0xbd   : > { %v4703_v48 = vpop.permute.xlu1 %596  ;;  %v4705_v49 = vpop.permute.xlu0 %778 }
  0xbe   : > { %6559 = vst [vmem:[#allocation16_spill] sm:$0xff] %v4703_v48  ;;  %6560 = vst [vmem:[#allocation17_spill] sm:$0xff] %v4705_v49 }
  0xc0   : > { %966 = vperm.xlu1 %3931, %v4535_v8   ;;  %1178 = vperm.xlu0 %3933, %v4545_v10  }
  0xc1   : > { %v4709_v50 = vpop.permute.xlu1 %606  ;;  %v4711_v51 = vpop.permute.xlu0 %786 }
  0xc2   : > { %6561 = vst [vmem:[#allocation18_spill] sm:$0xff] %v4709_v50  ;;  %6562 = vst [vmem:[#allocation19_spill] sm:$0xff] %v4711_v51  ;;  %v6538_v51 = vmov 4  }
  0xc4   : > { %974 = vperm.xlu1 %3931, %v4540_v9   ;;  %1186 = vperm.xlu0 %3933, %v4550_v11  }
  0xc5   : > { %v4715_v52 = vpop.permute.xlu1 %616  ;;  %v4717_v53 = vpop.permute.xlu0 %794 }
  0xc8   : > { %982 = vperm.xlu1 %3931, %v4545_v10   ;;  %1194 = vperm.xlu0 %3933, %v4555_v12  }
  0xc9   : > { %v4721_v54 = vpop.permute.xlu1 %626  ;;  %v4723_v55 = vpop.permute.xlu0 %802 }
  0xcc   : > { %990 = vperm.xlu1 %3931, %v4550_v11   ;;  %1202 = vperm.xlu0 %3933, %v4560_v13  }
  0xcd   : > { %v4727_v56 = vpop.permute.xlu1 %636  ;;  %v4729_v57 = vpop.permute.xlu0 %810 }
  0xce   : > { %6563 = vst [vmem:[#allocation20_spill] sm:$0xff] %v4727_v56  ;;  %6564 = vst [vmem:[#allocation21_spill] sm:$0xff] %v4729_v57 }
  0xd0   : > { %998 = vperm.xlu1 %3931, %v4555_v12   ;;  %1210 = vperm.xlu0 %3933, %v4565_v14  }
  0xd1   : > { %v4733_v58 = vpop.permute.xlu1 %646  ;;  %v4735_v59 = vpop.permute.xlu0 %818 }
  0xd2   : > { %6565 = vst [vmem:[#allocation22_spill] sm:$0xff] %v4733_v58  ;;  %6566 = vst [vmem:[#allocation23_spill] sm:$0xff] %v4735_v59  ;;  %v6604_v58 = vmov 4  }
  0xd4   : > { %1006 = vperm.xlu1 %3931, %v4560_v13   ;;  %1218 = vperm.xlu0 %3933, %v4570_v15  }
  0xd5   : > { %v4739_v60 = vpop.permute.xlu1 %656  ;;  %v4741_v61 = vpop.permute.xlu0 %826 }
  0xd6   : > { %6567 = vst [vmem:[#allocation24_spill] sm:$0xff] %v4739_v60  ;;  %6568 = vst [vmem:[#allocation25_spill] sm:$0xff] %v4741_v61 }
  0xd8   : > { %1014 = vperm.xlu1 %3931, %v4565_v14   ;;  %1226 = vperm.xlu0 %3933, %v4575_v16  }
  0xd9   : > { %v4745_v62 = vpop.permute.xlu1 %666  ;;  %v4747_v63 = vpop.permute.xlu0 %834 }
  0xda   : > { %6569 = vst [vmem:[#allocation26_spill] sm:$0xff] %v4745_v62  ;;  %6570 = vst [vmem:[#allocation27_spill] sm:$0xff] %v4747_v63 }
  0xdc   : > { %1022 = vperm.xlu1 %3931, %v4570_v15   ;;  %1234 = vperm.xlu0 %3933, %v4580_v17  }
  0xdd   : > { %v4751_v0 = vpop.permute.xlu1 %676  ;;  %v4753_v20 = vpop.permute.xlu0 %842 }
  0xde   : > { %6571 = vst [vmem:[#allocation28_spill] sm:$0xff] %v4751_v0  ;;  %6572 = vst [vmem:[#allocation29_spill] sm:$0xff] %v4753_v20 }
  0xe0   : > { %1030 = vperm.xlu1 %3931, %v4575_v16   ;;  %1242 = vperm.xlu0 %3933, %v4585_v18  }
  0xe1   : > { %v4757_v1 = vpop.permute.xlu1 %686  ;;  %v4759_v35 = vpop.permute.xlu0 %850 }
  0xe2   : > { %6573 = vst [vmem:[#allocation30_spill] sm:$0xff] %v4757_v1  ;;  %6574 = vst [vmem:[#allocation31_spill] sm:$0xff] %v4759_v35  ;;  %v6577_v35 = vmov 3  }
  0xe4   : > { %1038 = vperm.xlu1 %3931, %v4580_v17   ;;  %3936 = vset.pattern.permute.xlu0 %v6538_v51 }
  0xe5   : > { %1318 = vperm.xlu0 %3936, %v4590_v19  }
  0xe6   : > { %v4764_v50 = vpop.permute.xlu1 %730  ;;  %v4766_v49 = vpop.permute.xlu0 %926 }
  0xe8   : > { %1046 = vperm.xlu1 %3931, %v4585_v18  }
  0xe9   : > { %1330 = vperm.xlu0 %3936, %v4595_v21  }
  0xea   : > { %v4770_v48 = vpop.permute.xlu1 %734  ;;  %v4772_v1 = vpop.permute.xlu0 %938 }
  0xeb   : > { %6575 = vst [vmem:[#allocation32_spill] sm:$0xff] %v4770_v48  ;;  %6576 = vst [vmem:[#allocation33_spill] sm:$0xff] %v4772_v1 }
  0xec   : > { %3934 = vset.pattern.permute.xlu1 %v6577_v35 }
  0xed   : > { %1122 = vperm.xlu1 %3934, %v4590_v19   ;;  %1338 = vperm.xlu0 %3936, %v4600_v22  }
  0xee   : > { %v4777_v51 = vpop.permute.xlu1 %742  ;;  %v4779_v20 = vpop.permute.xlu0 %946 }
  0xef   : > { %6578 = vst [vmem:[#allocation34_spill] sm:$0xff] %v4777_v51  ;;  %6579 = vst [vmem:[#allocation35_spill] sm:$0xff] %v4779_v20 }
  0xf1   : > { %1126 = vperm.xlu1 %3934, %v4507_v2   ;;  %1346 = vperm.xlu0 %3936, %v4605_v23  }
  0xf2   : > { %v4783_v0 = vpop.permute.xlu1 %750  ;;  %v4785_v47 = vpop.permute.xlu0 %954 }
  0xf3   : > { %6580 = vst [vmem:[#allocation36_spill] sm:$0xff] %v4783_v0  ;;  %6581 = vst [vmem:[#allocation37_spill] sm:$0xff] %v4785_v47 }
  0xf5   : > { %1134 = vperm.xlu1 %3934, %v4595_v21   ;;  %1354 = vperm.xlu0 %3936, %v4610_v24  }
  0xf6   : > { %v4789_v35 = vpop.permute.xlu1 %758  ;;  %v4791_v46 = vpop.permute.xlu0 %962 }
  0xf7   : > { %6582 = vst [vmem:[#allocation38_spill] sm:$0xff] %v4789_v35  ;;  %6583 = vst [vmem:[#allocation39_spill] sm:$0xff] %v4791_v46 }
  0xf9   : > { %1142 = vperm.xlu1 %3934, %v4600_v22   ;;  %1362 = vperm.xlu0 %3936, %v4615_v25  }
  0xfa   : > { %v4795_v63 = vpop.permute.xlu1 %766  ;;  %v4797_v62 = vpop.permute.xlu0 %970 }
  0xfb   : > { %6584 = vst [vmem:[#allocation40_spill] sm:$0xff] %v4795_v63  ;;  %6585 = vst [vmem:[#allocation41_spill] sm:$0xff] %v4797_v62 }
  0xfd   : > { %1150 = vperm.xlu1 %3934, %v4605_v23   ;;  %1370 = vperm.xlu0 %3936, %v4620_v26  }
  0xfe   : > { %v4801_v45 = vpop.permute.xlu1 %774  ;;  %v4803_v44 = vpop.permute.xlu0 %978 }
  0xff   : > { %6586 = vst [vmem:[#allocation42_spill] sm:$0xff] %v4801_v45  ;;  %6587 = vst [vmem:[#allocation43_spill] sm:$0xff] %v4803_v44 }
 0x101   : > { %1158 = vperm.xlu1 %3934, %v4610_v24   ;;  %1378 = vperm.xlu0 %3936, %v4625_v27  }
 0x102   : > { %v4807_v46 = vpop.permute.xlu1 %782  ;;  %v4809_v47 = vpop.permute.xlu0 %986 }
 0x103   : > { %6588 = vst [vmem:[#allocation44_spill] sm:$0xff] %v4807_v46 }
 0x105   : > { %1166 = vperm.xlu1 %3934, %v4615_v25   ;;  %1386 = vperm.xlu0 %3936, %v4630_v28  }
 0x106   : > { %v4813_v63 = vpop.permute.xlu1 %790  ;;  %v4815_v62 = vpop.permute.xlu0 %994 }
 0x109   : > { %1174 = vperm.xlu1 %3934, %v4620_v26   ;;  %1390 = vperm.xlu0 %3936, %v4555_v12  }
 0x10a   : > { %v4819_v44 = vpop.permute.xlu1 %798  ;;  %v4821_v45 = vpop.permute.xlu0 %1002 }
 0x10b   : > { %6589 = vst [vmem:[#allocation45_spill] sm:$0xff] %v4821_v45 }
 0x10d   : > { %1182 = vperm.xlu1 %3934, %v4625_v27   ;;  %1398 = vperm.xlu0 %3936, %v4560_v13  }
 0x10e   : > { %v4825_v46 = vpop.permute.xlu1 %806  ;;  %v4827_v35 = vpop.permute.xlu0 %1010 }
 0x10f   : > { %6590 = vst [vmem:[#allocation46_spill] sm:$0xff] %v4825_v46  ;;  %6591 = vst [vmem:[#allocation47_spill] sm:$0xff] %v4827_v35 }
 0x111   : > { %1190 = vperm.xlu1 %3934, %v4630_v28   ;;  %1406 = vperm.xlu0 %3936, %v4565_v14  }
 0x112   : > { %v4831_v61 = vpop.permute.xlu1 %814  ;;  %v4833_v60 = vpop.permute.xlu0 %1018 }
 0x113   : > { %6592 = vst [vmem:[#allocation48_spill] sm:$0xff] %v4831_v61  ;;  %6593 = vst [vmem:[#allocation49_spill] sm:$0xff] %v4833_v60 }
 0x115   : > { %1198 = vperm.xlu1 %3934, %v4635_v29   ;;  %1414 = vperm.xlu0 %3936, %v4570_v15  }
 0x116   : > { %v4837_v43 = vpop.permute.xlu1 %822  ;;  %v4839_v42 = vpop.permute.xlu0 %1026 }
 0x117   : > { %6594 = vst [vmem:[#allocation50_spill] sm:$0xff] %v4837_v43  ;;  %6595 = vst [vmem:[#allocation51_spill] sm:$0xff] %v4839_v42 }
 0x119   : > { %1206 = vperm.xlu1 %3934, %v4640_v30   ;;  %1422 = vperm.xlu0 %3936, %v4575_v16  }
 0x11a   : > { %v4843_v20 = vpop.permute.xlu1 %830  ;;  %v4845_v0 = vpop.permute.xlu0 %1034 }
 0x11b   : > { %6596 = vst [vmem:[#allocation52_spill] sm:$0xff] %v4843_v20  ;;  %6597 = vst [vmem:[#allocation53_spill] sm:$0xff] %v4845_v0  ;;  %v6540_v20 = vmov 5  }
 0x11d   : > { %1214 = vperm.xlu1 %3934, %v4645_v31   ;;  %1430 = vperm.xlu0 %3936, %v4580_v17  }
 0x11e   : > { %v4849_v60 = vpop.permute.xlu1 %838  ;;  %v4851_v59 = vpop.permute.xlu0 %1042 }
 0x11f   : > { %6598 = vst [vmem:[#allocation54_spill] sm:$0xff] %v4849_v60  ;;  %6599 = vst [vmem:[#allocation55_spill] sm:$0xff] %v4851_v59 }
 0x121   : > { %1222 = vperm.xlu1 %3934, %v4650_v32   ;;  %1438 = vperm.xlu0 %3936, %v4585_v18  }
 0x122   : > { %v4855_v43 = vpop.permute.xlu1 %846 }
 0x123   : > { %6600 = vst [vmem:[#allocation56_spill] sm:$0xff] %v4855_v43  ;;  %v4857_v42 = vpop.permute.xlu0 %1118 }
 0x125   : > { %1230 = vperm.xlu1 %3934, %v4655_v33   ;;  %3984 = vset.pattern.permute.xlu0 %v6540_v20 }
 0x126   : > { %1578 = vperm.xlu0 %3984, %v4550_v11  }
 0x127   : > { %v4862_v0 = vpop.permute.xlu1 %922  ;;  %v4864_v60 = vpop.permute.xlu0 %1130 }
 0x128   : > { %6601 = vst [vmem:[#allocation57_spill] sm:$0xff] %v4864_v60  ;;  %v2105_v60 = vld [vmem:[%s5062_s26 + $0x40] sm:$0xff] }
 0x129   : > { %1238 = vperm.xlu1 %3934, %v4660_v34  }
 0x12a   : > { %1586 = vperm.xlu0 %3984, %v4555_v12  }
 0x12b   : > { %v4868_v59 = vpop.permute.xlu1 %930  ;;  %v4870_v43 = vpop.permute.xlu0 %1138 }
 0x12c   : > { %6602 = vst [vmem:[#allocation58_spill] sm:$0xff] %v4868_v59  ;;  %6603 = vst [vmem:[#allocation59_spill] sm:$0xff] %v4870_v43 }
 0x12d   : > { %3935 = vset.pattern.permute.xlu1 %v6604_v58 }
 0x12e   : > { %1314 = vperm.xlu1 %3935, %v4510_v3   ;;  %1518 = vperm.xlu0 %3984, %v4507_v2  }
 0x12f   : > { %v4875_v20 = vpop.permute.xlu1 %934  ;;  %v4877_v35 = vpop.permute.xlu0 %1146 }
 0x130   : > { %6605 = vst [vmem:[#allocation60_spill] sm:$0xff] %v4875_v20  ;;  %6606 = vst [vmem:[#allocation61_spill] sm:$0xff] %v4877_v35 }
 0x132   : > { %1322 = vperm.xlu1 %3935, %v4507_v2   ;;  %1594 = vperm.xlu0 %3984, %v4560_v13  }
 0x133   : > { %v4881_v61 = vpop.permute.xlu1 %942  ;;  %v4883_v41 = vpop.permute.xlu0 %1154 }
 0x134   : > { %6607 = vst [vmem:[#allocation62_spill] sm:$0xff] %v4881_v61  ;;  %6608 = vst [vmem:[#allocation63_spill] sm:$0xff] %v4883_v41 }
 0x136   : > { %1326 = vperm.xlu1 %3935, %v4515_v4   ;;  %1530 = vperm.xlu0 %3984, %v4520_v5  }
 0x137   : > { %v4887_v43 = vpop.permute.xlu1 %950  ;;  %v4889_v40 = vpop.permute.xlu0 %1162 }
 0x138   : > { %6609 = vst [vmem:[#allocation64_spill] sm:$0xff] %v4887_v43  ;;  %6610 = vst [vmem:[#allocation65_spill] sm:$0xff] %v4889_v40 }
 0x13a   : > { %1334 = vperm.xlu1 %3935, %v4520_v5   ;;  %1602 = vperm.xlu0 %3984, %v4565_v14  }
 0x13b   : > { %v4893_v35 = vpop.permute.xlu1 %958  ;;  %v4895_v1 = vpop.permute.xlu0 %1170 }
 0x13c   : > { %6611 = vst [vmem:[#allocation66_spill] sm:$0xff] %v4893_v35  ;;  %6612 = vst [vmem:[#allocation67_spill] sm:$0xff] %v4895_v1 }
 0x13e   : > { %1342 = vperm.xlu1 %3935, %v4525_v6   ;;  %1538 = vperm.xlu0 %3984, %v4525_v6  }
 0x13f   : > { %v4899_v41 = vpop.permute.xlu1 %966  ;;  %v4901_v61 = vpop.permute.xlu0 %1178 }
 0x140   : > { %6613 = vst [vmem:[#allocation68_spill] sm:$0xff] %v4899_v41  ;;  %6614 = vst [vmem:[#allocation69_spill] sm:$0xff] %v4901_v61 }
 0x142   : > { %1350 = vperm.xlu1 %3935, %v4530_v7   ;;  %1610 = vperm.xlu0 %3984, %v4570_v15  }
 0x143   : > { %v4905_v40 = vpop.permute.xlu1 %974  ;;  %v4907_v43 = vpop.permute.xlu0 %1186 }
 0x144   : > { %6615 = vst [vmem:[#allocation70_spill] sm:$0xff] %v4905_v40 }
 0x146   : > { %1358 = vperm.xlu1 %3935, %v4535_v8   ;;  %1546 = vperm.xlu0 %3984, %v4530_v7  }
 0x147   : > { %v4911_v1 = vpop.permute.xlu1 %982  ;;  %v4913_v35 = vpop.permute.xlu0 %1194 }
 0x148   : > { %6616 = vst [vmem:[#allocation71_spill] sm:$0xff] %v4911_v1  ;;  %6617 = vst [vmem:[#allocation72_spill] sm:$0xff] %v4913_v35  ;;  %v2601_v35 = vld [vmem:[%s5226_s14 + $0x40] sm:$0xff] }
 0x14a   : > { %1366 = vperm.xlu1 %3935, %v4540_v9   ;;  %1618 = vperm.xlu0 %3984, %v4575_v16   ;;  %v6622_v16 = vmov 5  }
 0x14b   : > { %v4917_v61 = vpop.permute.xlu1 %990  ;;  %v4919_v41 = vpop.permute.xlu0 %1202 }
 0x14c   : > { %6618 = vst [vmem:[#allocation73_spill] sm:$0xff] %v4919_v41 }
 0x14e   : > { %1374 = vperm.xlu1 %3935, %v4545_v10   ;;  %1554 = vperm.xlu0 %3984, %v4535_v8  }
 0x14f   : > { %v4923_v15 = vpop.permute.xlu1 %998  ;;  %v4925_v40 = vpop.permute.xlu0 %1210 }
 0x150   : > { %6619 = vst [vmem:[#allocation74_spill] sm:$0xff] %v4925_v40 }
 0x152   : > { %1382 = vperm.xlu1 %3935, %v4550_v11   ;;  %1626 = vperm.xlu0 %3984, %v4580_v17  }
 0x153   : > { %v4929_v7 = vpop.permute.xlu1 %1006  ;;  %v4931_v1 = vpop.permute.xlu0 %1218 }
 0x154   : > { %6620 = vst [vmem:[#allocation75_spill] sm:$0xff] %v4929_v7  ;;  %6621 = vst [vmem:[#allocation76_spill] sm:$0xff] %v4931_v1  ;;  %v6542_v7 = vmov 6  }
 0x156   : > { %3937 = vset.pattern.permute.xlu1 %v6622_v16  ;;  %1562 = vperm.xlu0 %3984, %v4540_v9  }
 0x157   : > { %1574 = vperm.xlu1 %3937, %v4625_v27   ;;  %v4936_v41 = vpop.permute.xlu1 %1014  ;;  %v4938_v8 = vpop.permute.xlu0 %1226 }
 0x158   : > { %6623 = vst [vmem:[#allocation77_spill] sm:$0xff] %v4936_v41  ;;  %6624 = vst [vmem:[#allocation78_spill] sm:$0xff] %v4938_v8 }
 0x15a   : > { %1634 = vperm.xlu0 %3984, %v4585_v18  }
 0x15b   : > { %1510 = vperm.xlu1 %3937, %v4510_v3   ;;  %v4942_v40 = vpop.permute.xlu1 %1022  ;;  %v4944_v17 = vpop.permute.xlu0 %1234 }
 0x15c   : > { %6625 = vst [vmem:[#allocation79_spill] sm:$0xff] %v4942_v40  ;;  %6626 = vst [vmem:[#allocation80_spill] sm:$0xff] %v4944_v17 }
 0x15e   : > { %1570 = vperm.xlu0 %3984, %v4545_v10  }
 0x15f   : > { %1514 = vperm.xlu1 %3937, %v4590_v19   ;;  %v4948_v1 = vpop.permute.xlu1 %1030  ;;  %v4950_v9 = vpop.permute.xlu0 %1242 }
 0x160   : > { %6627 = vst [vmem:[#allocation81_spill] sm:$0xff] %v4948_v1  ;;  %6628 = vst [vmem:[#allocation82_spill] sm:$0xff] %v4950_v9 }
 0x162   : > { %3990 = vset.pattern.permute.xlu0 %v6542_v7 }
 0x163   : > { %3938 = vset.pattern.permute.xlu1 %v6542_v7  ;;  %v4954_v8 = vpop.permute.xlu1 %1038  ;;  %1706 = vperm.xlu0 %3990, %v4510_v3  }
 0x164   : > { %6629 = vst [vmem:[#allocation83_spill] sm:$0xff] %v4954_v8  ;;  %1770 = vperm.xlu1 %3938, %v4625_v27   ;;  %v4958_v17 = vpop.permute.xlu0 %1318 }
 0x167   : > { %v4960_v10 = vpop.permute.xlu1 %1046  ;;  %1714 = vperm.xlu0 %3990, %v4507_v2  }
 0x168   : > { %6630 = vst [vmem:[#allocation84_spill] sm:$0xff] %v4960_v10  ;;  %1774 = vperm.xlu1 %3938, %v4550_v11   ;;  %v4964_v9 = vpop.permute.xlu0 %1330 }
 0x169   : > { %6631 = vst [vmem:[#allocation85_spill] sm:$0xff] %v4964_v9  ;;  %v6544_v9 = vmov 7  }
 0x16b   : > { %1722 = vperm.xlu0 %3990, %v4595_v21  }
 0x16c   : > { %1710 = vperm.xlu1 %3938, %v4590_v19   ;;  %v4968_v7 = vpop.permute.xlu1 %1122  ;;  %v4970_v8 = vpop.permute.xlu0 %1338 }
 0x16d   : > { %6632 = vst [vmem:[#allocation86_spill] sm:$0xff] %v4970_v8 }
 0x16f   : > { %1730 = vperm.xlu0 %3990, %v4600_v22  }
 0x170   : > { %3939 = vset.pattern.permute.xlu1 %v6622_v16  ;;  %v4974_v1 = vpop.permute.xlu1 %1126  ;;  %v4976_v10 = vpop.permute.xlu0 %1346 }
 0x171   : > { %6633 = vst [vmem:[#allocation87_spill] sm:$0xff] %v4974_v1  ;;  %6634 = vst [vmem:[#allocation88_spill] sm:$0xff] %v4976_v10  ;;  %1582 = vperm.xlu1 %3939, %v4630_v28   ;;  %v2599_v1 = vld [vmem:[%s5226_s14 + $0x30] sm:$0xff] }
 0x173   : > { %1738 = vperm.xlu0 %3990, %v4605_v23  }
 0x174   : > { %v4980_v40 = vpop.permute.xlu1 %1134  ;;  %v4982_v41 = vpop.permute.xlu0 %1354 }
 0x175   : > { %6635 = vst [vmem:[#allocation89_spill] sm:$0xff] %v4980_v40  ;;  %6636 = vst [vmem:[#allocation90_spill] sm:$0xff] %v4982_v41  ;;  %3940 = vset.pattern.permute.xlu1 %v6544_v9 }
 0x176   : > { %1966 = vperm.xlu1 %3940, %v4625_v27  }
 0x177   : > { %1746 = vperm.xlu0 %3990, %v4610_v24  }
 0x178   : > { %v4987_v8 = vpop.permute.xlu1 %1142  ;;  %v4989_v51 = vpop.permute.xlu0 %1362 }
 0x179   : > { %6637 = vst [vmem:[#allocation91_spill] sm:$0xff] %v4987_v8  ;;  %6638 = vst [vmem:[#allocation92_spill] sm:$0xff] %v4989_v51  ;;  %v6642_v8 = vmov 7  }
 0x17a   : > { %1970 = vperm.xlu1 %3940, %v4550_v11  }
 0x17b   : > { %1754 = vperm.xlu0 %3990, %v4615_v25  }
 0x17c   : > { %v4993_v10 = vpop.permute.xlu1 %1150  ;;  %v4995_v40 = vpop.permute.xlu0 %1370 }
 0x17d   : > { %6639 = vst [vmem:[#allocation93_spill] sm:$0xff] %v4993_v10  ;;  %6640 = vst [vmem:[#allocation94_spill] sm:$0xff] %v4995_v40  ;;  %v6646_v10 = vmov 0  }
 0x17e   : > { %3941 = vset.pattern.permute.xlu1 %v6622_v16 }
 0x17f   : > { %1522 = vperm.xlu1 %3941, %v4515_v4   ;;  %1830 = vperm.xlu0 %3990, %v4585_v18  }
 0x180   : > { %v5000_v9 = vpop.permute.xlu1 %1158  ;;  %v5002_v41 = vpop.permute.xlu0 %1378 }
 0x181   : > { %6641 = vst [vmem:[#allocation95_spill] sm:$0xff] %v5000_v9 }
 0x183   : > { %3942 = vset.pattern.permute.xlu1 %v6642_v8  ;;  %3994 = vset.pattern.permute.xlu0 %v6642_v8 }
 0x184   : > { %1906 = vperm.xlu1 %3942, %v4590_v19   ;;  %v5007_v11 = vpop.permute.xlu1 %1166  ;;  %1902 = vperm.xlu0 %3994, %v4510_v3   ;;  %v5010_v40 = vpop.permute.xlu0 %1386 }
 0x185   : > { %6643 = vst [vmem:[#allocation96_spill] sm:$0xff] %v5007_v11  ;;  %v6648_v11 = vmov 6  }
 0x188   : > { %3943 = vset.pattern.permute.xlu1 %v6604_v58  ;;  %v5013_v51 = vpop.permute.xlu1 %1174  ;;  %2022 = vperm.xlu0 %3994, %v4660_v34   ;;  %v5016_v18 = vpop.permute.xlu0 %1390 }
 0x189   : > { %6644 = vst [vmem:[#allocation97_spill] sm:$0xff] %v5013_v51  ;;  %6645 = vst [vmem:[#allocation98_spill] sm:$0xff] %v5016_v18  ;;  %1394 = vperm.xlu1 %3943, %v4635_v29  }
 0x18c   : > { %v5019_v9 = vpop.permute.xlu1 %1182  ;;  %3995 = vset.pattern.permute.xlu0 %v6646_v10  ;;  %v5022_v57 = vpop.permute.xlu0 %1398 }
 0x18d   : > { %6647 = vst [vmem:[#allocation99_spill] sm:$0xff] %v5022_v57  ;;  %3944 = vset.pattern.permute.xlu1 %v6648_v11  ;;  %531 = vperm.xlu0 %3995, %v4510_v3  }
 0x18e   : > { %1778 = vperm.xlu1 %3944, %v4630_v28  }
 0x190   : > { %v5027_v56 = vpop.permute.xlu1 %1190  ;;  %v5029_v51 = vpop.permute.xlu0 %1406 }
 0x191   : > { %6649 = vst [vmem:[#allocation100_spill] sm:$0xff] %v5029_v51  ;;  %536 = vperm.xlu0 %3995, %v4590_v19  }
 0x192   : > { %1782 = vperm.xlu1 %3944, %v4555_v12  }
 0x194   : > { %v5033_v45 = vpop.permute.xlu1 %1198  ;;  %v5035_v46 = vpop.permute.xlu0 %1414 }
 0x195   : > { %6650 = vst [vmem:[#allocation101_spill] sm:$0xff] %v5033_v45  ;;  %6651 = vst [vmem:[#allocation102_spill] sm:$0xff] %v5035_v46  ;;  %551 = vperm.xlu0 %3995, %v4595_v21   ;;  %v2101_v45 = vld [vmem:[%s5062_s26 + $0x20] sm:$0xff] }
 0x196   : > { %1718 = vperm.xlu1 %3944, %v4515_v4  }
 0x198   : > { %v5039_v3 = vpop.permute.xlu1 %1206  ;;  %v5041_v57 = vpop.permute.xlu0 %1422 }
 0x199   : > { %6652 = vst [vmem:[#allocation103_spill] sm:$0xff] %v5039_v3  ;;  %6653 = vst [vmem:[#allocation104_spill] sm:$0xff] %v5041_v57  ;;  %561 = vperm.xlu0 %3995, %v4600_v22  }
 0x19a   : > { %3945 = vset.pattern.permute.xlu1 %v6622_v16 }
 0x19b   : > { %1590 = vperm.xlu1 %3945, %v4635_v29  }
 0x19c   : > { %v5046_v19 = vpop.permute.xlu1 %1214  ;;  %v5048_v51 = vpop.permute.xlu0 %1430 }
 0x19d   : > { %6654 = vst [vmem:[#allocation105_spill] sm:$0xff] %v5046_v19  ;;  %6655 = vst [vmem:[#allocation106_spill] sm:$0xff] %v5048_v51  ;;  %571 = vperm.xlu0 %3995, %v4605_v23   ;;  %v2114_v19 = vld [vmem:[%s5062_s26 + $0x88] sm:$0xff] }
 0x19f   : > { %3946 = vset.pattern.permute.xlu1 %v6642_v8 }
 0x1a0   : > { %1974 = vperm.xlu1 %3946, %v4630_v28   ;;  %v5053_v46 = vpop.permute.xlu1 %1222  ;;  %v5055_v3 = vpop.permute.xlu0 %1438 }
 0x1a1   : > { %6656 = vst [vmem:[#allocation107_spill] sm:$0xff] %v5053_v46  ;;  %6657 = vst [vmem:[#allocation108_spill] sm:$0xff] %v5055_v3  ;;  %581 = vperm.xlu0 %3995, %v4610_v24  }
 0x1a4   : > { %1978 = vperm.xlu1 %3946, %v4555_v12   ;;  %v5065_v51 = vpop.permute.xlu1 %1230 }
 0x1a5   : > { %6658 = vst [vmem:[#allocation109_spill] sm:$0xff] %v5065_v51  ;;  %591 = vperm.xlu0 %3995, %v4615_v25   ;;  %v5068_v57 = vpop.permute.xlu0 %1578 }
 0x1a8   : > { %3947 = vset.pattern.permute.xlu1 %v6646_v10  ;;  %v5072_v3 = vpop.permute.xlu1 %1238 }
 0x1a9   : > { %6659 = vst [vmem:[#allocation110_spill] sm:$0xff] %v5072_v3  ;;  %2216 = vperm.xlu1 %3947, %v2114_v19   ;;  %601 = vperm.xlu0 %3995, %v4620_v26   ;;  %v5075_v24 = vpop.permute.xlu0 %1586 }
 0x1aa   : > { %6660 = vst [vmem:[#allocation111_spill] sm:$0xff] %v5075_v24 }
 0x1ad   : > { %3948 = vset.pattern.permute.xlu1 %v6622_v16  ;;  %v5078_v46 = vpop.permute.xlu1 %1314  ;;  %611 = vperm.xlu0 %3995, %v4625_v27   ;;  %v5081_v12 = vpop.permute.xlu0 %1518 }
 0x1ae   : > { %6661 = vst [vmem:[#allocation112_spill] sm:$0xff] %v5081_v12  ;;  %1526 = vperm.xlu1 %3948, %v4595_v21  }
 0x1b1   : > { %v5084_v25 = vpop.permute.xlu1 %1322  ;;  %621 = vperm.xlu0 %3995, %v4630_v28   ;;  %v5087_v19 = vpop.permute.xlu0 %1594  ;;  %v2098_v28 = vld [vmem:[%s5062_s26 + $0x8] sm:$0xff] }
 0x1b2   : > { %6662 = vst [vmem:[#allocation113_spill] sm:$0xff] %v5084_v25  ;;  %6663 = vst [vmem:[#allocation114_spill] sm:$0xff] %v5087_v19  ;;  %3949 = vset.pattern.permute.xlu1 %v6642_v8  ;;  %v2595_v25 = vld [vmem:[%s5226_s14 + $0x10] sm:$0xff] }
 0x1b3   : > { %1910 = vperm.xlu1 %3949, %v4507_v2  }
 0x1b5   : > { %v5091_v26 = vpop.permute.xlu1 %1326  ;;  %631 = vperm.xlu0 %3995, %v4635_v29   ;;  %v5094_v3 = vpop.permute.xlu0 %1530 }
 0x1b6   : > { %6664 = vst [vmem:[#allocation115_spill] sm:$0xff] %v5091_v26  ;;  %6665 = vst [vmem:[#allocation116_spill] sm:$0xff] %v5094_v3 }
 0x1b7   : > { %1914 = vperm.xlu1 %3949, %v4515_v4  }
 0x1b9   : > { %v5097_v27 = vpop.permute.xlu1 %1334  ;;  %641 = vperm.xlu0 %3995, %v4640_v30   ;;  %v5100_v51 = vpop.permute.xlu0 %1602 }
 0x1ba   : > { %6666 = vst [vmem:[#allocation117_spill] sm:$0xff] %v5097_v27  ;;  %6667 = vst [vmem:[#allocation118_spill] sm:$0xff] %v5100_v51  ;;  %v2116_v27 = vld [vmem:[%s5062_s26 + $0x98] sm:$0xff] }
 0x1bb   : > { %3950 = vset.pattern.permute.xlu1 %v6646_v10 }
 0x1bc   : > { %2136 = vperm.xlu1 %3950, %v2098_v28  }
 0x1bd   : > { %v5104_v19 = vpop.permute.xlu1 %1342  ;;  %651 = vperm.xlu0 %3995, %v4645_v31   ;;  %v5107_v2 = vpop.permute.xlu0 %1538 }
 0x1be   : > { %6668 = vst [vmem:[#allocation119_spill] sm:$0xff] %v5104_v19  ;;  %6669 = vst [vmem:[#allocation120_spill] sm:$0xff] %v5107_v2 }
 0x1c0   : > { %3951 = vset.pattern.permute.xlu1 %v6604_v58 }
 0x1c1   : > { %1402 = vperm.xlu1 %3951, %v4640_v30   ;;  %v5111_v4 = vpop.permute.xlu1 %1350  ;;  %661 = vperm.xlu0 %3995, %v4650_v32   ;;  %v5114_v51 = vpop.permute.xlu0 %1610 }
 0x1c2   : > { %6670 = vst [vmem:[#allocation121_spill] sm:$0xff] %v5111_v4  ;;  %6671 = vst [vmem:[#allocation122_spill] sm:$0xff] %v5114_v51  ;;  %v2113_v51 = vld [vmem:[%s5062_s26 + $0x80] sm:$0xff] }
 0x1c5   : > { %3952 = vset.pattern.permute.xlu1 %v6648_v11  ;;  %v5117_v28 = vpop.permute.xlu1 %1358  ;;  %671 = vperm.xlu0 %3995, %v4655_v33   ;;  %v5120_v19 = vpop.permute.xlu0 %1546  ;;  %v2097_v33 = vld [vmem:[%s5062_s26] sm:$0xff] }
 0x1c6   : > { %6672 = vst [vmem:[#allocation123_spill] sm:$0xff] %v5117_v28  ;;  %6673 = vst [vmem:[#allocation124_spill] sm:$0xff] %v5120_v19  ;;  %1786 = vperm.xlu1 %3952, %v4635_v29  }
 0x1c9   : > { %v5123_v2 = vpop.permute.xlu1 %1366  ;;  %681 = vperm.xlu0 %3995, %v4660_v34   ;;  %v5126_v4 = vpop.permute.xlu0 %1618  ;;  %v2115_v34 = vld [vmem:[%s5062_s26 + $0x90] sm:$0xff] }
 0x1ca   : > { %6674 = vst [vmem:[#allocation125_spill] sm:$0xff] %v5123_v2  ;;  %6675 = vst [vmem:[#allocation126_spill] sm:$0xff] %v5126_v4  ;;  %1790 = vperm.xlu1 %3952, %v4560_v13   ;;  %v2117_v4 = vld [vmem:[%s5062_s26 + $0xa0] sm:$0xff] }
 0x1cd   : > { %v5130_v3 = vpop.permute.xlu1 %1374  ;;  %2211 = vperm.xlu0 %3995, %v2113_v51   ;;  %v5132_v28 = vpop.permute.xlu0 %1554 }
 0x1ce   : > { %6676 = vst [vmem:[#allocation127_spill] sm:$0xff] %v5130_v3  ;;  %6677 = vst [vmem:[#allocation128_spill] sm:$0xff] %v5132_v28  ;;  %1726 = vperm.xlu1 %3952, %v4520_v5   ;;  %v2099_v28 = vld [vmem:[%s5062_s26 + $0x10] sm:$0xff] }
 0x1d1   : > { %v5136_v19 = vpop.permute.xlu1 %1382  ;;  %2131 = vperm.xlu0 %3995, %v2097_v33   ;;  %v5138_v2 = vpop.permute.xlu0 %1626 }
 0x1d2   : > { %6678 = vst [vmem:[#allocation129_spill] sm:$0xff] %v5138_v2  ;;  %3953 = vset.pattern.permute.xlu1 %v6622_v16 }
 0x1d3   : > { %1598 = vperm.xlu1 %3953, %v4640_v30  }
 0x1d5   : > { %2221 = vperm.xlu0 %3995, %v2115_v34   ;;  %v5143_v51 = vpop.permute.xlu0 %1562 }
 0x1d6   : > { %6679 = vst [vmem:[#allocation130_spill] sm:$0xff] %v5143_v51  ;;  %v5145_v3 = vpop.permute.xlu1 %1574 }
 0x1d7   : > { %3954 = vset.pattern.permute.xlu1 %v6642_v8 }
 0x1d8   : > { %1982 = vperm.xlu1 %3954, %v4635_v29  }
 0x1d9   : > { %2141 = vperm.xlu0 %3995, %v2099_v28   ;;  %v5150_v33 = vpop.permute.xlu0 %1634  ;;  %v2119_v28 = vld [vmem:[%s5062_s26 + $0xb0] sm:$0xff] }
 0x1da   : > { %6680 = vst [vmem:[#allocation131_spill] sm:$0xff] %v5150_v33  ;;  %v5152_v2 = vpop.permute.xlu1 %1510 }
 0x1dc   : > { %1986 = vperm.xlu1 %3954, %v4560_v13  }
 0x1dd   : > { %2231 = vperm.xlu0 %3995, %v2117_v4   ;;  %v5156_v34 = vpop.permute.xlu0 %1570  ;;  %v2103_v4 = vld [vmem:[%s5062_s26 + $0x30] sm:$0xff] }
 0x1de   : > { %6681 = vst [vmem:[#allocation132_spill] sm:$0xff] %v5156_v34  ;;  %v5158_v51 = vpop.permute.xlu1 %1514 }
 0x1e0   : > { %3955 = vset.pattern.permute.xlu1 %v6646_v10 }
 0x1e1   : > { %2226 = vperm.xlu1 %3955, %v2116_v27   ;;  %2151 = vperm.xlu0 %3995, %v2101_v45   ;;  %v2121_v27 = vld [vmem:[%s5062_s26 + $0xc0] sm:$0xff] }
 0x1e2   : > { %v5163_v29 = vpop.permute.xlu0 %1706 }
 0x1e3   : > { %v5166_v33 = vpop.permute.xlu1 %1770 }
 0x1e5   : > { %3956 = vset.pattern.permute.xlu1 %v6622_v16  ;;  %2241 = vperm.xlu0 %3995, %v2119_v28  }
 0x1e6   : > { %1534 = vperm.xlu1 %3956, %v4600_v22   ;;  %v5170_v13 = vpop.permute.xlu0 %1714 }
 0x1e7   : > { %6682 = vst [vmem:[#allocation133_spill] sm:$0xff] %v5170_v13  ;;  %v5173_v34 = vpop.permute.xlu1 %1774 }
 0x1e9   : > { %2161 = vperm.xlu0 %3995, %v2103_v4   ;;  %v2100_v4 = vld [vmem:[%s5062_s26 + $0x18] sm:$0xff] }
 0x1ea   : > { %3957 = vset.pattern.permute.xlu1 %v6642_v8  ;;  %v5176_v45 = vpop.permute.xlu0 %1722 }
 0x1eb   : > { %6683 = vst [vmem:[#allocation134_spill] sm:$0xff] %v5176_v45  ;;  %1918 = vperm.xlu1 %3957, %v4595_v21   ;;  %v5180_v26 = vpop.permute.xlu1 %1710  ;;  %v2123_v45 = vld [vmem:[%s5062_s26 + $0xd0] sm:$0xff] }
 0x1ed   : > { %2251 = vperm.xlu0 %3995, %v2121_v27  }
 0x1ee   : > { %v5182_v28 = vpop.permute.xlu0 %1730 }
 0x1ef   : > { %6684 = vst [vmem:[#allocation135_spill] sm:$0xff] %v5182_v28  ;;  %1922 = vperm.xlu1 %3957, %v4520_v5   ;;  %v2107_v28 = vld [vmem:[%s5062_s26 + $0x50] sm:$0xff] }
 0x1f0   : > { %v5186_v20 = vpop.permute.xlu1 %1582 }
 0x1f1   : > { %2171 = vperm.xlu0 %3995, %v2105_v60  }
 0x1f2   : > { %v5189_v13 = vpop.permute.xlu0 %1738 }
 0x1f3   : > { %6685 = vst [vmem:[#allocation136_spill] sm:$0xff] %v5189_v13  ;;  %3958 = vset.pattern.permute.xlu1 %v6646_v10  ;;  %v2126_v13 = vld [vmem:[%s5062_s26 + $0xe8] sm:$0xff] }
 0x1f4   : > { %2146 = vperm.xlu1 %3958, %v2100_v4   ;;  %v2109_v4 = vld [vmem:[%s5062_s26 + $0x60] sm:$0xff] }
 0x1f5   : > { %v5193_v21 = vpop.permute.xlu1 %1966  ;;  %2261 = vperm.xlu0 %3995, %v2123_v45  }
 0x1f6   : > { %v5195_v27 = vpop.permute.xlu0 %1746 }
 0x1f7   : > { %6686 = vst [vmem:[#allocation137_spill] sm:$0xff] %v5195_v27 }
 0x1f8   : > { %3959 = vset.pattern.permute.xlu1 %v6604_v58 }
 0x1f9   : > { %1410 = vperm.xlu1 %3959, %v4645_v31   ;;  %v5200_v5 = vpop.permute.xlu1 %1970  ;;  %2181 = vperm.xlu0 %3995, %v2107_v28  }
 0x1fa   : > { %v5202_v60 = vpop.permute.xlu0 %1754 }
 0x1fb   : > { %6687 = vst [vmem:[#allocation138_spill] sm:$0xff] %v5202_v60  ;;  %v2111_v60 = vld [vmem:[%s5062_s26 + $0x70] sm:$0xff] }
 0x1fd   : > { %3960 = vset.pattern.permute.xlu1 %v6648_v11  ;;  %2276 = vperm.xlu0 %3995, %v2126_v13  }
 0x1fe   : > { %1794 = vperm.xlu1 %3960, %v4640_v30   ;;  %v5207_v45 = vpop.permute.xlu1 %1522  ;;  %v5210_v27 = vpop.permute.xlu0 %1830 }
 0x1ff   : > { %6688 = vst [vmem:[#allocation139_spill] sm:$0xff] %v5207_v45  ;;  %6689 = vst [vmem:[#allocation140_spill] sm:$0xff] %v5210_v27  ;;  %v2611_v45 = vld [vmem:[%s5226_s14 + $0x90] sm:$0xff] }
 0x201   : > { %2191 = vperm.xlu0 %3995, %v2109_v4  }
 0x202   : > { %1798 = vperm.xlu1 %3960, %v4565_v14  }
 0x203   : > { %v5214_v28 = vpop.permute.xlu1 %1906  ;;  %v5216_v38 = vpop.permute.xlu0 %1902 }
 0x205   : > { %2281 = vperm.xlu0 %3995, %v2127_v39   ;;  %v2609_v39 = vld [vmem:[%s5226_s14 + $0x80] sm:$0xff] }
 0x206   : > { %1734 = vperm.xlu1 %3960, %v4525_v6  }
 0x207   : > { %v5220_v13 = vpop.permute.xlu0 %2022 }
 0x208   : > { %6690 = vst [vmem:[#allocation141_spill] sm:$0xff] %v5220_v13  ;;  %v5228_v4 = vpop.permute.xlu1 %1394  ;;  %v2593_v13 = vld [vmem:[%s5226_s14] sm:$0xff] }
 0x209   : > { %6691 = vst [vmem:[#allocation142_spill] sm:$0xff] %v5228_v4  ;;  %2201 = vperm.xlu0 %3995, %v2111_v60  }
 0x20a   : > { %3961 = vset.pattern.permute.xlu1 %v6622_v16 }
 0x20b   : > { %1606 = vperm.xlu1 %3961, %v4645_v31  }
 0x20c   : > { %v5233_v6 = vpop.permute.xlu0 %531 }
 0x20d   : > { %v5235_v27 = vpop.permute.xlu1 %1778  ;;  %2707 = vperm.xlu0 %3995, %v2609_v39   ;;  %v2118_v39 = vld [vmem:[%s5062_s26 + $0xa8] sm:$0xff] }
 0x20f   : > { %3962 = vset.pattern.permute.xlu1 %v6642_v8 }
 0x210   : > { %1990 = vperm.xlu1 %3962, %v4640_v30   ;;  %v537_v60 = vpop.permute.xlu0 %536 }
 0x211   : > { %v5240_v4 = vpop.permute.xlu1 %1782  ;;  %2627 = vperm.xlu0 %3995, %v2593_v13  }
 0x212   : > { %6692 = vst [vmem:[#allocation143_spill] sm:$0xff] %v5240_v4  ;;  %v689_v4 = vlaneseq }
 0x214   : > { %1994 = vperm.xlu1 %3962, %v4565_v14   ;;  %v5245_v31 = vpop.permute.xlu0 %551  ;;  %v2613_v14 = vld [vmem:[%s5226_s14 + $0xa0] sm:$0xff] }
 0x215   : > { %6693 = vst [vmem:[#allocation144_spill] sm:$0xff] %v5245_v31  ;;  %v5247_v12 = vpop.permute.xlu1 %1718  ;;  %2717 = vperm.xlu0 %3995, %v2611_v45  }
 0x216   : > { %6694 = vst [vmem:[#allocation145_spill] sm:$0xff] %v5247_v12 }
 0x218   : > { %3963 = vset.pattern.permute.xlu1 %v6646_v10  ;;  %v5254_v30 = vpop.permute.xlu0 %561 }
 0x219   : > { %6695 = vst [vmem:[#allocation146_spill] sm:$0xff] %v5254_v30  ;;  %2236 = vperm.xlu1 %3963, %v2118_v39   ;;  %2637 = vperm.xlu0 %3995, %v2595_v25   ;;  %v5266_v30 = vshrl.u32 %v689_v4, 7  ;;  %v2597_v25 = vld [vmem:[%s5226_s14 + $0x20] sm:$0xff] }
 0x21a   : > { %v5256_v13 = vpop.permute.xlu1 %1590 }
 0x21b   : > { %6696 = vst [vmem:[#allocation147_spill] sm:$0xff] %v5256_v13 }
 0x21c   : > { %v5261_v45 = vpop.permute.xlu0 %571 }
 0x21d   : > { %6697 = vst [vmem:[#allocation148_spill] sm:$0xff] %v5261_v45  ;;  %3964 = vset.pattern.permute.xlu1 %v6622_v16  ;;  %2727 = vperm.xlu0 %3995, %v2613_v14   ;;  %v2615_v14 = vld [vmem:[%s5226_s14 + $0xb0] sm:$0xff]  ;;  %v5284_v45 = vld [vmem:[%s453_s22] sm:$0xff]  ;;  %s493_s22 = scalar_lea.vmem %s6534_s8, %s3600_s18 }
 0x21e   : > { %1542 = vperm.xlu1 %3964, %v4605_v23   ;;  %v691_v23 = vsub.s32 0, %v5266_v30 }
 0x21f   : > { %v5268_v39 = vpop.permute.xlu1 %1974 }
 0x220   : > { %6698 = vst [vmem:[#allocation149_spill] sm:$0xff] %v5268_v39  ;;  %v5271_v13 = vpop.permute.xlu0 %581  ;;  %v5290_v12 = vrot.slane %v5284_v45, %v691_v23 }
 0x221   : > { %6699 = vst [vmem:[#allocation150_spill] sm:$0xff] %v5271_v13  ;;  %2647 = vperm.xlu0 %3995, %v2597_v25   ;;  %v855_v13 = vsub.s32 1, %v5266_v30  ;;  %v4306_v25 = vld [vmem:[%s4504_s23 + $0x38] sm:$0xff] }
 0x222   : > { %3965 = vset.pattern.permute.xlu1 %v6642_v8 }
 0x223   : > { %1926 = vperm.xlu1 %3965, %v4600_v22   ;;  %v5281_v4 = vpop.permute.xlu1 %1978  ;;  %v5300_v59 = vrot.slane %v5284_v45, %v855_v13  ;;  %v710_v13 = vmul.f32 %v5290_v12, %v4715_v52 }
 0x224   : > { %6700 = vst [vmem:[#allocation151_spill] sm:$0xff] %v5281_v4  ;;  %v5286_v31 = vpop.permute.xlu0 %591  ;;  %v1051_v4 = vsub.s32 2, %v5266_v30 }
 0x225   : > { %6701 = vst [vmem:[#allocation152_spill] sm:$0xff] %v5286_v31  ;;  %2737 = vperm.xlu0 %3995, %v2615_v14   ;;  %v694_v31 = vmul.f32 %v5290_v12, %v537_v60  ;;  %v858_v23 = vmul.f32 %v5300_v59, %v4764_v50  ;;  %v2617_v14 = vld [vmem:[%s5226_s14 + $0xc0] sm:$0xff]  ;;  %v1443_v50 = vsub.s32 4, %v5266_v30 }
 0x226   : > { %v5310_v18 = vrot.slane %v5284_v45, %v1051_v4 }
 0x227   : > { %1930 = vperm.xlu1 %3965, %v4306_v25   ;;  %v1247_v25 = vsub.s32 3, %v5266_v30  ;;  %v890_v60 = vadd.f32 %v858_v23, %v694_v31  ;;  %v873_v23 = vmul.f32 %v5300_v59, %v4813_v63  ;;  %v693_v63 = vmul.f32 %v5290_v12, %v5233_v6 }
 0x228   : > { %v5294_v24 = vpop.permute.xlu1 %2216  ;;  %v5296_v22 = vpop.permute.xlu0 %601  ;;  %v1054_v39 = vmul.f32 %v5310_v18, %v4766_v49  ;;  %v1639_v49 = vsub.s32 5, %v5266_v30 }
 0x229   : > { %6702 = vst [vmem:[#allocation153_spill] sm:$0xff] %v5296_v22  ;;  %2657 = vperm.xlu0 %3995, %v2599_v1   ;;  %v874_v1 = vmul.f32 %v5300_v59, %v4717_v53  ;;  %v5326_v52 = vrot.slane %v5284_v45, %v1247_v25 }
 0x22b   : > { %3966 = vset.pattern.permute.xlu1 %v6646_v10  ;;  %v906_v31 = vadd.f32 %v874_v1, %v710_v13  ;;  %v1250_v13 = vmul.f32 %v5326_v52, %v4968_v7  ;;  %v1835_v1 = vsub.s32 6, %v5266_v30 }
 0x22c   : > { %2156 = vperm.xlu1 %3966, %v2102_v36   ;;  %v612_v22 = vpop.permute.xlu0 %611  ;;  %v1070_v36 = vmul.f32 %v5310_v18, %v4917_v61  ;;  %v5334_v61 = vrot.slane %v5284_v45, %v1443_v50 }
 0x22d   : > { %v5316_v48 = vpop.permute.xlu1 %1526  ;;  %2747 = vperm.xlu0 %3995, %v2617_v14   ;;  %v709_v4 = vmul.f32 %v5290_v12, %v612_v22  ;;  %v1086_v14 = vadd.f32 %v1054_v39, %v890_v60  ;;  %v1266_v22 = vmul.f32 %v5326_v52, %v4907_v43  ;;  %v2619_v39 = vld [vmem:[%s5226_s14 + $0xd0] sm:$0xff]  ;;  %v2031_v60 = vsub.s32 7, %v5266_v30 }
 0x22e   : > { %6703 = vst [vmem:[#allocation154_spill] sm:$0xff] %v5316_v48  ;;  %v1102_v48 = vadd.f32 %v1070_v36, %v906_v31  ;;  %v857_v43 = vmul.f32 %v5300_v59, %v4669_v37  ;;  %v1446_v7 = vmul.f32 %v5334_v61, %v4958_v17  ;;  %v1462_v6 = vmul.f32 %v5334_v61, %v5136_v19 }
 0x22f   : > { %v1282_v36 = vadd.f32 %v1250_v13, %v1086_v14  ;;  %v5365_v37 = vrot.slane %v5284_v45, %v1639_v49  ;;  %v5369_v19 = vrot.slane %v5284_v45, %v1835_v1  ;;  %v5372_v14 = vrot.slane %v5284_v45, %v2031_v60 }
 0x230   : > { %3967 = vset.pattern.permute.xlu1 %v6604_v58  ;;  %v622_v53 = vpop.permute.xlu0 %621  ;;  %v889_v31 = vadd.f32 %v857_v43, %v693_v63  ;;  %v1053_v13 = vmul.f32 %v5310_v18, %v4862_v0  ;;  %v875_v45 = vmul.f32 %v5300_v59, %v4819_v44  ;;  %v1249_v1 = vmul.f32 %v5326_v52, %v4857_v42  ;;  %v2621_v43 = vld [vmem:[%s5226_s14 + $0xe0] sm:$0xff] }
 0x231   : > { %1418 = vperm.xlu1 %3967, %v4650_v32   ;;  %2667 = vperm.xlu0 %3995, %v2601_v35   ;;  %v905_v32 = vadd.f32 %v873_v23, %v709_v4  ;;  %v1069_v35 = vmul.f32 %v5310_v18, %v4809_v47  ;;  %v5359_v4 = vld [vmem:[%s4504_s23 + $0xc0] sm:$0xff]  ;;  %v1298_v47 = vadd.f32 %v1266_v22, %v1102_v48  ;;  %v2603_v23 = vld [vmem:[%s5226_s14 + $0x50] sm:$0xff] }
 0x232   : > { %v5338_v25 = vpop.permute.xlu1 %1910  ;;  %v1658_v48 = vmul.f32 %v5365_v37, %v5068_v57  ;;  %v1478_v63 = vadd.f32 %v1446_v7, %v1282_v36  ;;  %v1461_v0 = vmul.f32 %v5334_v61, %v5002_v41  ;;  %v1642_v57 = vmul.f32 %v5365_v37, %v5158_v51  ;;  %v5408_v51 = vld [vmem:[%s4504_s23 + $0x48] sm:$0xff] }
 0x233   : > { %v1101_v17 = vadd.f32 %v1069_v35, %v905_v32  ;;  %v1494_v22 = vadd.f32 %v1462_v6, %v1298_v47  ;;  %v711_v32 = vmul.f32 %v5290_v12, %v622_v53  ;;  %v1854_v44 = vmul.f32 %v5369_v19, %v5173_v34 }
 0x234   : > { %v5349_v50 = vpop.permute.xlu0 %631  ;;  %v1085_v53 = vadd.f32 %v1053_v13, %v889_v31  ;;  %v2050_v7 = vmul.f32 %v5372_v14, %v5200_v5  ;;  %v1674_v36 = vadd.f32 %v1642_v57, %v1478_v63  ;;  %v1071_v47 = vmul.f32 %v5310_v18, %v4815_v62  ;;  %v2605_v5 = vld [vmem:[%s5226_s14 + $0x60] sm:$0xff]  ;;  %v2623_v57 = vld [vmem:[%s5226_s14 + $0xf0] sm:$0xff] }
 0x235   : > { %3968 = vset.pattern.permute.xlu1 %v6648_v11  ;;  %2757 = vperm.xlu0 %3995, %v2619_v39   ;;  %v1265_v39 = vmul.f32 %v5326_v52, %v5019_v9  ;;  %v5390_v9 = vld [vmem:[%s4504_s23 + $0xc8] sm:$0xff]  ;;  %v1690_v35 = vadd.f32 %v1658_v48, %v1494_v22  ;;  %v907_v6 = vadd.f32 %v875_v45, %v711_v32 }
 0x236   : > { %1802 = vperm.xlu1 %3968, %v5359_v4   ;;  %v5362_v30 = vpop.permute.xlu1 %1914  ;;  %v1838_v31 = vmul.f32 %v5369_v19, %v5180_v26  ;;  %v1445_v13 = vmul.f32 %v5334_v61, %v5078_v46  ;;  %v1657_v48 = vmul.f32 %v5365_v37, %v5145_v3  ;;  %v1267_v26 = vmul.f32 %v5326_v52, %v5027_v56 }
 0x237   : > { %v1297_v60 = vadd.f32 %v1265_v39, %v1101_v17  ;;  %v1886_v34 = vadd.f32 %v1854_v44, %v1690_v35  ;;  %v1281_v17 = vadd.f32 %v1249_v1, %v1085_v53  ;;  %v1103_v63 = vadd.f32 %v1071_v47, %v907_v6  ;;  %v5433_v1 = vld [vmem:[%s4504_s23 + $0xd0] sm:$0xff] }
 0x238   : > { %v5378_v49 = vpop.permute.xlu0 %641  ;;  %v1870_v32 = vadd.f32 %v1838_v31, %v1674_v36  ;;  %v2034_v46 = vmul.f32 %v5372_v14, %v5214_v28  ;;  %v1463_v56 = vmul.f32 %v5334_v61, %v5010_v40  ;;  %v1853_v28 = vmul.f32 %v5369_v19, %v5166_v33  ;;  %v2607_v47 = vld [vmem:[%s5226_s14 + $0x70] sm:$0xff] }
 0x239   : > { %2677 = vperm.xlu0 %3995, %v2603_v23   ;;  %v1493_v23 = vadd.f32 %v1461_v0, %v1297_v60  ;;  %v2082_v22 = vadd.f32 %v2050_v7, %v1886_v34  ;;  %v1477_v0 = vadd.f32 %v1445_v13, %v1281_v17  ;;  %v1299_v53 = vadd.f32 %v1267_v26, %v1103_v63  ;;  %v3346_v34 = vld [vmem:[%s482_s15] sm:$0xff] }
 0x23a   : > { %1806 = vperm.xlu1 %3968, %v5390_v9   ;;  %v2066_v60 = vadd.f32 %v2034_v46, %v1870_v32  ;;  %v1837_v40 = vmul.f32 %v5369_v19, %v5163_v29  ;;  %v3348_v35 = vstv %s3347_s25  ;;  %v2049_v31 = vmul.f32 %v5372_v14, %v5193_v21  ;;  %v2120_v46 = vld [vmem:[%s5062_s26 + $0xb8] sm:$0xff] }
 0x23b   : > { %v2137_v42 = vpop.permute.xlu1 %2136  ;;  %v5430_v45 = vadd.f32 %v5294_v24, %v2082_v22  ;;  %v1689_v3 = vadd.f32 %v1657_v48, %v1493_v23  ;;  %v1641_v24 = vmul.f32 %v5365_v37, %v5152_v2  ;;  %v1495_v17 = vadd.f32 %v1463_v56, %v1299_v53  ;;  %v6705_v53 = vld [vmem:[#allocation149_spill] sm:$0xff] }
 0x23c   : > { %v5401_v41 = vpop.permute.xlu0 %651  ;;  %v5455_v6 = vadd.f32 %v2137_v42, %v2066_v60  ;;  %v1659_v42 = vmul.f32 %v5365_v37, %v5186_v20  ;;  %v2033_v23 = vmul.f32 %v5372_v14, %v5216_v38  ;;  %v712_v22 = vmul.f32 %v5290_v12, %v4721_v54 }
 0x23d   : > { %2767 = vperm.xlu0 %3995, %v2621_v43   ;;  %v3631_v7 = vmul.f32 -1.442695, %v5430_v45  ;;  %v1885_v36 = vadd.f32 %v1853_v28, %v1689_v3  ;;  %v1673_v2 = vadd.f32 %v1641_v24, %v1477_v0  ;;  %v876_v20 = vmul.f32 %v5300_v59, %v4723_v55  ;;  %v6704_v24 = vld [vmem:[#allocation72_spill] sm:$0xff] }
 0x23e   : > { %1742 = vperm.xlu1 %3968, %v5408_v51   ;;  %v1691_v38 = vadd.f32 %v1659_v42, %v1495_v17  ;;  %v1072_v26 = vmul.f32 %v5310_v18, %v4923_v15  ;;  %v1268_v28 = vmul.f32 %v5326_v52, %v6704_v24  ;;  %v2051_v60 = vmul.f32 %v5372_v14, %v6705_v53  ;;  %v6708_v17 = vld [vmem:[#allocation5_spill] sm:$0xff] }
 0x23f   : > { %4050 = vpow2.f32 %v3631_v7  ;;  %v2081_v13 = vadd.f32 %v2049_v31, %v1885_v36  ;;  %v1869_v48 = vadd.f32 %v1837_v40, %v1673_v2  ;;  %v908_v0 = vadd.f32 %v876_v20, %v712_v22 }
 0x240   : > { %v5416_v39 = vpop.permute.xlu1 %1402  ;;  %v5418_v62 = vpop.permute.xlu0 %661  ;;  %v695_v42 = vmul.f32 %v5290_v12, %v6708_v17 }
 0x241   : > { %2687 = vperm.xlu0 %3995, %v2605_v5   ;;  %v3349_v5 = vadd.f32 %v3348_v35, %v3346_v34  ;;  %v2065_v54 = vadd.f32 %v2033_v23, %v1869_v48  ;;  %v6706_v35 = vld [vmem:[#allocation32_spill] sm:$0xff]  ;;  %v6709_v23 = vld [vmem:[#allocation58_spill] sm:$0xff]  ;;  %v6710_v48 = vld [vmem:[#allocation111_spill] sm:$0xff] }
 0x242   : > { %3969 = vset.pattern.permute.xlu1 %v6622_v16  ;;  %v859_v7 = vmul.f32 %v5300_v59, %v6706_v35 }
 0x243   : > { %1614 = vperm.xlu1 %3969, %v5433_v1  }
 0x244   : > { %v5439_v44 = vpop.permute.xlu0 %671 }
 0x245   : > { %v5450_v43 = vpop.permute.xlu1 %1786  ;;  %2777 = vperm.xlu0 %3995, %v2623_v57  }
 0x247   : > { %3970 = vset.pattern.permute.xlu1 %v6642_v8 }
 0x248   : > { %1998 = vperm.xlu1 %3970, %v5359_v4   ;;  %v5460_v33 = vpop.permute.xlu0 %681  ;;  %v3615_v4 = vmul.f32 -1.442695, %v5455_v6 }
 0x249   : > { %v5464_v29 = vpop.permute.xlu1 %1790  ;;  %2697 = vperm.xlu0 %3995, %v2607_v47   ;;  %v4051_v2 = vpop.eup %4050  ;;  %v6707_v47 = vld [vmem:[#allocation98_spill] sm:$0xff] }
 0x24a   : > { %4052 = vpow2.f32 %v3615_v4  ;;  %v1464_v34 = vmul.f32 %v5334_v61, %v6707_v47  ;;  %v5506_v4 = vld [vmem:[%s4504_s23 + $0x50] sm:$0xff] }
 0x24c   : > { %2002 = vperm.xlu1 %3970, %v5390_v9   ;;  %v2212_v21 = vpop.permute.xlu0 %2211  ;;  %v1855_v9 = vmul.f32 %v5369_v19, %v5235_v27  ;;  %v1104_v27 = vadd.f32 %v1072_v26, %v908_v0  ;;  %v2434_v26 = vadd.f32 1.0, %v4051_v2 }
 0x24d   : > { %v5476_v63 = vadd.f32 %v2212_v21, %v2081_v13  ;;  %v5478_v32 = vpop.permute.xlu1 %1726  ;;  %3353 = vperm.xlu0 %3995, %v3349_v5   ;;  %v1055_v5 = vmul.f32 %v5310_v18, %v6709_v23  ;;  %v1660_v21 = vmul.f32 %v5365_v37, %v6710_v48  ;;  %v6716_v48 = vld [vmem:[#allocation6_spill] sm:$0xff] }
 0x24e   : > { %v1887_v56 = vadd.f32 %v1855_v9, %v1691_v38  ;;  %v1300_v13 = vadd.f32 %v1268_v28, %v1104_v27  ;;  %v891_v38 = vadd.f32 %v859_v7, %v695_v42  ;;  %v6711_v9 = vld [vmem:[#allocation87_spill] sm:$0xff]  ;;  %v6713_v27 = vld [vmem:[#allocation113_spill] sm:$0xff]  ;;  %v6715_v42 = vld [vmem:[#allocation112_spill] sm:$0xff] }
 0x24f   : > { %v3630_v3 = vmul.f32 -1.442695, %v5476_v63  ;;  %v1447_v53 = vmul.f32 %v5334_v61, %v6713_v27  ;;  %v4312_v7 = vld [vmem:[%s4504_s23 + $0x40] sm:$0xff]  ;;  %v1643_v23 = vmul.f32 %v5365_v37, %v6715_v42 }
 0x250   : > { %3971 = vset.pattern.permute.xlu1 %v6646_v10  ;;  %v2132_v55 = vpop.permute.xlu0 %2131  ;;  %v2083_v31 = vadd.f32 %v2051_v60, %v1887_v56  ;;  %v1087_v56 = vadd.f32 %v1055_v5, %v891_v38  ;;  %v6714_v60 = vld [vmem:[#allocation151_spill] sm:$0xff] }
 0x251   : > { %4054 = vpow2.f32 %v3630_v3  ;;  %v5487_v57 = vadd.f32 %v2132_v55, %v2065_v54  ;;  %2246 = vperm.xlu1 %3971, %v2120_v46   ;;  %v1251_v3 = vmul.f32 %v5326_v52, %v6711_v9  ;;  %v1496_v54 = vadd.f32 %v1464_v34, %v1300_v13  ;;  %v6712_v55 = vld [vmem:[#allocation143_spill] sm:$0xff] }
 0x252   : > { %v5489_v15 = vpop.permute.xlu1 %1598  ;;  %v1856_v0 = vmul.f32 %v5369_v19, %v6712_v55  ;;  %v6717_v38 = vld [vmem:[#allocation7_spill] sm:$0xff] }
 0x253   : > { %v3614_v40 = vmul.f32 -1.442695, %v5487_v57  ;;  %v1692_v28 = vadd.f32 %v1660_v21, %v1496_v54  ;;  %v1283_v34 = vadd.f32 %v1251_v3, %v1087_v56  ;;  %v696_v21 = vmul.f32 %v5290_v12, %v6716_v48  ;;  %v6718_v3 = vld [vmem:[#allocation133_spill] sm:$0xff]  ;;  %v6719_v56 = vld [vmem:[#allocation60_spill] sm:$0xff] }
 0x254   : > { %v2222_v36 = vpop.permute.xlu0 %2221  ;;  %v4053_v46 = vpop.eup %4052  ;;  %v1839_v54 = vmul.f32 %v5369_v19, %v6718_v3  ;;  %v5557_v48 = vld [vmem:[%s4504_s23 + $0xe0] sm:$0xff] }
 0x255   : > { %4056 = vpow2.f32 %v3614_v40  ;;  %3972 = vset.pattern.permute.xlu1 %v6622_v16  ;;  %v5511_v22 = vadd.f32 %v2222_v36, %v2083_v31  ;;  %v2052_v40 = vmul.f32 %v5372_v14, %v6714_v60  ;;  %v2418_v2 = vadd.f32 1.0, %v4053_v46 }
 0x256   : > { %1550 = vperm.xlu1 %3972, %v5506_v4   ;;  %4058 = vrcp.f32 %v2434_v26  ;;  %v1888_v31 = vadd.f32 %v1856_v0, %v1692_v28  ;;  %v1479_v5 = vadd.f32 %v1447_v53, %v1283_v34  ;;  %v860_v26 = vmul.f32 %v5300_v59, %v6717_v38  ;;  %v2104_v0 = vld [vmem:[%s5062_s26 + $0x38] sm:$0xff] }
 0x257   : > { %v5513_v20 = vpop.permute.xlu1 %1982  ;;  %v3632_v35 = vmul.f32 -1.442695, %v5511_v22  ;;  %v2035_v28 = vmul.f32 %v5372_v14, %v5338_v25  ;;  %v6721_v25 = vld [vmem:[#allocation115_spill] sm:$0xff] }
 0x258   : > { %v2084_v13 = vadd.f32 %v2052_v40, %v1888_v31  ;;  %v892_v53 = vadd.f32 %v860_v26, %v696_v21  ;;  %v2142_v34 = vpop.permute.xlu0 %2141  ;;  %v1448_v42 = vmul.f32 %v5334_v61, %v6721_v25  ;;  %v6724_v25 = vld [vmem:[#allocation46_spill] sm:$0xff] }
 0x25a   : > { %3973 = vset.pattern.permute.xlu1 %v6642_v8 }
 0x25b   : > { %v4055_v24 = vpop.eup %4054  ;;  %1934 = vperm.xlu1 %3973, %v4312_v7   ;;  %v5526_v36 = vpop.permute.xlu1 %1986  ;;  %v6720_v7 = vld [vmem:[#allocation57_spill] sm:$0xff] }
 0x25c   : > { %v2433_v47 = vadd.f32 1.0, %v4055_v24  ;;  %v1056_v24 = vmul.f32 %v5310_v18, %v6719_v56 }
 0x25e   : > { %4060 = vrcp.f32 %v2433_v47  ;;  %v1088_v47 = vadd.f32 %v1056_v24, %v892_v53  ;;  %v6723_v24 = vld [vmem:[#allocation145_spill] sm:$0xff] }
 0x25f   : > { %v4057_v17 = vpop.eup %4056  ;;  %4062 = vpow2.f32 %v3632_v35  ;;  %1938 = vperm.xlu1 %3973, %v5408_v51   ;;  %v1675_v51 = vadd.f32 %v1643_v23, %v1479_v5 }
 0x260   : > { %4064 = vrcp.f32 %v2418_v2  ;;  %v2417_v46 = vadd.f32 1.0, %v4057_v17  ;;  %v2227_v9 = vpop.permute.xlu1 %2226  ;;  %v4059_v35 = vpop.eup %4058  ;;  %v1252_v2 = vmul.f32 %v5326_v52, %v6720_v7 }
 0x261   : > { %v5537_v55 = vadd.f32 %v2227_v9, %v2084_v13  ;;  %v1871_v60 = vadd.f32 %v1839_v54, %v1675_v51  ;;  %v2530_v21 = vmul.f32 %v4059_v35, %v5430_v45 }
 0x262   : > { %4066 = vrcp.f32 %v2417_v46  ;;  %v1284_v26 = vadd.f32 %v1252_v2, %v1088_v47  ;;  %v6722_v46 = vld [vmem:[#allocation139_spill] sm:$0xff] }
 0x263   : > { %v3633_v27 = vmul.f32 -1.442695, %v5537_v55  ;;  %3974 = vset.pattern.permute.xlu1 %v6646_v10  ;;  %v2067_v31 = vadd.f32 %v2035_v28, %v1871_v60  ;;  %v1644_v9 = vmul.f32 %v5365_v37, %v6722_v46  ;;  %v2036_v60 = vmul.f32 %v5372_v14, %v5362_v30 }
 0x264   : > { %2166 = vperm.xlu1 %3974, %v2104_v0   ;;  %v1480_v56 = vadd.f32 %v1448_v42, %v1284_v26  ;;  %v713_v30 = vmul.f32 %v5290_v12, %v5349_v50  ;;  %v877_v42 = vmul.f32 %v5300_v59, %v6724_v25  ;;  %v6725_v26 = vld [vmem:[#allocation45_spill] sm:$0xff] }
 0x265   : > { %4068 = vpow2.f32 %v3633_v27  ;;  %v5546_v40 = vpop.permute.xlu1 %1534  ;;  %v5554_v13 = vadd.f32 %v2142_v34, %v2067_v31  ;;  %v1073_v46 = vmul.f32 %v5310_v18, %v6725_v26 }
 0x266   : > { %v1676_v53 = vadd.f32 %v1644_v9, %v1480_v56  ;;  %v6726_v56 = vld [vmem:[#allocation101_spill] sm:$0xff] }
 0x267   : > { %v3616_v27 = vmul.f32 -1.442695, %v5554_v13 }
 0x268   : > { %v4061_v17 = vpop.eup %4060  ;;  %3975 = vset.pattern.permute.xlu1 %v6604_v58 }
 0x269   : > { %v4063_v23 = vpop.eup %4062  ;;  %v2529_v5 = vmul.f32 %v4061_v17, %v5476_v63  ;;  %1426 = vperm.xlu1 %3975, %v5557_v48   ;;  %v1840_v63 = vmul.f32 %v5369_v19, %v6723_v24  ;;  %v1269_v24 = vmul.f32 %v5326_v52, %v6726_v56  ;;  %v2053_v56 = vmul.f32 %v5372_v14, %v5513_v20  ;;  %v6736_v20 = vld [vmem:[#allocation99_spill] sm:$0xff] }
 0x26a   : > { %v4065_v38 = vpop.eup %4064  ;;  %v5563_v3 = vpop.permute.xlu1 %1918  ;;  %v2435_v51 = vadd.f32 1.0, %v4063_v23 }
 0x26b   : > { %v2553_v54 = vpack.c.bf16 %v2530_v21, %v2529_v5  ;;  %v2514_v45 = vmul.f32 %v4065_v38, %v5455_v6  ;;  %v4314_v6 = vld [vmem:[%s4504_s23 + $0xd8] sm:$0xff]  ;;  %v909_v21 = vadd.f32 %v877_v42, %v713_v30  ;;  %v6729_v30 = vld [vmem:[#allocation21_spill] sm:$0xff]  ;;  %v6731_v42 = vld [vmem:[#allocation147_spill] sm:$0xff] }
 0x26c   : > { %v4067_v0 = vpop.eup %4066  ;;  %4070 = vrcp.f32 %v2435_v51  ;;  %v5585_v5 = vld [vmem:[%s4504_s23 + $0x58] sm:$0xff] }
 0x26d   : > { %v2513_v28 = vmul.f32 %v4067_v0, %v5487_v57  ;;  %3976 = vset.pattern.permute.xlu1 %v6648_v11  ;;  %3719 = vmatprep.subr.bf16.mxu0 %v2553_v54  ;;  %v1872_v57 = vadd.f32 %v1840_v63, %v1676_v53  ;;  %4072 = vpow2.f32 %v3616_v27 }
 0x26e   : > { %3853 = vmatprep.subr.bf16.mxu1 %v2553_v54  ;;  %1810 = vperm.xlu1 %3976, %v5433_v1   ;;  %v5574_v35 = vpop.permute.xlu1 %1922  ;;  %v1105_v54 = vadd.f32 %v1073_v46, %v909_v21  ;;  %v1857_v21 = vmul.f32 %v5369_v19, %v5450_v43  ;;  %v2122_v46 = vld [vmem:[%s5062_s26 + $0xc8] sm:$0xff] }
 0x26f   : > { %v4069_v7 = vpop.eup %4068  ;;  %v2545_v2 = vpack.c.bf16 %v2514_v45, %v2513_v28  ;;  %v2068_v34 = vadd.f32 %v2036_v60, %v1872_v57  ;;  %v6727_v60 = vld [vmem:[#allocation142_spill] sm:$0xff] }
 0x270   : > { %v2436_v47 = vadd.f32 1.0, %v4069_v7  ;;  %v1301_v27 = vadd.f32 %v1269_v24, %v1105_v54  ;;  %v1465_v7 = vmul.f32 %v5334_v61, %v6727_v60  ;;  %v6733_v54 = vld [vmem:[#allocation75_spill] sm:$0xff] }
 0x271   : > { %3720 = vmatpush3.bf16.msra.mxu0 %v2545_v2  ;;  %3861 = vmatpush3.bf16.msra.mxu1 %v2545_v2 }
 0x272   : > { %4074 = vrcp.f32 %v2436_v47  ;;  %1814 = vperm.xlu1 %3976, %v4314_v6   ;;  %v1497_v57 = vadd.f32 %v1465_v7, %v1301_v27  ;;  %v6728_v47 = vld [vmem:[#allocation20_spill] sm:$0xff]  ;;  %v6734_v27 = vld [vmem:[#allocation33_spill] sm:$0xff] }
 0x273   : > { %v2147_v31 = vpop.permute.xlu1 %2146 }
 0x274   : > { %v5579_v17 = vadd.f32 %v2147_v31, %v2068_v34  ;;  %v714_v34 = vmul.f32 %v5290_v12, %v6728_v47  ;;  %v878_v31 = vmul.f32 %v5300_v59, %v6729_v30  ;;  %v1466_v47 = vmul.f32 %v5334_v61, %v6736_v20 }
 0x276   : > { %v3617_v23 = vmul.f32 -1.442695, %v5579_v17  ;;  %1750 = vperm.xlu1 %3976, %v5585_v5   ;;  %v4071_v50 = vpop.eup %4070  ;;  %v910_v24 = vadd.f32 %v878_v31, %v714_v34  ;;  %v5636_v34 = vld [vmem:[%s4504_s23 + $0x60] sm:$0xff] }
 0x277   : > { %v4073_v9 = vpop.eup %4072  ;;  %v2531_v63 = vmul.f32 %v4071_v50, %v5511_v22  ;;  %v6732_v50 = vld [vmem:[#allocation34_spill] sm:$0xff] }
 0x278   : > { %4076 = vpow2.f32 %v3617_v23  ;;  %v5588_v38 = vpop.permute.xlu1 %1410  ;;  %v2419_v45 = vadd.f32 1.0, %v4073_v9  ;;  %v1661_v23 = vmul.f32 %v5365_v37, %v6731_v42  ;;  %v861_v9 = vmul.f32 %v5300_v59, %v6732_v50 }
 0x27a   : > { %3977 = vset.pattern.permute.xlu1 %v6622_v16  ;;  %4078 = vrcp.f32 %v2419_v45  ;;  %v1057_v45 = vmul.f32 %v5310_v18, %v6734_v27 }
 0x27b   : > { %1622 = vperm.xlu1 %3977, %v5557_v48  }
 0x27c   : > { %v4075_v0 = vpop.eup %4074 }
 0x27d   : > { %v2532_v51 = vmul.f32 %v4075_v0, %v5537_v55  ;;  %v5598_v28 = vpop.permute.xlu1 %1794  ;;  %v1074_v0 = vmul.f32 %v5310_v18, %v6733_v54 }
 0x27f   : > { %3978 = vset.pattern.permute.xlu1 %v6642_v8  ;;  %v2554_v53 = vpack.c.bf16 %v2532_v51, %v2531_v63  ;;  %v1106_v7 = vadd.f32 %v1074_v0, %v910_v24  ;;  %v6739_v0 = vld [vmem:[#allocation85_spill] sm:$0xff] }
 0x280   : > { %2006 = vperm.xlu1 %3978, %v5433_v1   ;;  %v6730_v1 = vld [vmem:[#allocation144_spill] sm:$0xff] }
 0x281   : > { %v5604_v2 = vpop.permute.xlu1 %1798  ;;  %3721 = vmatprep.subr.bf16.mxu0 %v2554_v53  ;;  %3854 = vmatprep.subr.bf16.mxu1 %v2554_v53  ;;  %v697_v25 = vmul.f32 %v5290_v12, %v6730_v1  ;;  %v6735_v53 = vld [vmem:[#allocation73_spill] sm:$0xff] }
 0x282   : > { %v4077_v22 = vpop.eup %4076  ;;  %v1270_v60 = vmul.f32 %v5326_v52, %v6735_v53  ;;  %v6737_v1 = vld [vmem:[#allocation89_spill] sm:$0xff] }
 0x283   : > { %v2420_v55 = vadd.f32 1.0, %v4077_v22  ;;  %v893_v63 = vadd.f32 %v861_v9, %v697_v25  ;;  %v1253_v25 = vmul.f32 %v5326_v52, %v6737_v1 }
 0x284   : > { %2010 = vperm.xlu1 %3978, %v4314_v6   ;;  %v1693_v6 = vadd.f32 %v1661_v23, %v1497_v57  ;;  %v2232_v57 = vpop.permute.xlu0 %2231  ;;  %v1302_v42 = vadd.f32 %v1270_v60, %v1106_v7  ;;  %v6738_v23 = vld [vmem:[#allocation114_spill] sm:$0xff] }
 0x285   : > { %4080 = vrcp.f32 %v2420_v55  ;;  %v5616_v26 = vpop.permute.xlu1 %1734  ;;  %v4079_v55 = vpop.eup %4078  ;;  %v1089_v30 = vadd.f32 %v1057_v45, %v893_v63  ;;  %v1858_v63 = vmul.f32 %v5369_v19, %v5464_v29  ;;  %v6740_v45 = vld [vmem:[#allocation154_spill] sm:$0xff] }
 0x286   : > { %v1889_v43 = vadd.f32 %v1857_v21, %v1693_v6  ;;  %v1662_v21 = vmul.f32 %v5365_v37, %v6738_v23  ;;  %v2515_v9 = vmul.f32 %v4079_v55, %v5554_v13  ;;  %v1449_v6 = vmul.f32 %v5334_v61, %v6739_v0  ;;  %v6742_v55 = vld [vmem:[#allocation9_spill] sm:$0xff] }
 0x287   : > { %v1285_v24 = vadd.f32 %v1253_v25, %v1089_v30  ;;  %v1645_v53 = vmul.f32 %v5365_v37, %v6740_v45  ;;  %v2054_v13 = vmul.f32 %v5372_v14, %v5526_v36  ;;  %v862_v20 = vmul.f32 %v5300_v59, %v6742_v55 }
 0x288   : > { %3979 = vset.pattern.permute.xlu1 %v6646_v10  ;;  %v2085_v22 = vadd.f32 %v2053_v56, %v1889_v43  ;;  %v1498_v56 = vadd.f32 %v1466_v47, %v1302_v42  ;;  %v6743_v47 = vld [vmem:[#allocation134_spill] sm:$0xff]  ;;  %v2037_v42 = vmul.f32 %v5372_v14, %v5563_v3  ;;  %v1842_v55 = vmul.f32 %v5369_v19, %v5478_v32 }
 0x289   : > { %2256 = vperm.xlu1 %3979, %v2122_v46   ;;  %v1481_v29 = vadd.f32 %v1449_v6, %v1285_v24  ;;  %v1841_v36 = vmul.f32 %v5369_v19, %v6743_v47  ;;  %v6745_v6 = vld [vmem:[#allocation59_spill] sm:$0xff]  ;;  %v4318_v32 = vld [vmem:[%s4504_s23 + $0xe8] sm:$0xff] }
 0x28a   : > { %v5626_v51 = vpop.permute.xlu1 %1606  ;;  %v5643_v46 = vadd.f32 %v2232_v57, %v2085_v22  ;;  %v1694_v27 = vadd.f32 %v1662_v21, %v1498_v56  ;;  %v6741_v22 = vld [vmem:[#allocation8_spill] sm:$0xff]  ;;  %v2106_v21 = vld [vmem:[%s5062_s26 + $0x48] sm:$0xff]  ;;  %v1254_v56 = vmul.f32 %v5326_v52, %v6745_v6 }
 0x28b   : > { %v698_v57 = vmul.f32 %v5290_v12, %v6741_v22  ;;  %v1677_v30 = vadd.f32 %v1645_v53, %v1481_v29  ;;  %v6747_v29 = vld [vmem:[#allocation116_spill] sm:$0xff] }
 0x28c   : > { %v1890_v7 = vadd.f32 %v1858_v63, %v1694_v27  ;;  %v2152_v27 = vpop.permute.xlu0 %2151  ;;  %v6748_v6 = vld [vmem:[#allocation48_spill] sm:$0xff] }
 0x28d   : > { %3980 = vset.pattern.permute.xlu1 %v6622_v16 }
 0x28e   : > { %1558 = vperm.xlu1 %3980, %v5636_v34  }
 0x28f   : > { %v4081_v31 = vpop.eup %4080  ;;  %v5645_v50 = vpop.permute.xlu1 %1990 }
 0x290   : > { %v2516_v54 = vmul.f32 %v4081_v31, %v5579_v17  ;;  %v3634_v17 = vmul.f32 -1.442695, %v5643_v46  ;;  %v6744_v31 = vld [vmem:[#allocation62_spill] sm:$0xff] }
 0x291   : > { %v1058_v1 = vmul.f32 %v5310_v18, %v6744_v31 }
 0x292   : > { %3981 = vset.pattern.permute.xlu1 %v6642_v8  ;;  %v2546_v43 = vpack.c.bf16 %v2516_v54, %v2515_v9  ;;  %4082 = vpow2.f32 %v3634_v17  ;;  %v894_v9 = vadd.f32 %v862_v20, %v698_v57  ;;  %v1873_v54 = vadd.f32 %v1841_v36, %v1677_v30  ;;  %v5685_v17 = vld [vmem:[%s4504_s23 + $0xf0] sm:$0xff] }
 0x293   : > { %1942 = vperm.xlu1 %3981, %v5506_v4   ;;  %v5660_v60 = vpop.permute.xlu1 %1994  ;;  %v2086_v4 = vadd.f32 %v2054_v13, %v1890_v7  ;;  %v1646_v7 = vmul.f32 %v5365_v37, %v6747_v29  ;;  %v2038_v36 = vmul.f32 %v5372_v14, %v5574_v35  ;;  %v715_v35 = vmul.f32 %v5290_v12, %v5378_v49 }
 0x294   : > { %3722 = vmatpush3.bf16.msra.mxu0 %v2546_v43  ;;  %3862 = vmatpush3.bf16.msra.mxu1 %v2546_v43  ;;  %v2069_v24 = vadd.f32 %v2037_v42, %v1873_v54  ;;  %v6746_v43 = vld [vmem:[#allocation117_spill] sm:$0xff]  ;;  %v5706_v54 = vld [vmem:[%s4504_s23 + $0x68] sm:$0xff] }
 0x295   : > { %v1450_v3 = vmul.f32 %v5334_v61, %v6746_v43 }
 0x296   : > { %v5682_v13 = vadd.f32 %v2152_v27, %v2069_v24  ;;  %v6749_v27 = vld [vmem:[#allocation47_spill] sm:$0xff] }
 0x297   : > { %1946 = vperm.xlu1 %3981, %v5585_v5   ;;  %v1090_v5 = vadd.f32 %v1058_v1, %v894_v9 }
 0x298   : > { %v2237_v25 = vpop.permute.xlu1 %2236 }
 0x299   : > { %v2310_v23 = vadd.f32 %v2237_v25, %v2086_v4  ;;  %v1286_v45 = vadd.f32 %v1254_v56, %v1090_v5  ;;  %v879_v56 = vmul.f32 %v5300_v59, %v6748_v6  ;;  %v1859_v6 = vmul.f32 %v5369_v19, %v5598_v28 }
 0x29b   : > { %v3635_v0 = vmul.f32 -1.442695, %v2310_v23  ;;  %3982 = vset.pattern.permute.xlu1 %v6646_v10  ;;  %v1482_v22 = vadd.f32 %v1450_v3, %v1286_v45  ;;  %v911_v43 = vadd.f32 %v879_v56, %v715_v35  ;;  %v1075_v45 = vmul.f32 %v5310_v18, %v6749_v27 }
 0x29c   : > { %2176 = vperm.xlu1 %3982, %v2106_v21   ;;  %v4083_v53 = vpop.eup %4082 }
 0x29d   : > { %4084 = vpow2.f32 %v3635_v0  ;;  %v5677_v63 = vpop.permute.xlu1 %1542  ;;  %v2437_v20 = vadd.f32 1.0, %v4083_v53  ;;  %v1678_v47 = vadd.f32 %v1646_v7, %v1482_v22  ;;  %v1107_v7 = vadd.f32 %v1075_v45, %v911_v43  ;;  %v6755_v43 = vld [vmem:[#allocation77_spill] sm:$0xff] }
 0x29f   : > { %v1874_v31 = vadd.f32 %v1842_v55, %v1678_v47  ;;  %4086 = vrcp.f32 %v2437_v20  ;;  %v6750_v20 = vld [vmem:[#allocation103_spill] sm:$0xff]  ;;  %v1467_v47 = vmul.f32 %v5334_v61, %v5416_v39  ;;  %v6753_v39 = vld [vmem:[#allocation146_spill] sm:$0xff] }
 0x2a0   : > { %3983 = vset.pattern.permute.xlu1 %v6604_v58  ;;  %v3618_v58 = vmul.f32 -1.442695, %v5682_v13 }
 0x2a1   : > { %1434 = vperm.xlu1 %3983, %v5685_v17   ;;  %v2070_v25 = vadd.f32 %v2038_v36, %v1874_v31 }
 0x2a2   : > { %v5690_v57 = vpop.permute.xlu1 %1926  ;;  %4088 = vpow2.f32 %v3618_v58  ;;  %v1271_v58 = vmul.f32 %v5326_v52, %v6750_v20 }
 0x2a5   : > { %3985 = vset.pattern.permute.xlu1 %v6648_v11 }
 0x2a6   : > { %1818 = vperm.xlu1 %3985, %v5557_v48   ;;  %v5699_v30 = vpop.permute.xlu1 %1930 }
 0x2a7   : > { %v4085_v4 = vpop.eup %4084 }
 0x2a8   : > { %v2438_v1 = vadd.f32 1.0, %v4085_v4  ;;  %v1663_v4 = vmul.f32 %v5365_v37, %v5489_v15  ;;  %v2124_v15 = vld [vmem:[%s5062_s26 + $0xd8] sm:$0xff] }
 0x2a9   : > { %v4087_v5 = vpop.eup %4086 }
 0x2aa   : > { %4090 = vrcp.f32 %v2438_v1  ;;  %1822 = vperm.xlu1 %3985, %v4318_v32   ;;  %v2533_v53 = vmul.f32 %v4087_v5, %v5643_v46  ;;  %v6751_v1 = vld [vmem:[#allocation22_spill] sm:$0xff]  ;;  %v6754_v5 = vld [vmem:[#allocation36_spill] sm:$0xff] }
 0x2ab   : > { %v2157_v42 = vpop.permute.xlu1 %2156 }
 0x2ac   : > { %v5702_v21 = vadd.f32 %v2157_v42, %v2070_v25  ;;  %v4089_v24 = vpop.eup %4088  ;;  %v6752_v25 = vld [vmem:[#allocation23_spill] sm:$0xff] }
 0x2ad   : > { %v2421_v22 = vadd.f32 1.0, %v4089_v24  ;;  %v880_v42 = vmul.f32 %v5300_v59, %v6752_v25  ;;  %v863_v24 = vmul.f32 %v5300_v59, %v6754_v5  ;;  %v6759_v25 = vld [vmem:[#allocation91_spill] sm:$0xff] }
 0x2ae   : > { %v3619_v9 = vmul.f32 -1.442695, %v5702_v21  ;;  %1758 = vperm.xlu1 %3985, %v5706_v54  }
 0x2b0   : > { %4092 = vpow2.f32 %v3619_v9  ;;  %v5711_v0 = vpop.permute.xlu1 %1418  ;;  %v699_v9 = vmul.f32 %v5290_v12, %v6753_v39 }
 0x2b1   : > { %4094 = vrcp.f32 %v2421_v22 }
 0x2b2   : > { %3986 = vset.pattern.permute.xlu1 %v6622_v16 }
 0x2b3   : > { %1630 = vperm.xlu1 %3986, %v5685_v17  }
 0x2b4   : > { %v4091_v3 = vpop.eup %4090 }
 0x2b5   : > { %v2534_v49 = vmul.f32 %v4091_v3, %v2310_v23  ;;  %v5720_v29 = vpop.permute.xlu1 %1802  ;;  %v1303_v23 = vadd.f32 %v1271_v58, %v1107_v7  ;;  %v1076_v3 = vmul.f32 %v5310_v18, %v6755_v43  ;;  %v6756_v7 = vld [vmem:[#allocation35_spill] sm:$0xff] }
 0x2b6   : > { %v1059_v22 = vmul.f32 %v5310_v18, %v6756_v7 }
 0x2b7   : > { %3987 = vset.pattern.permute.xlu1 %v6642_v8  ;;  %v2555_v55 = vpack.c.bf16 %v2534_v49, %v2533_v53  ;;  %v1499_v35 = vadd.f32 %v1467_v47, %v1303_v23  ;;  %v895_v53 = vadd.f32 %v863_v24, %v699_v9  ;;  %v6760_v9 = vld [vmem:[#allocation118_spill] sm:$0xff] }
 0x2b8   : > { %2014 = vperm.xlu1 %3987, %v5557_v48   ;;  %v716_v48 = vmul.f32 %v5290_v12, %v6751_v1  ;;  %v5760_v1 = vld [vmem:[%s4504_s23 + $0x70] sm:$0xff]  ;;  %v6761_v24 = vld [vmem:[#allocation86_spill] sm:$0xff] }
 0x2b9   : > { %v5728_v36 = vpop.permute.xlu1 %1806  ;;  %3723 = vmatprep.subr.bf16.mxu0 %v2555_v55  ;;  %3855 = vmatprep.subr.bf16.mxu1 %v2555_v55  ;;  %v1695_v27 = vadd.f32 %v1663_v4, %v1499_v35  ;;  %v6757_v55 = vld [vmem:[#allocation74_spill] sm:$0xff]  ;;  %v1664_v35 = vmul.f32 %v5365_v37, %v6760_v9  ;;  %v1451_v43 = vmul.f32 %v5334_v61, %v6761_v24 }
 0x2ba   : > { %v4093_v46 = vpop.eup %4092  ;;  %v912_v45 = vadd.f32 %v880_v42, %v716_v48  ;;  %v1272_v20 = vmul.f32 %v5326_v52, %v6757_v55  ;;  %v1255_v42 = vmul.f32 %v5326_v52, %v6759_v25  ;;  %v6762_v55 = vld [vmem:[#allocation10_spill] sm:$0xff]  ;;  %v2108_v25 = vld [vmem:[%s5062_s26 + $0x58] sm:$0xff] }
 0x2bb   : > { %v2422_v31 = vadd.f32 1.0, %v4093_v46  ;;  %v1891_v28 = vadd.f32 %v1859_v6, %v1695_v27  ;;  %v2242_v46 = vpop.permute.xlu0 %2241  ;;  %v4095_v23 = vpop.eup %4094 }
 0x2bc   : > { %2018 = vperm.xlu1 %3987, %v4318_v32   ;;  %v2055_v32 = vmul.f32 %v5372_v14, %v5645_v50  ;;  %v1108_v58 = vadd.f32 %v1076_v3, %v912_v45  ;;  %v6758_v50 = vld [vmem:[#allocation100_spill] sm:$0xff]  ;;  %v2517_v5 = vmul.f32 %v4095_v23, %v5682_v13  ;;  %v2056_v13 = vmul.f32 %v5372_v14, %v5660_v60 }
 0x2bd   : > { %4096 = vrcp.f32 %v2422_v31  ;;  %v5740_v56 = vpop.permute.xlu1 %1742  ;;  %v1468_v4 = vmul.f32 %v5334_v61, %v6758_v50  ;;  %v1091_v31 = vadd.f32 %v1059_v22, %v895_v53  ;;  %v6765_v23 = vld [vmem:[#allocation64_spill] sm:$0xff] }
 0x2be   : > { %v2087_v47 = vadd.f32 %v2055_v32, %v1891_v28  ;;  %v1304_v39 = vadd.f32 %v1272_v20, %v1108_v58  ;;  %v1860_v32 = vmul.f32 %v5369_v19, %v5604_v2  ;;  %v1647_v28 = vmul.f32 %v5365_v37, %v5546_v40  ;;  %v6763_v58 = vld [vmem:[#allocation11_spill] sm:$0xff] }
 0x2bf   : > { %v1287_v27 = vadd.f32 %v1255_v42, %v1091_v31  ;;  %v700_v20 = vmul.f32 %v5290_v12, %v6762_v55  ;;  %v864_v40 = vmul.f32 %v5300_v59, %v6763_v58  ;;  %v1060_v50 = vmul.f32 %v5310_v18, %v6765_v23 }
 0x2c0   : > { %3988 = vset.pattern.permute.xlu1 %v6646_v10  ;;  %v5767_v6 = vadd.f32 %v2242_v46, %v2087_v47  ;;  %v1500_v3 = vadd.f32 %v1468_v4, %v1304_v39  ;;  %v6764_v47 = vld [vmem:[#allocation135_spill] sm:$0xff]  ;;  %v2039_v31 = vmul.f32 %v5372_v14, %v5690_v57 }
 0x2c1   : > { %2266 = vperm.xlu1 %3988, %v2124_v15   ;;  %v1483_v2 = vadd.f32 %v1451_v43, %v1287_v27  ;;  %v1843_v60 = vmul.f32 %v5369_v19, %v6764_v47  ;;  %v896_v42 = vadd.f32 %v864_v40, %v700_v20  ;;  %v6767_v43 = vld [vmem:[#allocation119_spill] sm:$0xff]  ;;  %v2162_v27 = vpop.permute.xlu0 %2161  ;;  %v719_v20 = vmul.f32 %v5290_v12, %v5418_v62  ;;  %v6769_v47 = vld [vmem:[#allocation52_spill] sm:$0xff] }
 0x2c2   : > { %v5750_v49 = vpop.permute.xlu1 %1614  ;;  %v1696_v53 = vadd.f32 %v1664_v35, %v1500_v3  ;;  %v6766_v35 = vld [vmem:[#allocation61_spill] sm:$0xff]  ;;  %v1452_v57 = vmul.f32 %v5334_v61, %v6767_v43 }
 0x2c3   : > { %v1679_v46 = vadd.f32 %v1647_v28, %v1483_v2  ;;  %v6768_v28 = vld [vmem:[#allocation120_spill] sm:$0xff]  ;;  %v1844_v2 = vmul.f32 %v5369_v19, %v5616_v26  ;;  %v2125_v43 = vld [vmem:[%s5062_s26 + $0xe0] sm:$0xff] }
 0x2c4   : > { %v1892_v22 = vadd.f32 %v1860_v32, %v1696_v53 }
 0x2c5   : > { %3989 = vset.pattern.permute.xlu1 %v6622_v16  ;;  %v1875_v39 = vadd.f32 %v1843_v60, %v1679_v46  ;;  %v883_v60 = vmul.f32 %v5300_v59, %v6769_v47  ;;  %v6774_v47 = vld [vmem:[#allocation54_spill] sm:$0xff] }
 0x2c6   : > { %1566 = vperm.xlu1 %3989, %v5760_v1  }
 0x2c7   : > { %v4097_v48 = vpop.eup %4096  ;;  %v5769_v15 = vpop.permute.xlu1 %1998  ;;  %v915_v23 = vadd.f32 %v883_v60, %v719_v20  ;;  %v885_v60 = vmul.f32 %v5300_v59, %v6774_v47  ;;  %v6784_v47 = vld [vmem:[#allocation76_spill] sm:$0xff] }
 0x2c8   : > { %v2518_v16 = vmul.f32 %v4097_v48, %v5702_v21  ;;  %v3636_v21 = vmul.f32 -1.442695, %v5767_v6 }
 0x2ca   : > { %3991 = vset.pattern.permute.xlu1 %v6642_v8  ;;  %v2547_v45 = vpack.c.bf16 %v2518_v16, %v2517_v5  ;;  %4098 = vpow2.f32 %v3636_v21  ;;  %v1092_v5 = vadd.f32 %v1060_v50, %v896_v42  ;;  %v2071_v16 = vadd.f32 %v2039_v31, %v1875_v39  ;;  %v4322_v39 = vld [vmem:[%s4504_s23 + $0xf8] sm:$0xff] }
 0x2cb   : > { %1950 = vperm.xlu1 %3991, %v5636_v34   ;;  %v5784_v7 = vpop.permute.xlu1 %2002  ;;  %v2088_v34 = vadd.f32 %v2056_v13, %v1892_v22  ;;  %v1648_v13 = vmul.f32 %v5365_v37, %v6768_v28 }
 0x2cc   : > { %3724 = vmatpush3.bf16.msra.mxu0 %v2547_v45  ;;  %3863 = vmatpush3.bf16.msra.mxu1 %v2547_v45  ;;  %v5809_v45 = vadd.f32 %v2162_v27, %v2071_v16 }
 0x2ce   : > { %v3620_v55 = vmul.f32 -1.442695, %v5809_v45 }
 0x2cf   : > { %1954 = vperm.xlu1 %3991, %v5706_v54   ;;  %v1256_v54 = vmul.f32 %v5326_v52, %v6766_v35  ;;  %v6771_v35 = vld [vmem:[#allocation107_spill] sm:$0xff] }
 0x2d0   : > { %v2247_v4 = vpop.permute.xlu1 %2246 }
 0x2d1   : > { %v5797_v48 = vadd.f32 %v2247_v4, %v2088_v34  ;;  %v1288_v3 = vadd.f32 %v1256_v54, %v1092_v5  ;;  %v4321_v34 = vld [vmem:[%s4504_s23 + $0x78] sm:$0xff]  ;;  %v6770_v4 = vld [vmem:[#allocation51_spill] sm:$0xff]  ;;  %v1275_v54 = vmul.f32 %v5326_v52, %v6771_v35  ;;  %v1471_v5 = vmul.f32 %v5334_v61, %v5711_v0 }
 0x2d3   : > { %v3637_v9 = vmul.f32 -1.442695, %v5797_v48  ;;  %3992 = vset.pattern.permute.xlu1 %v6646_v10  ;;  %v1484_v53 = vadd.f32 %v1452_v57, %v1288_v3  ;;  %v6772_v57 = vld [vmem:[#allocation50_spill] sm:$0xff] }
 0x2d4   : > { %2186 = vperm.xlu1 %3992, %v2108_v25   ;;  %v4099_v32 = vpop.eup %4098  ;;  %v881_v3 = vmul.f32 %v5300_v59, %v6772_v57 }
 0x2d5   : > { %4100 = vpow2.f32 %v3637_v9  ;;  %v5804_v24 = vpop.permute.xlu1 %1550  ;;  %v2439_v22 = vadd.f32 1.0, %v4099_v32  ;;  %v717_v9 = vmul.f32 %v5290_v12, %v5401_v41 }
 0x2d7   : > { %4102 = vrcp.f32 %v2439_v22  ;;  %v913_v28 = vadd.f32 %v881_v3, %v717_v9  ;;  %v6773_v22 = vld [vmem:[#allocation49_spill] sm:$0xff]  ;;  %v6777_v9 = vld [vmem:[#allocation24_spill] sm:$0xff] }
 0x2d8   : > { %3993 = vset.pattern.permute.xlu1 %v6648_v11  ;;  %v1680_v11 = vadd.f32 %v1648_v13, %v1484_v53  ;;  %4104 = vpow2.f32 %v3620_v55  ;;  %v1667_v53 = vmul.f32 %v5365_v37, %v5750_v49  ;;  %v1077_v0 = vmul.f32 %v5310_v18, %v6773_v22 }
 0x2d9   : > { %1826 = vperm.xlu1 %3993, %v5685_v17   ;;  %v2040_v17 = vmul.f32 %v5372_v14, %v5699_v30  ;;  %v1079_v30 = vmul.f32 %v5310_v18, %v6770_v4  ;;  %v721_v55 = vmul.f32 %v5290_v12, %v5439_v44  ;;  %v6775_v44 = vld [vmem:[#allocation105_spill] sm:$0xff]  ;;  %v718_v35 = vmul.f32 %v5290_v12, %v6777_v9 }
 0x2da   : > { %v5814_v21 = vpop.permute.xlu1 %1934  ;;  %v1876_v26 = vadd.f32 %v1844_v2, %v1680_v11  ;;  %v6787_v9 = vld [vmem:[#allocation93_spill] sm:$0xff] }
 0x2db   : > { %v1111_v25 = vadd.f32 %v1079_v30, %v915_v23 }
 0x2dc   : > { %v2072_v62 = vadd.f32 %v2040_v17, %v1876_v26  ;;  %v1109_v26 = vadd.f32 %v1077_v0, %v913_v28  ;;  %v2057_v0 = vmul.f32 %v5372_v14, %v5769_v15 }
 0x2dd   : > { %1762 = vperm.xlu1 %3993, %v5760_v1   ;;  %v1307_v32 = vadd.f32 %v1275_v54, %v1111_v25  ;;  %v6776_v25 = vld [vmem:[#allocation53_spill] sm:$0xff] }
 0x2de   : > { %v5824_v58 = vpop.permute.xlu1 %1938  ;;  %v6778_v54 = vld [vmem:[#allocation25_spill] sm:$0xff] }
 0x2df   : > { %v4101_v40 = vpop.eup %4100  ;;  %v1503_v2 = vadd.f32 %v1471_v5, %v1307_v32  ;;  %v6779_v5 = vld [vmem:[#allocation148_spill] sm:$0xff] }
 0x2e0   : > { %v2440_v46 = vadd.f32 1.0, %v4101_v40 }
 0x2e1   : > { %1766 = vperm.xlu1 %3993, %v4321_v34   ;;  %v4103_v27 = vpop.eup %4102  ;;  %v1699_v40 = vadd.f32 %v1667_v53, %v1503_v2  ;;  %v6782_v2 = vld [vmem:[#allocation109_spill] sm:$0xff] }
 0x2e2   : > { %4106 = vrcp.f32 %v2440_v46  ;;  %v4105_v41 = vpop.eup %4104  ;;  %v2535_v11 = vmul.f32 %v4103_v27, %v5767_v6  ;;  %v1273_v6 = vmul.f32 %v5326_v52, %v6775_v44  ;;  %v1861_v27 = vmul.f32 %v5369_v19, %v5720_v29 }
 0x2e3   : > { %v2167_v50 = vpop.permute.xlu1 %2166  ;;  %v2423_v46 = vadd.f32 1.0, %v4105_v41  ;;  %v6781_v41 = vld [vmem:[#allocation79_spill] sm:$0xff]  ;;  %v1277_v22 = vmul.f32 %v5326_v52, %v6782_v2 }
 0x2e4   : > { %v5831_v31 = vadd.f32 %v2167_v50, %v2072_v62  ;;  %v1469_v50 = vmul.f32 %v5334_v61, %v5588_v38  ;;  %v882_v38 = vmul.f32 %v5300_v59, %v6778_v54  ;;  %v1078_v28 = vmul.f32 %v5310_v18, %v6781_v41  ;;  %v6790_v41 = vld [vmem:[#allocation88_spill] sm:$0xff] }
 0x2e5   : > { %3996 = vset.pattern.permute.xlu1 %v6642_v8 }
 0x2e6   : > { %v3621_v42 = vmul.f32 -1.442695, %v5831_v31  ;;  %2026 = vperm.xlu1 %3996, %v4322_v39  }
 0x2e8   : > { %4108 = vpow2.f32 %v3621_v42  ;;  %v1427_v16 = vpop.permute.xlu1 %1426  ;;  %v1305_v42 = vadd.f32 %v1273_v6, %v1109_v26  ;;  %v6785_v6 = vld [vmem:[#allocation102_spill] sm:$0xff] }
 0x2e9   : > { %4110 = vrcp.f32 %v2423_v46  ;;  %v1473_v29 = vmul.f32 %v5334_v61, %v1427_v16  ;;  %v2128_v46 = vld [vmem:[%s5062_s26 + $0xf8] sm:$0xff] }
 0x2ea   : > { %3997 = vset.pattern.permute.xlu1 %v6646_v10  ;;  %v1501_v3 = vadd.f32 %v1469_v50, %v1305_v42  ;;  %v2252_v42 = vpop.permute.xlu0 %2251 }
 0x2eb   : > { %2271 = vperm.xlu1 %3997, %v2125_v43   ;;  %v701_v43 = vmul.f32 %v5290_v12, %v6779_v5 }
 0x2ec   : > { %v4107_v13 = vpop.eup %4106 }
 0x2ed   : > { %v2536_v20 = vmul.f32 %v4107_v13, %v5797_v48  ;;  %v1811_v17 = vpop.permute.xlu1 %1810  ;;  %v917_v48 = vadd.f32 %v885_v60, %v721_v55  ;;  %v2110_v13 = vld [vmem:[%s5062_s26 + $0x68] sm:$0xff]  ;;  %v914_v55 = vadd.f32 %v882_v38, %v718_v35  ;;  %v1274_v60 = vmul.f32 %v5326_v52, %v6784_v47 }
 0x2ee   : > { %v1863_v49 = vmul.f32 %v5369_v19, %v1811_v17  ;;  %v1257_v35 = vmul.f32 %v5326_v52, %v6787_v9  ;;  %v6788_v38 = vld [vmem:[#allocation122_spill] sm:$0xff]  ;;  %v2612_v9 = vld [vmem:[%s5226_s14 + $0x98] sm:$0xff] }
 0x2ef   : > { %3998 = vset.pattern.permute.xlu1 %v6642_v8  ;;  %v2556_v23 = vpack.c.bf16 %v2536_v20, %v2535_v11  ;;  %v1081_v8 = vmul.f32 %v5310_v18, %v6776_v25  ;;  %v6786_v25 = vld [vmem:[#allocation152_spill] sm:$0xff]  ;;  %v1666_v5 = vmul.f32 %v5365_v37, %v6788_v38 }
 0x2f0   : > { %v5858_v62 = vadd.f32 %v1863_v49, %v1699_v40  ;;  %1958 = vperm.xlu1 %3998, %v5760_v1   ;;  %v1665_v1 = vmul.f32 %v5365_v37, %v5626_v51  ;;  %v6780_v51 = vld [vmem:[#allocation38_spill] sm:$0xff]  ;;  %v6783_v40 = vld [vmem:[#allocation37_spill] sm:$0xff] }
 0x2f1   : > { %v5865_v4 = vpop.permute.xlu1 %1814  ;;  %3725 = vmatprep.subr.bf16.mxu0 %v2556_v23  ;;  %3856 = vmatprep.subr.bf16.mxu1 %v2556_v23  ;;  %v1113_v57 = vadd.f32 %v1081_v8, %v917_v48  ;;  %v865_v53 = vmul.f32 %v5300_v59, %v6780_v51  ;;  %v1061_v49 = vmul.f32 %v5310_v18, %v6783_v40 }
 0x2f2   : > { %v4109_v30 = vpop.eup %4108  ;;  %v1110_v23 = vadd.f32 %v1078_v28, %v914_v55  ;;  %v1470_v48 = vmul.f32 %v5334_v61, %v6785_v6  ;;  %v705_v8 = vmul.f32 %v5290_v12, %v6786_v25  ;;  %v1453_v28 = vmul.f32 %v5334_v61, %v6790_v41 }
 0x2f3   : > { %v2424_v39 = vadd.f32 1.0, %v4109_v30  ;;  %v897_v11 = vadd.f32 %v865_v53, %v701_v43  ;;  %v1309_v17 = vadd.f32 %v1277_v22, %v1113_v57  ;;  %v1862_v22 = vmul.f32 %v5369_v19, %v5728_v36 }
 0x2f4   : > { %1962 = vperm.xlu1 %3998, %v4321_v34   ;;  %v1697_v34 = vadd.f32 %v1665_v1, %v1501_v3  ;;  %v2112_v1 = vld [vmem:[%s5062_s26 + $0x78] sm:$0xff]  ;;  %v1306_v54 = vadd.f32 %v1274_v60, %v1110_v23  ;;  %v6789_v3 = vld [vmem:[#allocation42_spill] sm:$0xff] }
 0x2f5   : > { %4112 = vrcp.f32 %v2424_v39  ;;  %v5879_v32 = vpop.permute.xlu1 %1750  ;;  %v1505_v44 = vadd.f32 %v1473_v29, %v1309_v17  ;;  %v1093_v50 = vadd.f32 %v1061_v49, %v897_v11  ;;  %v2610_v29 = vld [vmem:[%s5226_s14 + $0x88] sm:$0xff]  ;;  %v1649_v11 = vmul.f32 %v5365_v37, %v5677_v63  ;;  %v6791_v17 = vld [vmem:[#allocation41_spill] sm:$0xff] }
 0x2f6   : > { %v1893_v20 = vadd.f32 %v1861_v27, %v1697_v34  ;;  %v869_v27 = vmul.f32 %v5300_v59, %v6789_v3  ;;  %v1065_v40 = vmul.f32 %v5310_v18, %v6791_v17  ;;  %v2594_v60 = vld [vmem:[%s5226_s14 + $0x8] sm:$0xff] }
 0x2f7   : > { %v1289_v2 = vadd.f32 %v1257_v35, %v1093_v50  ;;  %v2041_v50 = vmul.f32 %v5372_v14, %v5814_v21 }
 0x2f8   : > { %3999 = vset.pattern.permute.xlu1 %v6646_v10  ;;  %v2089_v15 = vadd.f32 %v2057_v0, %v1893_v20  ;;  %v4111_v10 = vpop.eup %4110  ;;  %v901_v34 = vadd.f32 %v869_v27, %v705_v8  ;;  %v6796_v8 = vld [vmem:[#allocation66_spill] sm:$0xff]  ;;  %v6798_v27 = vld [vmem:[#allocation63_spill] sm:$0xff] }
 0x2f9   : > { %2196 = vperm.xlu1 %3999, %v2110_v13   ;;  %v2519_v53 = vmul.f32 %v4111_v10, %v5809_v45  ;;  %v1502_v13 = vadd.f32 %v1470_v48, %v1306_v54  ;;  %v2058_v45 = vmul.f32 %v5372_v14, %v5784_v7  ;;  %v1485_v36 = vadd.f32 %v1453_v28, %v1289_v2  ;;  %v6793_v7 = vld [vmem:[#allocation12_spill] sm:$0xff]  ;;  %v6799_v2 = vld [vmem:[#allocation121_spill] sm:$0xff] }
 0x2fa   : > { %v1623_v26 = vpop.permute.xlu1 %1622  ;;  %v5909_v43 = vadd.f32 %v2252_v42, %v2089_v15  ;;  %v1097_v47 = vadd.f32 %v1065_v40, %v901_v34  ;;  %v702_v15 = vmul.f32 %v5290_v12, %v6793_v7  ;;  %v6795_v10 = vld [vmem:[#allocation96_spill] sm:$0xff]  ;;  %v1062_v42 = vmul.f32 %v5310_v18, %v6796_v8  ;;  %v2172_v34 = vpop.permute.xlu0 %2171  ;;  %v2614_v40 = vld [vmem:[%s5226_s14 + $0xa8] sm:$0xff] }
 0x2fb   : > { %v1669_v16 = vmul.f32 %v5365_v37, %v1623_v26  ;;  %v1698_v55 = vadd.f32 %v1666_v5, %v1502_v13  ;;  %v6792_v26 = vld [vmem:[#allocation136_spill] sm:$0xff]  ;;  %v1261_v6 = vmul.f32 %v5326_v52, %v6795_v10  ;;  %v2598_v7 = vld [vmem:[%s5226_s14 + $0x28] sm:$0xff] }
 0x2fc   : > { %v1845_v63 = vmul.f32 %v5369_v19, %v6792_v26  ;;  %v2596_v13 = vld [vmem:[%s5226_s14 + $0x18] sm:$0xff] }
 0x2fd   : > { %v5900_v30 = vadd.f32 %v1669_v16, %v1505_v44  ;;  %2286 = vperm.xlu1 %3999, %v2128_v46   ;;  %v1894_v49 = vadd.f32 %v1862_v22, %v1698_v55  ;;  %v1681_v46 = vadd.f32 %v1649_v11, %v1485_v36  ;;  %v6794_v44 = vld [vmem:[#allocation13_spill] sm:$0xff]  ;;  %v1293_v35 = vadd.f32 %v1261_v6, %v1097_v47 }
 0x2fe   : > { %v866_v16 = vmul.f32 %v5300_v59, %v6794_v44  ;;  %v1454_v22 = vmul.f32 %v5334_v61, %v6799_v2  ;;  %v6801_v44 = vld [vmem:[#allocation56_spill] sm:$0xff] }
 0x2ff   : > { %v4113_v39 = vpop.eup %4112  ;;  %v5911_v57 = vpop.permute.xlu1 %2006  ;;  %v2090_v23 = vadd.f32 %v2058_v45, %v1894_v49  ;;  %v1877_v54 = vadd.f32 %v1845_v63, %v1681_v46  ;;  %v1846_v49 = vmul.f32 %v5369_v19, %v5740_v56  ;;  %v2042_v46 = vmul.f32 %v5372_v14, %v5824_v58  ;;  %v4005_v2 = vld [vmem:[%s5991_s16 + $0x94] ss:$8 sps:$4 sm:$0xff]  }
 0x300   : > { %v2520_v51 = vmul.f32 %v4113_v39, %v5831_v31  ;;  %v3638_v31 = vmul.f32 -1.442695, %v5909_v43  ;;  %v898_v5 = vadd.f32 %v866_v16, %v702_v15  ;;  %v887_v16 = vmul.f32 %v5300_v59, %v6801_v44  ;;  %3049 = vmatprep.mubr.bf16.mxu1 %v4005_v2 }
 0x301   : > { %2206 = vperm.xlu1 %3999, %v2112_v1   ;;  %v6797_v1 = vld [vmem:[#allocation92_spill] sm:$0xff]  ;;  %v2073_v3 = vadd.f32 %v2041_v50, %v1877_v54  ;;  %v6802_v50 = vld [vmem:[#allocation55_spill] sm:$0xff] }
 0x302   : > { %v2548_v0 = vpack.c.bf16 %v2520_v51, %v2519_v53  ;;  %4114 = vpow2.f32 %v3638_v31  ;;  %v1457_v39 = vmul.f32 %v5334_v61, %v6797_v1  ;;  %v1258_v51 = vmul.f32 %v5326_v52, %v6798_v27  ;;  %v6800_v31 = vld [vmem:[#allocation124_spill] sm:$0xff]  ;;  %v2618_v27 = vld [vmem:[%s5226_s14 + $0xc8] sm:$0xff] }
 0x303   : > { %v5927_v20 = vpop.permute.xlu1 %2010  ;;  %v1094_v53 = vadd.f32 %v1062_v42, %v898_v5  ;;  %v5958_v55 = vadd.f32 %v2172_v34, %v2073_v3  ;;  %v1650_v45 = vmul.f32 %v5365_v37, %v6800_v31  ;;  %v1083_v58 = vmul.f32 %v5310_v18, %v6802_v50 }
 0x304   : > { %3726 = vmatpush3.bf16.msra.mxu0 %v2548_v0  ;;  %3864 = vmatpush3.bf16.msra.mxu1 %v2548_v0  ;;  %v1489_v41 = vadd.f32 %v1457_v39, %v1293_v35  ;;  %v6803_v35 = vld [vmem:[#allocation110_spill] sm:$0xff] }
 0x305   : > { %2712 = vperm.xlu1 %3999, %v2610_v29   ;;  %v1290_v11 = vadd.f32 %v1258_v51, %v1094_v53  ;;  %v3622_v26 = vmul.f32 -1.442695, %v5958_v55  ;;  %v1279_v54 = vmul.f32 %v5326_v52, %v6803_v35 }
 0x307   : > { %v1486_v36 = vadd.f32 %v1454_v22, %v1290_v11 }
 0x308   : > { %v2257_v48 = vpop.permute.xlu1 %2256 }
 0x309   : > { %v5942_v25 = vadd.f32 %v2257_v48, %v2090_v23  ;;  %2632 = vperm.xlu1 %3999, %v2594_v60   ;;  %v723_v60 = vmul.f32 %v5290_v12, %v5460_v33  ;;  %v1682_v63 = vadd.f32 %v1650_v45, %v1486_v36  ;;  %v2616_v48 = vld [vmem:[%s5226_s14 + $0xb8] sm:$0xff] }
 0x30a   : > { %v2620_v45 = vld [vmem:[%s5226_s14 + $0xd8] sm:$0xff] }
 0x30b   : > { %v3639_v38 = vmul.f32 -1.442695, %v5942_v25  ;;  %v1878_v56 = vadd.f32 %v1846_v49, %v1682_v63  ;;  %v919_v33 = vadd.f32 %v887_v16, %v723_v60  ;;  %v6806_v63 = vld [vmem:[#allocation150_spill] sm:$0xff]  ;;  %v6808_v16 = vld [vmem:[#allocation81_spill] sm:$0xff] }
 0x30c   : > { %v4115_v29 = vpop.eup %4114 }
 0x30d   : > { %4116 = vpow2.f32 %v3639_v38  ;;  %2722 = vperm.xlu1 %3999, %v2612_v9   ;;  %v1559_v21 = vpop.permute.xlu1 %1558  ;;  %v2441_v47 = vadd.f32 1.0, %v4115_v29  ;;  %v2074_v6 = vadd.f32 %v2042_v46, %v1878_v56  ;;  %v1115_v1 = vadd.f32 %v1083_v58, %v919_v33  ;;  %v2600_v9 = vld [vmem:[%s5226_s14 + $0x38] sm:$0xff] }
 0x30e   : > { %v1653_v28 = vmul.f32 %v5365_v37, %v1559_v21  ;;  %v703_v46 = vmul.f32 %v5290_v12, %v6806_v63  ;;  %v1080_v56 = vmul.f32 %v5310_v18, %v6808_v16  ;;  %v1651_v63 = vmul.f32 %v5365_v37, %v5804_v24  ;;  %v6815_v16 = vld [vmem:[#allocation137_spill] sm:$0xff]  ;;  %v6816_v24 = vld [vmem:[#allocation14_spill] sm:$0xff] }
 0x30f   : > { %4118 = vrcp.f32 %v2441_v47  ;;  %v1311_v5 = vadd.f32 %v1279_v54, %v1115_v1  ;;  %v6804_v47 = vld [vmem:[#allocation26_spill] sm:$0xff] }
 0x310   : > { %v5956_v0 = vadd.f32 %v1653_v28, %v1489_v41  ;;  %4120 = vpow2.f32 %v3622_v26  ;;  %v4002_v41 = vld [vmem:[%s5991_s16 + $0x4] ss:$8 sps:$4 sm:$0xff]   ;;  %v720_v60 = vmul.f32 %v5290_v12, %v6804_v47  ;;  %v6805_v26 = vld [vmem:[#allocation27_spill] sm:$0xff]  ;;  %v1864_v47 = vmul.f32 %v5369_v19, %v5865_v4  ;;  %v2608_v4 = vld [vmem:[%s5226_s14 + $0x78] sm:$0xff] }
 0x311   : > { %2642 = vperm.xlu1 %3999, %v2596_v13   ;;  %v2602_v13 = vld [vmem:[%s5226_s14 + $0x48] sm:$0xff]  ;;  %2977 = vmatprep.mubr.bf16.mxu0 %v4002_v41 }
 0x312   : > { %v5962_v17 = vpop.permute.xlu1 %1942  ;;  %v6810_v1 = vld [vmem:[#allocation78_spill] sm:$0xff] }
 0x315   : > { %2732 = vperm.xlu1 %3999, %v2614_v40  }
 0x316   : > { %v5972_v23 = vpop.permute.xlu1 %1946 }
 0x317   : > { %v4117_v15 = vpop.eup %4116 }
 0x318   : > { %v2442_v10 = vadd.f32 1.0, %v4117_v15  ;;  %v6807_v15 = vld [vmem:[#allocation40_spill] sm:$0xff] }
 0x319   : > { %2652 = vperm.xlu1 %3999, %v2598_v7   ;;  %v4119_v21 = vpop.eup %4118  ;;  %v867_v44 = vmul.f32 %v5300_v59, %v6807_v15 }
 0x31a   : > { %4122 = vrcp.f32 %v2442_v10  ;;  %v4121_v51 = vpop.eup %4120  ;;  %v2537_v29 = vmul.f32 %v4119_v21, %v5909_v43  ;;  %v884_v43 = vmul.f32 %v5300_v59, %v6805_v26  ;;  %v2059_v10 = vmul.f32 %v5372_v14, %v5911_v57  ;;  %v2624_v26 = vld [vmem:[%s5226_s14 + $0xf8] sm:$0xff] }
 0x31b   : > { %v2177_v8 = vpop.permute.xlu1 %2176  ;;  %v2425_v11 = vadd.f32 1.0, %v4121_v51  ;;  %v2606_v51 = vld [vmem:[%s5226_s14 + $0x68] sm:$0xff] }
 0x31c   : > { %v5980_v42 = vadd.f32 %v2177_v8, %v2074_v6  ;;  %v916_v33 = vadd.f32 %v884_v43, %v720_v60  ;;  %v899_v6 = vadd.f32 %v867_v44, %v703_v46  ;;  %v2622_v8 = vld [vmem:[%s5226_s14 + $0xe8] sm:$0xff]  ;;  %v2091_v35 = vadd.f32 %v2059_v10, %v5858_v62 }
 0x31d   : > { %2742 = vperm.xlu1 %3999, %v2616_v48   ;;  %v6809_v48 = vld [vmem:[#allocation39_spill] sm:$0xff] }
 0x31e   : > { %v3623_v39 = vmul.f32 -1.442695, %v5980_v42  ;;  %v1063_v50 = vmul.f32 %v5310_v18, %v6809_v48  ;;  %v6817_v48 = vld [vmem:[#allocation15_spill] sm:$0xff] }
 0x320   : > { %4124 = vpow2.f32 %v3623_v39  ;;  %v1435_v38 = vpop.permute.xlu1 %1434  ;;  %v1276_v39 = vmul.f32 %v5326_v52, %v6810_v1  ;;  %v6818_v1 = vld [vmem:[#allocation68_spill] sm:$0xff] }
 0x321   : > { %v1475_v3 = vmul.f32 %v5334_v61, %v1435_v38  ;;  %2662 = vperm.xlu1 %3999, %v2600_v9   ;;  %4126 = vrcp.f32 %v2425_v11  ;;  %v1112_v9 = vadd.f32 %v1080_v56, %v916_v33  ;;  %v1847_v56 = vmul.f32 %v5369_v19, %v6815_v16 }
 0x323   : > { %v1507_v53 = vadd.f32 %v1475_v3, %v1311_v5  ;;  %v6811_v5 = vld [vmem:[#allocation104_spill] sm:$0xff]  ;;  %v1095_v3 = vadd.f32 %v1063_v50, %v899_v6  ;;  %v1308_v2 = vadd.f32 %v1276_v39, %v1112_v9  ;;  %v704_v6 = vmul.f32 %v5290_v12, %v6816_v24 }
 0x324   : > { %v4123_v28 = vpop.eup %4122  ;;  %v1472_v57 = vmul.f32 %v5334_v61, %v6811_v5  ;;  %v1064_v39 = vmul.f32 %v5310_v18, %v6818_v1 }
 0x325   : > { %v2538_v22 = vmul.f32 %v4123_v28, %v5942_v25  ;;  %2752 = vperm.xlu1 %3999, %v2618_v27   ;;  %v5998_v34 = vpop.permute.xlu1 %1818  ;;  %v2604_v25 = vld [vmem:[%s5226_s14 + $0x58] sm:$0xff]  ;;  %v2262_v27 = vpop.permute.xlu0 %2261  ;;  %v6812_v28 = vld [vmem:[#allocation95_spill] sm:$0xff] }
 0x327   : > { %v2557_v31 = vpack.c.bf16 %v2538_v22, %v2537_v29  ;;  %v6813_v22 = vld [vmem:[#allocation126_spill] sm:$0xff]  ;;  %v6035_v29 = vadd.f32 %v2262_v27, %v2091_v35 }
 0x328   : > { %v1668_v62 = vmul.f32 %v5365_v37, %v6813_v22  ;;  %v6821_v22 = vld [vmem:[#allocation128_spill] sm:$0xff] }
 0x329   : > { %2672 = vperm.xlu1 %3999, %v2602_v13   ;;  %v6002_v40 = vpop.permute.xlu1 %1822  ;;  %3727 = vmatprep.subr.bf16.mxu0 %v2557_v31  ;;  %v1259_v13 = vmul.f32 %v5326_v52, %v6812_v28 }
 0x32a   : > { %v4125_v36 = vpop.eup %4124  ;;  %3857 = vmatprep.subr.bf16.mxu1 %v2557_v31 }
 0x32b   : > { %v2426_v49 = vadd.f32 1.0, %v4125_v36  ;;  %v4127_v38 = vpop.eup %4126 }
 0x32d   : > { %4128 = vrcp.f32 %v2426_v49  ;;  %2762 = vperm.xlu1 %3999, %v2620_v45   ;;  %v6011_v7 = vpop.permute.xlu1 %1758  ;;  %v6814_v45 = vld [vmem:[#allocation90_spill] sm:$0xff]  ;;  %v1504_v49 = vadd.f32 %v1472_v57, %v1308_v2  ;;  %v6819_v57 = vld [vmem:[#allocation65_spill] sm:$0xff] }
 0x32e   : > { %v1455_v36 = vmul.f32 %v5334_v61, %v6814_v45 }
 0x32f   : > { %v1700_v43 = vadd.f32 %v1668_v62, %v1504_v49  ;;  %v1652_v62 = vmul.f32 %v5365_v37, %v6821_v22 }
 0x331   : > { %2682 = vperm.xlu1 %3999, %v2604_v25   ;;  %v1291_v25 = vadd.f32 %v1259_v13, %v1095_v3  ;;  %v1896_v44 = vadd.f32 %v1864_v47, %v1700_v43  ;;  %v1260_v3 = vmul.f32 %v5326_v52, %v6819_v57  ;;  %v1848_v47 = vmul.f32 %v5369_v19, %v5879_v32 }
 0x332   : > { %v1631_v58 = vpop.permute.xlu1 %1630 }
 0x333   : > { %v1671_v54 = vmul.f32 %v5365_v37, %v1631_v58  ;;  %v1487_v15 = vadd.f32 %v1455_v36, %v1291_v25  ;;  %v2043_v58 = vmul.f32 %v5372_v14, %v5962_v17  ;;  %v2182_v17 = vpop.permute.xlu0 %2181  ;;  %v6823_v36 = vld [vmem:[#allocation29_spill] sm:$0xff] }
 0x334   : > { %v886_v49 = vmul.f32 %v5300_v59, %v6823_v36  ;;  %v6829_v36 = vld [vmem:[#allocation44_spill] sm:$0xff] }
 0x335   : > { %v6028_v21 = vadd.f32 %v1671_v54, %v1507_v53  ;;  %2772 = vperm.xlu1 %3999, %v2622_v8   ;;  %v2521_v53 = vmul.f32 %v4127_v38, %v5958_v55  ;;  %v2060_v55 = vmul.f32 %v5372_v14, %v5927_v20  ;;  %v1683_v10 = vadd.f32 %v1651_v63, %v1487_v15 }
 0x336   : > { %v868_v20 = vmul.f32 %v5300_v59, %v6817_v48 }
 0x337   : > { %v4129_v41 = vpop.eup %4128  ;;  %v6037_v11 = vpop.permute.xlu1 %2014  ;;  %v2092_v33 = vadd.f32 %v2060_v55, %v1896_v44  ;;  %v1879_v9 = vadd.f32 %v1847_v56, %v1683_v10  ;;  %v2044_v55 = vmul.f32 %v5372_v14, %v5972_v23  ;;  %v6825_v10 = vld [vmem:[#allocation80_spill] sm:$0xff] }
 0x338   : > { %v2522_v31 = vmul.f32 %v4129_v41, %v5980_v42  ;;  %v3640_v42 = vmul.f32 -1.442695, %v6035_v29  ;;  %v900_v54 = vadd.f32 %v868_v20, %v704_v6  ;;  %v1278_v32 = vmul.f32 %v5326_v52, %v6825_v10  ;;  %v6826_v6 = vld [vmem:[#allocation106_spill] sm:$0xff] }
 0x339   : > { %2692 = vperm.xlu1 %3999, %v2606_v51   ;;  %v2075_v38 = vadd.f32 %v2043_v58, %v1879_v9  ;;  %v6820_v51 = vld [vmem:[#allocation123_spill] sm:$0xff]  ;;  %v1474_v48 = vmul.f32 %v5334_v61, %v6826_v6  ;;  %v6827_v58 = vld [vmem:[#allocation129_spill] sm:$0xff]  ;;  %v6834_v6 = vld [vmem:[#allocation18_spill] sm:$0xff] }
 0x33a   : > { %v2549_v60 = vpack.c.bf16 %v2522_v31, %v2521_v53  ;;  %4130 = vpow2.f32 %v3640_v42  ;;  %v1096_v27 = vadd.f32 %v1064_v39, %v900_v54  ;;  %v1456_v41 = vmul.f32 %v5334_v61, %v6820_v51  ;;  %v6822_v53 = vld [vmem:[#allocation28_spill] sm:$0xff] }
 0x33b   : > { %v6051_v46 = vpop.permute.xlu1 %2018  ;;  %v6070_v13 = vadd.f32 %v2182_v17, %v2075_v38  ;;  %v722_v45 = vmul.f32 %v5290_v12, %v6822_v53  ;;  %v1670_v1 = vmul.f32 %v5365_v37, %v6827_v58 }
 0x33c   : > { %3728 = vmatpush3.bf16.msra.mxu0 %v2549_v60  ;;  %3865 = vmatpush3.bf16.msra.mxu1 %v2549_v60  ;;  %v1292_v2 = vadd.f32 %v1260_v3, %v1096_v27  ;;  %v2062_v57 = vmul.f32 %v5372_v14, %v6051_v46 }
 0x33d   : > { %2782 = vperm.xlu1 %3999, %v2624_v26   ;;  %v6824_v26 = vld [vmem:[#allocation83_spill] sm:$0xff]  ;;  %v3624_v63 = vmul.f32 -1.442695, %v6070_v13 }
 0x33e   : > { %v1488_v25 = vadd.f32 %v1456_v41, %v1292_v2  ;;  %v1082_v43 = vmul.f32 %v5310_v18, %v6824_v26  ;;  %v6831_v26 = vld [vmem:[#allocation17_spill] sm:$0xff] }
 0x340   : > { %v2267_v50 = vpop.permute.xlu1 %2266  ;;  %v1684_v42 = vadd.f32 %v1652_v62, %v1488_v25  ;;  %v6828_v62 = vld [vmem:[#allocation153_spill] sm:$0xff]  ;;  %v2277_v25 = vpop.permute.xlu0 %2276 }
 0x341   : > { %v2316_v8 = vadd.f32 %v2267_v50, %v2092_v33  ;;  %2702 = vperm.xlu1 %3999, %v2608_v4   ;;  %v918_v4 = vadd.f32 %v886_v49, %v722_v45  ;;  %v707_v53 = vmul.f32 %v5290_v12, %v6828_v62  ;;  %v871_v49 = vmul.f32 %v5300_v59, %v6829_v36 }
 0x342   : > { %v1880_v16 = vadd.f32 %v1848_v47, %v1684_v42  ;;  %v6830_v47 = vld [vmem:[#allocation16_spill] sm:$0xff]  ;;  %v1865_v42 = vmul.f32 %v5369_v19, %v5998_v34  ;;  %v6835_v34 = vld [vmem:[#allocation19_spill] sm:$0xff] }
 0x343   : > { %v3641_v35 = vmul.f32 -1.442695, %v2316_v8  ;;  %v1114_v33 = vadd.f32 %v1082_v43, %v918_v4  ;;  %v870_v43 = vmul.f32 %v5300_v59, %v6831_v26 }
 0x344   : > { %v4131_v28 = vpop.eup %4130  ;;  %v2076_v24 = vadd.f32 %v2044_v55, %v1880_v16  ;;  %v6833_v16 = vld [vmem:[#allocation70_spill] sm:$0xff] }
 0x345   : > { %4132 = vpow2.f32 %v3641_v35  ;;  %v6064_v5 = vpop.permute.xlu1 %1566  ;;  %v2443_v60 = vadd.f32 1.0, %v4131_v28  ;;  %v1310_v23 = vadd.f32 %v1278_v32, %v1114_v33  ;;  %v1866_v35 = vmul.f32 %v5369_v19, %v6002_v40 }
 0x346   : > { %v2061_v32 = vmul.f32 %v5372_v14, %v6037_v11  ;;  %v1897_v11 = vadd.f32 %v1865_v42, %v5900_v30  ;;  %v6841_v30 = vld [vmem:[#allocation84_spill] sm:$0xff] }
 0x347   : > { %4134 = vrcp.f32 %v2443_v60  ;;  %v1506_v9 = vadd.f32 %v1474_v48, %v1310_v23  ;;  %v706_v60 = vmul.f32 %v5290_v12, %v6830_v47  ;;  %v708_v48 = vmul.f32 %v5290_v12, %v6834_v6  ;;  %v6836_v23 = vld [vmem:[#allocation30_spill] sm:$0xff] }
 0x348   : > { %4136 = vpow2.f32 %v3624_v63  ;;  %v903_v63 = vadd.f32 %v871_v49, %v707_v53  ;;  %v724_v58 = vmul.f32 %v5290_v12, %v6836_v23  ;;  %v1084_v62 = vmul.f32 %v5310_v18, %v6841_v30  ;;  %v6848_v6 = vld [vmem:[#allocation130_spill] sm:$0xff] }
 0x349   : > { %v1702_v38 = vadd.f32 %v1670_v1, %v1506_v9  ;;  %v902_v10 = vadd.f32 %v870_v43, %v706_v60  ;;  %v6843_v60 = vld [vmem:[#allocation71_spill] sm:$0xff]  ;;  %v1655_v43 = vmul.f32 %v5365_v37, %v6064_v5 }
 0x34a   : > { %v6074_v31 = vpop.permute.xlu1 %1950 }
 0x34b   : > { %v1898_v51 = vadd.f32 %v1866_v35, %v1702_v38  ;;  %v2045_v35 = vmul.f32 %v5372_v14, %v6074_v31  ;;  %v6842_v31 = vld [vmem:[#allocation94_spill] sm:$0xff] }
 0x34d   : > { %v2094_v28 = vadd.f32 %v2062_v57, %v1898_v51  ;;  %v6838_v57 = vld [vmem:[#allocation31_spill] sm:$0xff] }
 0x34e   : > { %v6087_v15 = vpop.permute.xlu1 %1954 }
 0x34f   : > { %v4133_v44 = vpop.eup %4132 }
 0x350   : > { %v2444_v56 = vadd.f32 1.0, %v4133_v44  ;;  %v6832_v44 = vld [vmem:[#allocation43_spill] sm:$0xff] }
 0x351   : > { %v4135_v3 = vpop.eup %4134  ;;  %v1067_v4 = vmul.f32 %v5310_v18, %v6832_v44 }
 0x352   : > { %4138 = vrcp.f32 %v2444_v56  ;;  %v4137_v27 = vpop.eup %4136  ;;  %v2539_v22 = vmul.f32 %v4135_v3, %v6035_v29  ;;  %v1066_v56 = vmul.f32 %v5310_v18, %v6833_v16  ;;  %v888_v3 = vmul.f32 %v5300_v59, %v6838_v57 }
 0x353   : > { %v2187_v20 = vpop.permute.xlu1 %2186  ;;  %v2427_v40 = vadd.f32 1.0, %v4137_v27  ;;  %v1099_v1 = vadd.f32 %v1067_v4, %v903_v63  ;;  %v6839_v27 = vld [vmem:[#allocation67_spill] sm:$0xff]  ;;  %v6844_v63 = vld [vmem:[#allocation82_spill] sm:$0xff]  ;;  %v6846_v4 = vld [vmem:[#allocation141_spill] sm:$0xff] }
 0x354   : > { %v6093_v50 = vadd.f32 %v2187_v20, %v2076_v24  ;;  %v872_v20 = vmul.f32 %v5300_v59, %v6835_v34  ;;  %v1262_v51 = vmul.f32 %v5326_v52, %v6839_v27  ;;  %v920_v47 = vadd.f32 %v888_v3, %v724_v58 }
 0x355   : > { %v1280_v42 = vmul.f32 %v5326_v52, %v6844_v63  ;;  %v1850_v3 = vmul.f32 %v5369_v19, %v6011_v7 }
 0x356   : > { %v3625_v39 = vmul.f32 -1.442695, %v6093_v50  ;;  %v904_v59 = vadd.f32 %v872_v20, %v708_v48  ;;  %v1654_v48 = vmul.f32 %v5365_v37, %v6848_v6 }
 0x358   : > { %4140 = vpow2.f32 %v3625_v39  ;;  %v1827_v54 = vpop.permute.xlu1 %1826  ;;  %v6837_v39 = vld [vmem:[#allocation138_spill] sm:$0xff] }
 0x359   : > { %4142 = vrcp.f32 %v2427_v40  ;;  %v1849_v9 = vmul.f32 %v5369_v19, %v6837_v39  ;;  %v1867_v38 = vmul.f32 %v5369_v19, %v1827_v54  ;;  %v1459_v54 = vmul.f32 %v5334_v61, %v6842_v31  ;;  %v6851_v31 = vld [vmem:[#allocation127_spill] sm:$0xff] }
 0x35a   : > { %v1460_v7 = vmul.f32 %v5334_v61, %v6851_v31 }
 0x35b   : > { %v1899_v49 = vadd.f32 %v1867_v38, %v6028_v21  ;;  %v2063_v21 = vmul.f32 %v5372_v14, %v6846_v4 }
 0x35c   : > { %v4139_v41 = vpop.eup %4138  ;;  %v6102_v17 = vpop.permute.xlu1 %1762 }
 0x35d   : > { %v2540_v2 = vmul.f32 %v4139_v41, %v2316_v8  ;;  %v6115_v8 = vadd.f32 %v2277_v25, %v2094_v28  ;;  %v1098_v41 = vadd.f32 %v1066_v56, %v902_v10  ;;  %v6840_v28 = vld [vmem:[#allocation97_spill] sm:$0xff]  ;;  %v1116_v56 = vadd.f32 %v1084_v62, %v920_v47  ;;  %v6847_v10 = vld [vmem:[#allocation108_spill] sm:$0xff] }
 0x35e   : > { %v1263_v12 = vmul.f32 %v5326_v52, %v6840_v28  ;;  %v1851_v5 = vmul.f32 %v5369_v19, %v6102_v17  ;;  %v2095_v20 = vadd.f32 %v2063_v21, %v1899_v49  ;;  %v6853_v49 = vld [vmem:[#allocation132_spill] sm:$0xff] }
 0x35f   : > { %v2558_v45 = vpack.c.bf16 %v2540_v2, %v2539_v22  ;;  %v3643_v33 = vmul.f32 -1.442695, %v6115_v8  ;;  %v1881_v2 = vadd.f32 %v1849_v9, %v5956_v0  ;;  %v2093_v22 = vadd.f32 %v2061_v32, %v1897_v11  ;;  %v6849_v11 = vld [vmem:[#allocation69_spill] sm:$0xff] }
 0x360   : > { %v6109_v46 = vpop.permute.xlu1 %1766  ;;  %v1295_v53 = vadd.f32 %v1263_v12, %v1099_v1  ;;  %v1068_v0 = vmul.f32 %v5310_v18, %v6843_v60  ;;  %v1294_v26 = vadd.f32 %v1262_v51, %v1098_v41  ;;  %v1476_v18 = vmul.f32 %v5334_v61, %v6847_v10  ;;  %v6850_v51 = vld [vmem:[#allocation131_spill] sm:$0xff] }
 0x361   : > { %3729 = vmatprep.subr.bf16.mxu0 %v2558_v45  ;;  %3858 = vmatprep.subr.bf16.mxu1 %v2558_v45  ;;  %v2192_v45 = vpop.permute.xlu0 %2191  ;;  %v2077_v36 = vadd.f32 %v2045_v35, %v1881_v2  ;;  %v1264_v35 = vmul.f32 %v5326_v52, %v6849_v11  ;;  %v1312_v27 = vadd.f32 %v1280_v42, %v1116_v56 }
 0x362   : > { %v4141_v29 = vpop.eup %4140  ;;  %v1491_v32 = vadd.f32 %v1459_v54, %v1295_v53  ;;  %v1100_v17 = vadd.f32 %v1068_v0, %v904_v59  ;;  %v1672_v41 = vmul.f32 %v5365_v37, %v6850_v51  ;;  %v6852_v53 = vld [vmem:[#allocation140_spill] sm:$0xff]  ;;  %v1656_v47 = vmul.f32 %v5365_v37, %v6853_v49 }
 0x363   : > { %v2428_v55 = vadd.f32 1.0, %v4141_v29  ;;  %v4143_v29 = vpop.eup %4142  ;;  %v6171_v34 = vadd.f32 %v2192_v45, %v2077_v36  ;;  %v1508_v62 = vadd.f32 %v1476_v18, %v1312_v27  ;;  %v4010_v49 = vld [vmem:[%s5991_s16 + $0x10] ss:$8 sps:$4 sm:$0xff]  }
 0x364   : > { %v1687_v58 = vadd.f32 %v1655_v43, %v1491_v32  ;;  %v2523_v9 = vmul.f32 %v4143_v29, %v6070_v13  ;;  %v2046_v13 = vmul.f32 %v5372_v14, %v6087_v15  ;;  %v1296_v45 = vadd.f32 %v1264_v35, %v1100_v17 }
 0x365   : > { %4144 = vrcp.f32 %v2428_v55  ;;  %v6126_v24 = vpop.permute.xlu1 %2026  ;;  %v6845_v55 = vld [vmem:[#allocation125_spill] sm:$0xff]  ;;  %v2282_v57 = vpop.permute.xlu0 %2281  ;;  %v1704_v36 = vadd.f32 %v1672_v41, %v1508_v62 }
 0x366   : > { %4146 = vpow2.f32 %v3643_v33  ;;  %v1458_v44 = vmul.f32 %v5334_v61, %v6845_v55  ;;  %v1883_v28 = vadd.f32 %v1851_v5, %v1687_v58  ;;  %v6185_v52 = vadd.f32 %v2282_v57, %v2095_v20 }
 0x367   : > { %v2064_v61 = vmul.f32 %v5372_v14, %v6126_v24  ;;  %v1492_v43 = vadd.f32 %v1460_v7, %v1296_v45  ;;  %v4003_v45 = vld [vmem:[%s5991_s16 + $0x90] ss:$8 sps:$4 sm:$0xff]  }
 0x368   : > { %v1490_v38 = vadd.f32 %v1458_v44, %v1294_v26  ;;  %v3644_v0 = vmul.f32 -1.442695, %v6185_v52  ;;  %v1852_v44 = vmul.f32 %v5369_v19, %v6109_v46 }
 0x369   : > { %v2202_v60 = vpop.permute.xlu0 %2201  ;;  %v1688_v37 = vadd.f32 %v1656_v47, %v1492_v43  ;;  %v4011_v47 = vld [vmem:[%s5991_s16 + $0xa0] ss:$8 sps:$4 sm:$0xff]   ;;  %v4020_v43 = vld [vmem:[%s5991_s16 + $0xc4] ss:$8 sps:$4 sm:$0xff]  }
 0x36a   : > { %v2272_v40 = vpop.permute.xlu1 %2271  ;;  %v1686_v2 = vadd.f32 %v1654_v48, %v1490_v38 }
 0x36b   : > { %v6152_v25 = vadd.f32 %v2272_v40, %v2093_v22  ;;  %v3626_v22 = vmul.f32 -1.442695, %v6171_v34  ;;  %v1868_v40 = vmul.f32 %v5369_v19, %v6852_v53  ;;  %v1884_v32 = vadd.f32 %v1852_v44, %v1688_v37  ;;  %v4028_v44 = vld [vmem:[%s5991_s16 + $0x40] ss:$8 sps:$4 sm:$0xff]   ;;  %v4030_v37 = vld [vmem:[%s5991_s16 + $0x54] ss:$8 sps:$4 sm:$0xff]  }
 0x36c   : > { %v1882_v59 = vadd.f32 %v1850_v3, %v1686_v2 }
 0x36d   : > { %v3642_v16 = vmul.f32 -1.442695, %v6152_v25  ;;  %v1900_v55 = vadd.f32 %v1868_v40, %v1704_v36  ;;  %v4008_v36 = vld [vmem:[%s5991_s16 + $0xa4] ss:$8 sps:$4 sm:$0xff]  }
 0x36e   : > { %v2078_v26 = vadd.f32 %v2046_v13, %v1882_v59  ;;  %v4000_v59 = vld [vmem:[%s5991_s16] ss:$8 sps:$4 sm:$0xff]  }
 0x36f   : > { %v4145_v33 = vpop.eup %4144  ;;  %4148 = vpow2.f32 %v3642_v16  ;;  %v1959_v23 = vpop.permute.xlu1 %1958  ;;  %v2096_v10 = vadd.f32 %v2064_v61, %v1900_v55  ;;  %v4017_v61 = vld [vmem:[%s5991_s16 + $0xb0] ss:$8 sps:$4 sm:$0xff]   ;;  %v4026_v55 = vld [vmem:[%s5991_s16 + $0xd4] ss:$8 sps:$4 sm:$0xff]  }
 0x370   : > { %v2524_v1 = vmul.f32 %v4145_v33, %v6093_v50  ;;  %v2047_v39 = vmul.f32 %v5372_v14, %v1959_v23  ;;  %v4147_v50 = vpop.eup %4146  ;;  %4150 = vpow2.f32 %v3626_v22 }
 0x371   : > { %v2446_v15 = vadd.f32 1.0, %v4147_v50 }
 0x372   : > { %v2550_v12 = vpack.c.bf16 %v2524_v1, %v2523_v9  ;;  %v2079_v54 = vadd.f32 %v2047_v39, %v1883_v28 }
 0x373   : > { %v1963_v30 = vpop.permute.xlu1 %1962  ;;  %4152 = vrcp.f32 %v2446_v15  ;;  %v4012_v15 = vld [vmem:[%s5991_s16 + $0x24] ss:$8 sps:$4 sm:$0xff]  }
 0x374   : > { %3730 = vmatpush3.bf16.msra.mxu0 %v2550_v12  ;;  %3866 = vmatpush3.bf16.msra.mxu1 %v2550_v12  ;;  %v6196_v29 = vadd.f32 %v2202_v60, %v2079_v54  ;;  %4154 = vpow2.f32 %v3644_v0  ;;  %v2048_v16 = vmul.f32 %v5372_v14, %v1963_v30  ;;  %v4014_v60 = vld [vmem:[%s5991_s16 + $0xb4] ss:$8 sps:$4 sm:$0xff]   ;;  %v4016_v0 = vld [vmem:[%s5991_s16 + $0x20] ss:$8 sps:$4 sm:$0xff]  }
 0x376   : > { %v3628_v24 = vmul.f32 -1.442695, %v6196_v29  ;;  %v2080_v6 = vadd.f32 %v2048_v16, %v1884_v32  ;;  %v4034_v16 = vld [vmem:[%s5991_s16 + $0x50] ss:$8 sps:$4 sm:$0xff]  }
 0x377   : > { %v4041_v32 = vld [vmem:[%s5991_s16 + $0xf0] ss:$8 sps:$4 sm:$0xff]  }
 0x378   : > { %v2197_v63 = vpop.permute.xlu1 %2196 }
 0x379   : > { %v4149_v42 = vpop.eup %4148  ;;  %v2302_v4 = vadd.f32 %v2197_v63, %v2078_v26  ;;  %v4018_v26 = vld [vmem:[%s5991_s16 + $0x34] ss:$8 sps:$4 sm:$0xff]   ;;  %v4023_v63 = vld [vmem:[%s5991_s16 + $0xc0] ss:$8 sps:$4 sm:$0xff]  }
 0x37a   : > { %v2445_v21 = vadd.f32 1.0, %v4149_v42  ;;  %v4151_v46 = vpop.eup %4150  ;;  %v4024_v42 = vld [vmem:[%s5991_s16 + $0x44] ss:$8 sps:$4 sm:$0xff]  }
 0x37b   : > { %v3627_v56 = vmul.f32 -1.442695, %v2302_v4  ;;  %v2429_v58 = vadd.f32 1.0, %v4151_v46  ;;  %v6237_v46 = vpop.permute.xlu0 %2707 }
 0x37c   : > { %4156 = vrcp.f32 %v2445_v21  ;;  %v2287_v18 = vpop.permute.xlu1 %2286  ;;  %v4032_v21 = vld [vmem:[%s5991_s16 + $0xe4] ss:$8 sps:$4 sm:$0xff]  }
 0x37d   : > { %4158 = vpow2.f32 %v3627_v56  ;;  %v2320_v5 = vadd.f32 %v2287_v18, %v2096_v10  ;;  %v4153_v23 = vpop.eup %4152  ;;  %v4035_v56 = vld [vmem:[%s5991_s16 + $0xe0] ss:$8 sps:$4 sm:$0xff]   ;;  %v4036_v10 = vld [vmem:[%s5991_s16 + $0x64] ss:$8 sps:$4 sm:$0xff]  }
 0x37e   : > { %4160 = vpow2.f32 %v3628_v24  ;;  %v4155_v14 = vpop.eup %4154  ;;  %v2542_v11 = vmul.f32 %v4153_v23, %v6115_v8  ;;  %v4038_v24 = vld [vmem:[%s5991_s16 + $0xf4] ss:$8 sps:$4 sm:$0xff]   ;;  %v4040_v18 = vld [vmem:[%s5991_s16 + $0x60] ss:$8 sps:$4 sm:$0xff]  }
 0x37f   : > { %v3645_v33 = vmul.f32 -1.442695, %v2320_v5  ;;  %v2447_v35 = vadd.f32 1.0, %v4155_v14 }
 0x380   : > { %v2207_v19 = vpop.permute.xlu1 %2206 }
 0x381   : > { %4162 = vpow2.f32 %v3645_v33  ;;  %v2304_v48 = vadd.f32 %v2207_v19, %v2080_v6  ;;  %v4044_v33 = vld [vmem:[%s5991_s16 + $0x70] ss:$8 sps:$4 sm:$0xff]   ;;  %v4045_v6 = vld [vmem:[%s5991_s16 + $0x84] ss:$8 sps:$4 sm:$0xff]   ;;  %v4047_v19 = vld [vmem:[%s5991_s16 + $0x80] ss:$8 sps:$4 sm:$0xff]  }
 0x383   : > { %v3629_v20 = vmul.f32 -1.442695, %v2304_v48 }
 0x385   : > { %4164 = vpow2.f32 %v3629_v20  ;;  %v2628_v20 = vpop.permute.xlu0 %2627 }
 0x386   : > { %v4157_v1 = vpop.eup %4156  ;;  %4166 = vrcp.f32 %v2429_v58 }
 0x387   : > { %v4159_v39 = vpop.eup %4158  ;;  %v2541_v9 = vmul.f32 %v4157_v1, %v6152_v25 }
 0x388   : > { %v2430_v17 = vadd.f32 1.0, %v4159_v39  ;;  %v4161_v57 = vpop.eup %4160 }
 0x389   : > { %v2559_v38 = vpack.c.bf16 %v2542_v11, %v2541_v9  ;;  %v2431_v51 = vadd.f32 1.0, %v4161_v57  ;;  %v2718_v58 = vpop.permute.xlu0 %2717 }
 0x38a   : > { %4168 = vrcp.f32 %v2430_v17 }
 0x38b   : > { %v4163_v3 = vpop.eup %4162  ;;  %3731 = vmatprep.subr.bf16.mxu0 %v2559_v38  ;;  %3859 = vmatprep.subr.bf16.mxu1 %v2559_v38  ;;  %4170 = vrcp.f32 %v2447_v35 }
 0x38c   : > { %v2448_v27 = vadd.f32 1.0, %v4163_v3 }
 0x38d   : > { %v2638_v1 = vpop.permute.xlu0 %2637 }
 0x38e   : > { %4172 = vrcp.f32 %v2448_v27 }
 0x38f   : > { %v4165_v41 = vpop.eup %4164  ;;  %4174 = vrcp.f32 %v2431_v51 }
 0x390   : > { %v2432_v28 = vadd.f32 1.0, %v4165_v41  ;;  %v4167_v12 = vpop.eup %4166 }
 0x391   : > { %v2525_v50 = vmul.f32 %v4167_v12, %v6171_v34  ;;  %v2728_v9 = vpop.permute.xlu0 %2727 }
 0x392   : > { %4176 = vrcp.f32 %v2432_v28 }
 0x394   : > { %v4169_v25 = vpop.eup %4168 }
 0x395   : > { %v2526_v8 = vmul.f32 %v4169_v25, %v2302_v4  ;;  %v4171_v2 = vpop.eup %4170  ;;  %v4029_v4 = vld [vmem:[%s5991_s16 + $0xd0] ss:$8 sps:$4 sm:$0xff]   ;;  %v6241_v35 = vpop.permute.xlu0 %2647 }
 0x396   : > { %v2543_v62 = vmul.f32 %v4171_v2, %v6185_v52  ;;  %v4006_v52 = vld [vmem:[%s5991_s16 + $0x14] ss:$8 sps:$4 sm:$0xff]  }
 0x397   : > { %v2551_v22 = vpack.c.bf16 %v2526_v8, %v2525_v50 }
 0x398   : > { %v4173_v13 = vpop.eup %4172 }
 0x399   : > { %v2544_v30 = vmul.f32 %v4173_v13, %v2320_v5  ;;  %3732 = vmatpush3.bf16.msra.mxu0 %v2551_v22  ;;  %3867 = vmatpush3.bf16.msra.mxu1 %v2551_v22  ;;  %v4175_v31 = vpop.eup %4174  ;;  %v4042_v5 = vld [vmem:[%s5991_s16 + $0x74] ss:$8 sps:$4 sm:$0xff]   ;;  %v6245_v38 = vpop.permute.xlu0 %2737 }
 0x39a   : > { %v2527_v53 = vmul.f32 %v4175_v31, %v6196_v29  ;;  %v4022_v29 = vld [vmem:[%s5991_s16 + $0x30] ss:$8 sps:$4 sm:$0xff]  }
 0x39b   : > { %v2560_v7 = vpack.c.bf16 %v2544_v30, %v2543_v62 }
 0x39c   : > { %v4177_v54 = vpop.eup %4176 }
 0x39d   : > { %3733 = vmatprep.subr.bf16.mxu0 %v2560_v7  ;;  %3860 = vmatprep.subr.bf16.mxu1 %v2560_v7  ;;  %v2528_v34 = vmul.f32 %v4177_v54, %v2304_v48  ;;  %v6239_v48 = vpop.permute.xlu1 %2712  ;;  %v6249_v3 = vpop.permute.xlu0 %2657 }
 0x39f   : > { %v2552_v40 = vpack.c.bf16 %v2528_v34, %v2527_v53 }
 0x3a1   : > { %3734 = vmatpush3.bf16.msra.mxu0 %v2552_v40  ;;  %3868 = vmatpush3.bf16.msra.mxu1 %v2552_v40  ;;  %v2633_v23 = vpop.permute.xlu1 %2632 }
 0x3a4   : > { %2978 = vmatmul.mubr.bf16.vlgmr.msra.gmra.mrb[0].mxu0 %v4000_v59  ;;  %3050 = vmatmul.mubr.bf16.vlgmr.msra.gmra.mrb[0].mxu1 %v4003_v45  ;;  %v6268_v59 = vld [vmem:[%s478_s19] sm:$0xff]  ;;  %v6270_v45 = vpop.permute.xlu0 %2747 }
 0x3a5   : > { %2985 = vmatprep.mubr.bf16.mxu0 %v4006_v52  ;;  %3057 = vmatprep.mubr.bf16.mxu1 %v4008_v36  ;;  %v2723_v14 = vpop.permute.xlu1 %2722  ;;  %v3711_v36 = vcombine.high %v6268_v59, %v6268_v59 }
 0x3a9   : > { %v2643_v39 = vpop.permute.xlu1 %2642 }
 0x3ac   : > { %2986 = vmatmul.mubr.bf16.gmra.mrb[4].mxu0 %v4010_v49  ;;  %3058 = vmatmul.mubr.bf16.gmra.mrb[4].mxu1 %v4011_v47 }
 0x3ad   : > { %2993 = vmatprep.mubr.bf16.mxu0 %v4012_v15  ;;  %3065 = vmatprep.mubr.bf16.mxu1 %v4014_v60  ;;  %v2733_v11 = vpop.permute.xlu1 %2732 }
 0x3b1   : > { %v6243_v17 = vpop.permute.xlu1 %2652 }
 0x3b4   : > { %2994 = vmatmul.mubr.bf16.gmra.mrb[8].mxu0 %v4016_v0  ;;  %3066 = vmatmul.mubr.bf16.gmra.mrb[8].mxu1 %v4017_v61 }
 0x3b5   : > { %3001 = vmatprep.mubr.bf16.mxu0 %v4018_v26  ;;  %3073 = vmatprep.mubr.bf16.mxu1 %v4020_v43  ;;  %v6247_v57 = vpop.permute.xlu1 %2742 }
 0x3b9   : > { %v6251_v27 = vpop.permute.xlu1 %2662 }
 0x3bc   : > { %3002 = vmatmul.mubr.bf16.gmra.mrb[12].mxu0 %v4022_v29  ;;  %3074 = vmatmul.mubr.bf16.gmra.mrb[12].mxu1 %v4023_v63 }
 0x3bd   : > { %3009 = vmatprep.mubr.bf16.mxu0 %v4024_v42  ;;  %3081 = vmatprep.mubr.bf16.mxu1 %v4026_v55  ;;  %v6272_v52 = vpop.permute.xlu1 %2752 }
 0x3c4   : > { %3010 = vmatmul.mubr.bf16.gmra.mrb[16].mxu0 %v4028_v44  ;;  %3082 = vmatmul.mubr.bf16.gmra.mrb[16].mxu1 %v4029_v4 }
 0x3c5   : > { %3017 = vmatprep.mubr.bf16.mxu0 %v4030_v37  ;;  %3089 = vmatprep.mubr.bf16.mxu1 %v4032_v21 }
 0x3cc   : > { %3018 = vmatmul.mubr.bf16.gmra.mrb[20].mxu0 %v4034_v16  ;;  %3090 = vmatmul.mubr.bf16.gmra.mrb[20].mxu1 %v4035_v56 }
 0x3cd   : > { %3025 = vmatprep.mubr.bf16.mxu0 %v4036_v10  ;;  %3097 = vmatprep.mubr.bf16.mxu1 %v4038_v24 }
 0x3d4   : > { %3026 = vmatmul.mubr.bf16.gmra.mrb[24].mxu0 %v4040_v18  ;;  %3098 = vmatmul.mubr.bf16.gmra.mrb[24].mxu1 %v4041_v32  ;;  %v6288_v18 = vpop.permute.xlu0 %2667  ;;  %v6290_v32 = vpop.permute.xlu1 %2672 }
 0x3d5   : > { %3033 = vmatprep.mubr.bf16.mxu0 %v4042_v5  ;;  %3395 = vmatprep.mubr.bf16.mxu1 %v3711_v36 }
 0x3d8   : > { %v6302_v36 = vpop.permute.xlu0 %2757 }
 0x3dc   : > { %3034 = vmatmul.mubr.bf16.gmra.mrb[28].mxu0 %v4044_v33 }
 0x3dd   : > { %3041 = vmatprep.mubr.bf16.mxu0 %v4045_v6 }
 0x3e4   : > { %3042 = vmatmul.mubr.bf16.gmra.mrb[32].mxu0 %v4047_v19 }
 0x477   : > { %v3735_v51 = vpop.f32.mrb[0].mxu0  ;;  %v3789_v41 = vpop.f32.mrb[0].mxu1 }
 0x478   : > { %v3736_v28 = vpop.f32.mrb[1].mxu0  ;;  %v3790_v12 = vpop.f32.mrb[1].mxu1 }
 0x479   : > { %v3737_v25 = vadd.f32 %v3736_v28, %v3735_v51  ;;  %v3791_v8 = vadd.f32 %v3790_v12, %v3789_v41  ;;  %v3738_v50 = vpop.f32.mrb[2].mxu0  ;;  %v3792_v2 = vpop.f32.mrb[2].mxu1 }
 0x47a   : > { %v3739_v22 = vpop.f32.mrb[3].mxu0  ;;  %v3793_v13 = vpop.f32.mrb[3].mxu1 }
 0x47b   : > { %v6253_v30 = vadd.f32 %v3737_v25, %v2628_v20  ;;  %v6255_v62 = vadd.f32 %v3791_v8, %v2718_v58  ;;  %v3740_v31 = vadd.f32 %v3739_v22, %v3738_v50  ;;  %v3794_v7 = vadd.f32 %v3793_v13, %v3792_v2 }
 0x47d   : > { %v3678_v54 = vmul.f32 -1.442695, %v6253_v30  ;;  %v3696_v34 = vmul.f32 -1.442695, %v6255_v62  ;;  %v6264_v53 = vadd.f32 %v3740_v31, %v2633_v23  ;;  %v6266_v40 = vadd.f32 %v3794_v7, %v2723_v14 }
 0x47f   : > { %4178 = vpow2.f32 %v3678_v54  ;;  %v3679_v49 = vmul.f32 -1.442695, %v6264_v53  ;;  %v3697_v47 = vmul.f32 -1.442695, %v6266_v40  ;;  %v3741_v15 = vpop.f32.mrb[4].mxu0  ;;  %v3795_v60 = vpop.f32.mrb[4].mxu1 }
 0x480   : > { %4180 = vpow2.f32 %v3696_v34  ;;  %v3742_v0 = vpop.f32.mrb[5].mxu0  ;;  %v3796_v61 = vpop.f32.mrb[5].mxu1 }
 0x481   : > { %4182 = vpow2.f32 %v3679_v49  ;;  %v3743_v26 = vadd.f32 %v3742_v0, %v3741_v15  ;;  %v3797_v43 = vadd.f32 %v3796_v61, %v3795_v60  ;;  %v3744_v29 = vpop.f32.mrb[6].mxu0  ;;  %v3798_v63 = vpop.f32.mrb[6].mxu1 }
 0x482   : > { %4184 = vpow2.f32 %v3697_v47  ;;  %v3745_v42 = vpop.f32.mrb[7].mxu0  ;;  %v3799_v55 = vpop.f32.mrb[7].mxu1 }
 0x483   : > { %v6278_v44 = vadd.f32 %v3743_v26, %v2638_v1  ;;  %v6280_v4 = vadd.f32 %v3797_v43, %v2728_v9  ;;  %v3746_v37 = vadd.f32 %v3745_v42, %v3744_v29  ;;  %v3800_v21 = vadd.f32 %v3799_v55, %v3798_v63  ;;  %v6304_v49 = vpop.permute.xlu1 %2762 }
 0x485   : > { %v3680_v16 = vmul.f32 -1.442695, %v6278_v44  ;;  %v3698_v56 = vmul.f32 -1.442695, %v6280_v4  ;;  %v6284_v10 = vadd.f32 %v3746_v37, %v2643_v39  ;;  %v6286_v24 = vadd.f32 %v3800_v21, %v2733_v11 }
 0x487   : > { %4186 = vpow2.f32 %v3680_v16  ;;  %v3681_v5 = vmul.f32 -1.442695, %v6284_v10  ;;  %v3699_v33 = vmul.f32 -1.442695, %v6286_v24  ;;  %v3747_v6 = vpop.f32.mrb[8].mxu0  ;;  %v3801_v19 = vpop.f32.mrb[8].mxu1 }
 0x488   : > { %4188 = vpow2.f32 %v3698_v56  ;;  %v3748_v20 = vpop.f32.mrb[9].mxu0  ;;  %v3802_v23 = vpop.f32.mrb[9].mxu1 }
 0x489   : > { %v4179_v58 = vpop.eup %4178  ;;  %4190 = vpow2.f32 %v3681_v5  ;;  %v3749_v14 = vadd.f32 %v3748_v20, %v3747_v6  ;;  %v3803_v1 = vadd.f32 %v3802_v23, %v3801_v19  ;;  %v3750_v39 = vpop.f32.mrb[10].mxu0 }
 0x48a   : > { %v3804_v9 = vpop.f32.mrb[10].mxu1  ;;  %v4181_v11 = vpop.eup %4180  ;;  %v3202_v51 = vadd.f32 1.0, %v4179_v58  ;;  %4192 = vpow2.f32 %v3699_v33 }
 0x48b   : > { %v3751_v41 = vpop.f32.mrb[11].mxu0  ;;  %v3805_v28 = vpop.f32.mrb[11].mxu1  ;;  %v3220_v25 = vadd.f32 1.0, %v4181_v11  ;;  %v6295_v8 = vadd.f32 %v3749_v14, %v6241_v35  ;;  %v6298_v50 = vadd.f32 %v3803_v1, %v6245_v38 }
 0x48c   : > { %v4183_v12 = vpop.eup %4182  ;;  %v3752_v2 = vadd.f32 %v3751_v41, %v3750_v39  ;;  %4194 = vrcp.f32 %v3202_v51  ;;  %v3806_v31 = vadd.f32 %v3805_v28, %v3804_v9  ;;  %v6322_v9 = vpop.permute.xlu0 %2677 }
 0x48d   : > { %v4185_v22 = vpop.eup %4184  ;;  %v3203_v13 = vadd.f32 1.0, %v4183_v12  ;;  %4196 = vrcp.f32 %v3220_v25  ;;  %v3682_v54 = vmul.f32 -1.442695, %v6295_v8  ;;  %v3700_v34 = vmul.f32 -1.442695, %v6298_v50  ;;  %v6324_v11 = vpop.permute.xlu1 %2682 }
 0x48e   : > { %v3221_v7 = vadd.f32 1.0, %v4185_v22  ;;  %v6307_v35 = vadd.f32 %v3752_v2, %v6243_v17  ;;  %v6310_v38 = vadd.f32 %v3806_v31, %v6247_v57 }
 0x48f   : > { %4198 = vrcp.f32 %v3203_v13  ;;  %v3753_v47 = vpop.f32.mrb[12].mxu0  ;;  %v3807_v15 = vpop.f32.mrb[12].mxu1 }
 0x490   : > { %4200 = vrcp.f32 %v3221_v7  ;;  %v3683_v60 = vmul.f32 -1.442695, %v6307_v35  ;;  %v3701_v0 = vmul.f32 -1.442695, %v6310_v38  ;;  %v3754_v61 = vpop.f32.mrb[13].mxu0  ;;  %v3808_v26 = vpop.f32.mrb[13].mxu1 }
 0x491   : > { %4202 = vpow2.f32 %v3682_v54  ;;  %v4187_v43 = vpop.eup %4186  ;;  %v3755_v29 = vadd.f32 %v3754_v61, %v3753_v47  ;;  %v3809_v63 = vadd.f32 %v3808_v26, %v3807_v15  ;;  %v3756_v42 = vpop.f32.mrb[14].mxu0 }
 0x492   : > { %4204 = vpow2.f32 %v3700_v34  ;;  %v3810_v17 = vpop.f32.mrb[14].mxu1  ;;  %v4189_v55 = vpop.eup %4188  ;;  %v3204_v37 = vadd.f32 1.0, %v4187_v43 }
 0x493   : > { %4206 = vpow2.f32 %v3683_v60  ;;  %v3757_v57 = vpop.f32.mrb[15].mxu0  ;;  %v3811_v21 = vpop.f32.mrb[15].mxu1  ;;  %v3222_v56 = vadd.f32 1.0, %v4189_v55  ;;  %v6315_v5 = vadd.f32 %v3755_v29, %v6249_v3  ;;  %v6318_v33 = vadd.f32 %v3809_v63, %v6270_v45 }
 0x494   : > { %v4191_v16 = vpop.eup %4190  ;;  %4208 = vpow2.f32 %v3701_v0  ;;  %v3758_v20 = vadd.f32 %v3757_v57, %v3756_v42  ;;  %v3812_v23 = vadd.f32 %v3811_v21, %v3810_v17 }
 0x495   : > { %v4193_v6 = vpop.eup %4192  ;;  %4210 = vrcp.f32 %v3204_v37  ;;  %v3205_v19 = vadd.f32 1.0, %v4191_v16  ;;  %v3684_v14 = vmul.f32 -1.442695, %v6315_v5  ;;  %v3702_v1 = vmul.f32 -1.442695, %v6318_v33 }
 0x496   : > { %4212 = vrcp.f32 %v3222_v56  ;;  %v3223_v58 = vadd.f32 1.0, %v4193_v6  ;;  %v4195_v39 = vpop.eup %4194  ;;  %v6327_v3 = vadd.f32 %v3758_v20, %v6251_v27  ;;  %v6330_v45 = vadd.f32 %v3812_v23, %v6272_v52  ;;  %v2768_v56 = vpop.permute.xlu0 %2767 }
 0x497   : > { %4214 = vrcp.f32 %v3205_v19  ;;  %v4197_v51 = vpop.eup %4196  ;;  %v3759_v41 = vpop.f32.mrb[16].mxu0  ;;  %v6333_v25 = vmul.f32 %v4195_v39, %v6253_v30 }
 0x498   : > { %4216 = vrcp.f32 %v3223_v58  ;;  %v3813_v28 = vpop.f32.mrb[16].mxu1  ;;  %v3685_v2 = vmul.f32 -1.442695, %v6327_v3  ;;  %v3703_v22 = vmul.f32 -1.442695, %v6330_v45  ;;  %v3760_v13 = vpop.f32.mrb[17].mxu0  ;;  %v6341_v30 = vmul.f32 %v4197_v51, %v6255_v62 }
 0x499   : > { %v4199_v12 = vpop.eup %4198  ;;  %4218 = vpow2.f32 %v3684_v14  ;;  %v3814_v31 = vpop.f32.mrb[17].mxu1  ;;  %v3761_v52 = vadd.f32 %v3760_v13, %v3759_v41 }
 0x49a   : > { %v4201_v27 = vpop.eup %4200  ;;  %v6338_v7 = vmul.f32 %v4199_v12, %v6264_v53  ;;  %4220 = vpow2.f32 %v3702_v1  ;;  %v3815_v54 = vadd.f32 %v3814_v31, %v3813_v28  ;;  %v3762_v34 = vpop.f32.mrb[18].mxu0 }
 0x49b   : > { %v3816_v47 = vpop.f32.mrb[18].mxu1  ;;  %v4203_v15 = vpop.eup %4202  ;;  %v6344_v60 = vmul.f32 %v4201_v27, %v6266_v40  ;;  %4222 = vpow2.f32 %v3685_v2  ;;  %v6349_v29 = vadd.f32 %v3761_v52, %v6288_v18 }
 0x49c   : > { %v3763_v0 = vpop.f32.mrb[19].mxu0  ;;  %v3817_v61 = vpop.f32.mrb[19].mxu1  ;;  %v3330_v53 = vpack.c.bf16 %v6338_v7, %v6333_v25  ;;  %v3206_v43 = vadd.f32 1.0, %v4203_v15  ;;  %4224 = vpow2.f32 %v3703_v22  ;;  %v6352_v62 = vadd.f32 %v3815_v54, %v6302_v36 }
 0x49d   : > { %v4205_v26 = vpop.eup %4204  ;;  %v3764_v17 = vadd.f32 %v3763_v0, %v3762_v34  ;;  %v3818_v40 = vadd.f32 %v3817_v61, %v3816_v47  ;;  %v3686_v57 = vmul.f32 -1.442695, %v6349_v29  ;;  %v3339_v21 = vpack.c.bf16 %v6344_v60, %v6341_v30  ;;  %v2773_v6 = vpop.permute.xlu1 %2772 }
 0x49e   : > { %v4207_v63 = vpop.eup %4206  ;;  %v3224_v42 = vadd.f32 1.0, %v4205_v26  ;;  %4226 = vrcp.f32 %v3206_v43  ;;  %v3704_v19 = vmul.f32 -1.442695, %v6352_v62  ;;  %v3710_v25 = vcombine.low %v6268_v59, %v6268_v59 }
 0x49f   : > { %v4209_v55 = vpop.eup %4208  ;;  %v3207_v37 = vadd.f32 1.0, %v4207_v63  ;;  %v6359_v36 = vadd.f32 %v3764_v17, %v6290_v32  ;;  %v6362_v23 = vadd.f32 %v3818_v40, %v6304_v49  ;;  %v3765_v58 = vpop.f32.mrb[20].mxu0 }
 0x4a0   : > { %v4211_v16 = vpop.eup %4210  ;;  %4228 = vrcp.f32 %v3224_v42  ;;  %v3225_v18 = vadd.f32 1.0, %v4209_v55  ;;  %v3819_v14 = vpop.f32.mrb[20].mxu1 }
 0x4a1   : > { %v4213_v20 = vpop.eup %4212  ;;  %4230 = vrcp.f32 %v3207_v37  ;;  %v6365_v39 = vmul.f32 %v4211_v16, %v6278_v44  ;;  %v3687_v51 = vmul.f32 -1.442695, %v6359_v36  ;;  %v3766_v41 = vpop.f32.mrb[21].mxu0  ;;  %v3705_v2 = vmul.f32 -1.442695, %v6362_v23 }
 0x4a2   : > { %v4215_v1 = vpop.eup %4214  ;;  %4232 = vrcp.f32 %v3225_v18  ;;  %v3820_v28 = vpop.f32.mrb[21].mxu1  ;;  %v3767_v49 = vadd.f32 %v3766_v41, %v3765_v58  ;;  %v6373_v27 = vmul.f32 %v4213_v20, %v6280_v4 }
 0x4a3   : > { %v4217_v12 = vpop.eup %4216  ;;  %v6369_v32 = vmul.f32 %v4215_v1, %v6284_v10  ;;  %4234 = vpow2.f32 %v3686_v57  ;;  %v3768_v22 = vpop.f32.mrb[22].mxu0  ;;  %v3821_v52 = vadd.f32 %v3820_v28, %v3819_v14 }
 0x4a4   : > { %v3822_v13 = vpop.f32.mrb[22].mxu1  ;;  %v4219_v31 = vpop.eup %4218  ;;  %v6376_v44 = vmul.f32 %v4217_v12, %v6286_v24  ;;  %4236 = vpow2.f32 %v3704_v19  ;;  %v6381_v0 = vadd.f32 %v3767_v49, %v6322_v9 }
 0x4a5   : > { %v3769_v54 = vpop.f32.mrb[23].mxu0  ;;  %v3823_v34 = vpop.f32.mrb[23].mxu1  ;;  %v3331_v10 = vpack.c.bf16 %v6369_v32, %v6365_v39  ;;  %v3208_v15 = vadd.f32 1.0, %v4219_v31  ;;  %4238 = vpow2.f32 %v3687_v51  ;;  %v6383_v4 = vadd.f32 %v3821_v52, %v2768_v56 }
 0x4a6   : > { %v4221_v47 = vpop.eup %4220  ;;  %4240 = vpow2.f32 %v3705_v2  ;;  %v3770_v24 = vadd.f32 %v3769_v54, %v3768_v22  ;;  %v2688_v63 = vpop.permute.xlu0 %2687  ;;  %v3688_v17 = vmul.f32 -1.442695, %v6381_v0  ;;  %v3824_v40 = vadd.f32 %v3823_v34, %v3822_v13 }
 0x4a7   : > { %v4223_v61 = vpop.eup %4222  ;;  %v3226_v26 = vadd.f32 1.0, %v4221_v47  ;;  %4242 = vrcp.f32 %v3208_v15  ;;  %v2693_v55 = vpop.permute.xlu1 %2692  ;;  %v3706_v57 = vmul.f32 -1.442695, %v6383_v4  ;;  %v3340_v20 = vpack.c.bf16 %v6376_v44, %v6373_v27 }
 0x4a8   : > { %v4225_v43 = vpop.eup %4224  ;;  %v3209_v42 = vadd.f32 1.0, %v4223_v61  ;;  %v6388_v9 = vadd.f32 %v3770_v24, %v6324_v11  ;;  %v6390_v56 = vadd.f32 %v3824_v40, %v2773_v6  ;;  %v3771_v18 = vpop.f32.mrb[24].mxu0 }
 0x4a9   : > { %4244 = vrcp.f32 %v3226_v26  ;;  %v3227_v37 = vadd.f32 1.0, %v4225_v43  ;;  %v4227_v16 = vpop.eup %4226  ;;  %v3825_v19 = vpop.f32.mrb[24].mxu1 }
 0x4aa   : > { %4246 = vrcp.f32 %v3209_v42  ;;  %v4229_v58 = vpop.eup %4228  ;;  %v3689_v14 = vmul.f32 -1.442695, %v6388_v9  ;;  %v3772_v1 = vpop.f32.mrb[25].mxu0  ;;  %v6396_v28 = vmul.f32 %v4227_v16, %v6295_v8  ;;  %v3707_v11 = vmul.f32 -1.442695, %v6390_v56 }
 0x4ab   : > { %4248 = vrcp.f32 %v3227_v37  ;;  %v3826_v51 = vpop.f32.mrb[25].mxu1  ;;  %v4231_v41 = vpop.eup %4230  ;;  %v3773_v6 = vadd.f32 %v3772_v1, %v3771_v18  ;;  %v6400_v22 = vmul.f32 %v4229_v58, %v6298_v50 }
 0x4ac   : > { %4250 = vpow2.f32 %v3688_v17  ;;  %v3774_v12 = vpop.f32.mrb[26].mxu0  ;;  %v3828_v2 = vpop.f32.mrb[26].mxu1  ;;  %v6403_v13 = vmul.f32 %v4231_v41, %v6307_v35  ;;  %v3827_v31 = vadd.f32 %v3826_v51, %v3825_v19 }
 0x4ad   : > { %v4233_v49 = vpop.eup %4232  ;;  %4252 = vpow2.f32 %v3706_v57  ;;  %v3775_v52 = vpop.f32.mrb[27].mxu0  ;;  %v6408_v15 = vadd.f32 %v3773_v6, %v2688_v63 }
 0x4ae   : > { %v3829_v54 = vpop.f32.mrb[27].mxu1  ;;  %v4235_v34 = vpop.eup %4234  ;;  %v6406_v47 = vmul.f32 %v4233_v49, %v6310_v38  ;;  %4254 = vpow2.f32 %v3689_v14  ;;  %v3776_v61 = vadd.f32 %v3775_v52, %v3774_v12  ;;  %v3332_v50 = vpack.c.bf16 %v6403_v13, %v6396_v28 }
 0x4af   : > { %v2778_v8 = vpop.permute.xlu0 %2777  ;;  %v4237_v26 = vpop.eup %4236  ;;  %v3210_v24 = vadd.f32 1.0, %v4235_v34  ;;  %4256 = vpow2.f32 %v3707_v11  ;;  %v3830_v40 = vadd.f32 %v3829_v54, %v3828_v2  ;;  %v3690_v63 = vmul.f32 -1.442695, %v6408_v15 }
 0x4b0   : > { %v6412_v35 = vadd.f32 %v3827_v31, %v2778_v8  ;;  %v4239_v43 = vpop.eup %4238  ;;  %v3228_v42 = vadd.f32 1.0, %v4237_v26  ;;  %v6414_v17 = vadd.f32 %v3776_v61, %v2693_v55  ;;  %v2783_v38 = vpop.permute.xlu1 %2782  ;;  %v3341_v16 = vpack.c.bf16 %v6406_v47, %v6400_v22 }
 0x4b1   : > { %v4241_v37 = vpop.eup %4240  ;;  %4258 = vrcp.f32 %v3210_v24  ;;  %v3211_v57 = vadd.f32 1.0, %v4239_v43  ;;  %v6420_v14 = vadd.f32 %v3830_v40, %v2783_v38  ;;  %v3777_v1 = vpop.f32.mrb[28].mxu0 }
 0x4b2   : > { %v4243_v18 = vpop.eup %4242  ;;  %4260 = vrcp.f32 %v3228_v42  ;;  %v3229_v19 = vadd.f32 1.0, %v4241_v37  ;;  %v3708_v58 = vmul.f32 -1.442695, %v6412_v35  ;;  %v3691_v51 = vmul.f32 -1.442695, %v6414_v17  ;;  %v3778_v41 = vpop.f32.mrb[29].mxu0 }
 0x4b3   : > { %v4245_v55 = vpop.eup %4244  ;;  %4262 = vrcp.f32 %v3211_v57  ;;  %v3709_v6 = vmul.f32 -1.442695, %v6420_v14  ;;  %v3779_v12 = vadd.f32 %v3778_v41, %v3777_v1  ;;  %v3780_v2 = vpop.f32.mrb[30].mxu0  ;;  %v6425_v52 = vmul.f32 %v4243_v18, %v6315_v5 }
 0x4b4   : > { %v4247_v11 = vpop.eup %4246  ;;  %4264 = vrcp.f32 %v3229_v19  ;;  %v2698_v31 = vpop.permute.xlu0 %2697  ;;  %v6436_v40 = vmul.f32 %v4245_v55, %v6318_v33 }
 0x4b5   : > { %v4249_v49 = vpop.eup %4248  ;;  %v6428_v54 = vmul.f32 %v4247_v11, %v6327_v3  ;;  %4266 = vpow2.f32 %v3690_v63  ;;  %v3781_v34 = vpop.f32.mrb[31].mxu0  ;;  %v6433_v26 = vadd.f32 %v3779_v12, %v2698_v31 }
 0x4b6   : > { %v4251_v8 = vpop.eup %4250  ;;  %v6431_v61 = vmul.f32 %v4249_v49, %v6330_v45  ;;  %4268 = vpow2.f32 %v3708_v58  ;;  %v3782_v24 = vadd.f32 %v3781_v34, %v3780_v2  ;;  %v2703_v42 = vpop.permute.xlu1 %2702 }
 0x4b7   : > { %v4253_v43 = vpop.eup %4252  ;;  %v3333_v5 = vpack.c.bf16 %v6428_v54, %v6425_v52  ;;  %v3212_v3 = vadd.f32 1.0, %v4251_v8  ;;  %4270 = vpow2.f32 %v3691_v51  ;;  %v3692_v18 = vmul.f32 -1.442695, %v6433_v26  ;;  %v3783_v1 = vpop.f32.mrb[32].mxu0 }
 0x4b8   : > { %v4255_v37 = vpop.eup %4254  ;;  %v3230_v38 = vadd.f32 1.0, %v4253_v43  ;;  %4272 = vpow2.f32 %v3709_v6  ;;  %v6440_v57 = vadd.f32 %v3782_v24, %v2703_v42  ;;  %v3342_v19 = vpack.c.bf16 %v6431_v61, %v6436_v40  ;;  %v3784_v51 = vpop.f32.mrb[33].mxu0 }
 0x4b9   : > { %v4257_v45 = vpop.eup %4256  ;;  %4274 = vrcp.f32 %v3212_v3  ;;  %v3213_v63 = vadd.f32 1.0, %v4255_v37  ;;  %v3785_v11 = vadd.f32 %v3784_v51, %v3783_v1  ;;  %v3786_v6 = vpop.f32.mrb[34].mxu0 }
 0x4ba   : > { %4276 = vrcp.f32 %v3230_v38  ;;  %v3231_v33 = vadd.f32 1.0, %v4257_v45  ;;  %v3693_v58 = vmul.f32 -1.442695, %v6440_v57  ;;  %v3787_v49 = vpop.f32.mrb[35].mxu0 }
 0x4bb   : > { %v4259_v55 = vpop.eup %4258  ;;  %4278 = vrcp.f32 %v3213_v63  ;;  %v3044_v8 = vadd.f32 %v3785_v11, %v6237_v46  ;;  %v3788_v24 = vadd.f32 %v3787_v49, %v3786_v6 }
 0x4bc   : > { %v4261_v41 = vpop.eup %4260  ;;  %4280 = vrcp.f32 %v3231_v33  ;;  %v6447_v2 = vmul.f32 %v4259_v55, %v6349_v29 }
 0x4bd   : > { %v4263_v12 = vpop.eup %4262  ;;  %4282 = vpow2.f32 %v3692_v18  ;;  %v6454_v42 = vmul.f32 %v4261_v41, %v6352_v62  ;;  %v3047_v45 = vadd.f32 %v3788_v24, %v6239_v48  ;;  %v3694_v62 = vmul.f32 -1.442695, %v3044_v8 }
 0x4be   : > { %v4265_v31 = vpop.eup %4264  ;;  %v6450_v34 = vmul.f32 %v4263_v12, %v6359_v36  ;;  %4284 = vpow2.f32 %v3693_v58 }
 0x4bf   : > { %v4267_v43 = vpop.eup %4266  ;;  %v6457_v3 = vmul.f32 %v4265_v31, %v6362_v23  ;;  %v3695_v1 = vmul.f32 -1.442695, %v3047_v45 }
 0x4c0   : > { %v4269_v37 = vpop.eup %4268  ;;  %v3334_v29 = vpack.c.bf16 %v6450_v34, %v6447_v2  ;;  %v3214_v38 = vadd.f32 1.0, %v4267_v43 }
 0x4c1   : > { %v4271_v36 = vpop.eup %4270  ;;  %v3232_v63 = vadd.f32 1.0, %v4269_v37  ;;  %v3343_v46 = vpack.c.bf16 %v6457_v3, %v6454_v42 }
 0x4c2   : > { %v4273_v18 = vpop.eup %4272  ;;  %4286 = vrcp.f32 %v3214_v38  ;;  %v3215_v33 = vadd.f32 1.0, %v4271_v36 }
 0x4c3   : > { %v4275_v58 = vpop.eup %4274  ;;  %4288 = vrcp.f32 %v3232_v63  ;;  %v3233_v23 = vadd.f32 1.0, %v4273_v18 }
 0x4c4   : > { %v4277_v55 = vpop.eup %4276  ;;  %4290 = vrcp.f32 %v3215_v33  ;;  %v3308_v48 = vmul.f32 %v4275_v58, %v6381_v0 }
 0x4c5   : > { %v4279_v51 = vpop.eup %4278  ;;  %4292 = vrcp.f32 %v3233_v23  ;;  %v3326_v12 = vmul.f32 %v4277_v55, %v6383_v4 }
 0x4c6   : > { %v4281_v41 = vpop.eup %4280  ;;  %v3309_v11 = vmul.f32 %v4279_v51, %v6388_v9  ;;  %4294 = vpow2.f32 %v3694_v62 }
 0x4c7   : > { %v4283_v6 = vpop.eup %4282  ;;  %v3327_v49 = vmul.f32 %v4281_v41, %v6390_v56  ;;  %4296 = vpow2.f32 %v3695_v1 }
 0x4c8   : > { %v4285_v31 = vpop.eup %4284  ;;  %v3335_v24 = vpack.c.bf16 %v3309_v11, %v3308_v48  ;;  %v3216_v43 = vadd.f32 1.0, %v4283_v6 }
 0x4c9   : > { %v3217_v37 = vadd.f32 1.0, %v4285_v31  ;;  %v3344_v38 = vpack.c.bf16 %v3327_v49, %v3326_v12 }
 0x4ca   : > { %4298 = vrcp.f32 %v3216_v43 }
 0x4cb   : > { %4300 = vrcp.f32 %v3217_v37 }
 0x4cc   : > { %v4287_v36 = vpop.eup %4286 }
 0x4cd   : > { %v4289_v63 = vpop.eup %4288  ;;  %v3310_v9 = vmul.f32 %v4287_v36, %v6408_v15 }
 0x4ce   : > { %v4291_v18 = vpop.eup %4290  ;;  %v3328_v4 = vmul.f32 %v4289_v63, %v6412_v35 }
 0x4cf   : > { %v4293_v0 = vpop.eup %4292  ;;  %v3311_v33 = vmul.f32 %v4291_v18, %v6414_v17 }
 0x4d0   : > { %v4295_v62 = vpop.eup %4294  ;;  %v3329_v56 = vmul.f32 %v4293_v0, %v6420_v14 }
 0x4d1   : > { %v4297_v58 = vpop.eup %4296  ;;  %v3336_v23 = vpack.c.bf16 %v3311_v33, %v3310_v9  ;;  %v3218_v1 = vadd.f32 1.0, %v4295_v62 }
 0x4d2   : > { %v3219_v55 = vadd.f32 1.0, %v4297_v58  ;;  %v3345_v51 = vpack.c.bf16 %v3329_v56, %v3328_v4 }
 0x4d3   : > { %4302 = vrcp.f32 %v3218_v1 }
 0x4d4   : > { %v4299_v41 = vpop.eup %4298  ;;  %4304 = vrcp.f32 %v3219_v55 }
 0x4d5   : > { %v4301_v48 = vpop.eup %4300  ;;  %v3312_v11 = vmul.f32 %v4299_v41, %v6433_v26 }
 0x4d6   : > { %v3313_v15 = vmul.f32 %v4301_v48, %v6440_v57 }
 0x4d8   : > { %v3337_v6 = vpack.c.bf16 %v3313_v15, %v3312_v11 }
 0x4dd   : > { %v4303_v17 = vpop.eup %4302 }
 0x4de   : > { %v4305_v12 = vpop.eup %4304  ;;  %v3314_v49 = vmul.f32 %v4303_v17, %v3044_v8 }
 0x4df   : > { %v3315_v35 = vmul.f32 %v4305_v12, %v3047_v45 }
 0x4e1   : > { %v3338_v31 = vpack.c.bf16 %v3315_v35, %v3314_v49 }
 0x4e3   : > { %3831 = vmatprep.subr.bf16.mxu1 %v3338_v31 }
 0x4e4   : > { %3832 = vmatpush3.bf16.msra.mxu1 %v3330_v53 }
 0x4e5   : > { %3833 = vmatprep.subr.bf16.mxu1 %v3339_v21  ;;  %v3354_v21 = vpop.permute.xlu0 %3353 }
 0x4e8   : > { %3834 = vmatpush3.bf16.msra.mxu1 %v3331_v10 }
 0x4e9   : > { %3835 = vmatprep.subr.bf16.mxu1 %v3340_v20 }
 0x4ec   : > { %3836 = vmatpush3.bf16.msra.mxu1 %v3332_v50 }
 0x4ed   : > { %3837 = vmatprep.subr.bf16.mxu1 %v3341_v16 }
 0x4f0   : > { %3838 = vmatpush3.bf16.msra.mxu1 %v3333_v5 }
 0x4f1   : > { %3839 = vmatprep.subr.bf16.mxu1 %v3342_v19 }
 0x4f4   : > { %3840 = vmatpush3.bf16.msra.mxu1 %v3334_v29 }
 0x4f5   : > { %3841 = vmatprep.subr.bf16.mxu1 %v3343_v46 }
 0x4f8   : > { %3842 = vmatpush3.bf16.msra.mxu1 %v3335_v24 }
 0x4f9   : > { %3843 = vmatprep.subr.bf16.mxu1 %v3344_v38 }
 0x4fc   : > { %3844 = vmatpush3.bf16.msra.mxu1 %v3336_v23 }
 0x4fd   : > { %3845 = vmatprep.subr.bf16.mxu1 %v3345_v51 }
 0x500   : > { %3846 = vmatpush3.bf16.msra.mxu1 %v3337_v6 }
 0x503   : > { %3396 = vmatmul.mubr.bf16.vlgmr.msra.gmra.mrb[28].mxu1 %v3710_v25 }
 0x5d6   : > { %v3847_v7 = vpop.f32.mrb[28].mxu1 }
 0x5d7   : > { %v3848_v30 = vpop.f32.mrb[29].mxu1 }
 0x5d8   : > { %v3849_v60 = vadd.f32 %v3848_v30, %v3847_v7  ;;  %v3850_v53 = vpop.f32.mrb[30].mxu1 }
 0x5d9   : > { %v3851_v39 = vpop.f32.mrb[31].mxu1 }
 0x5da   : > { %v3398_v32 = vadd.f32 %v3849_v60, %v3354_v21 }
 0x5dc   : > { %3404 = vst.msk [vmem:[%s493_s22] sm:$0xff] %vm3403_vm0, %v3398_v32 }
 0x5dd PF: > { %s19_s9 = sadd.s32 1, %s4380_s9   ;;  %s6854_s27 = smov %s4372_s29 }
 0x5de   : > { %p16_p4 = scmp.ge.s32.totalorder %s19_s9, 6   ;;  %s6855_s28 = smov %s4376_s30 }
 0x5df   : > { %s6856_s29 = smov %s6859_s11  ;;  %s6857_s30 = smov %s6863_s12 }
 0x5e0   :  { %18 = sbr.rel (!%p16_p4) target bundleno = 3 (0x3), region = 105 }
 0x5e7   :  { %3438 = vsyncpa [#allocation3], 1 }
 0x5e8   :  { %3440 = vsyncpa [#allocation3 + $0x1], 1 }

</bundles_post_ra>
